<compile_context>
chip_gen: v5e
topology: v5e:2x2
jax: 0.10.0
libtpu: 0.0.40
codegen_flags: <defaults>
</compile_context>

<pallas_src>
import functools

import numpy as np
import jax
import jax.numpy as jnp
from jax.experimental import pallas as pl
from jax.experimental.pallas import tpu as pltpu

MM_DTYPE = jnp.bfloat16  # matmul operand dtype (accumulation is always f32)


# -----------------------------------------------------------------------------
# The fused decoder kernel (one grid step = one batch element, all layers)
# -----------------------------------------------------------------------------
def _decoder_kernel(z_ref, s9_ref, w1_ref, b1_ref, w23_ref, b23_ref,
                    w3b_ref, b3b_ref, w4_ref, b4_ref, w5a_ref, b5a_ref,
                    w5b_ref, b5b_ref, w6_ref, o_ref, *, hdim, mm_dtype):
    f32 = jnp.float32
    x = z_ref[0]                                                  # (M, Cz) f32

    def mm(a, w):
        return jnp.dot(a.astype(mm_dtype), w, preferred_element_type=f32)

    # deconv1: 1x1 tconv (BN scale folded into W) + bias + ReLU
    skip_in = jnp.maximum(mm(x, w1_ref[...]) + b1_ref[...], 0.0)  # (M, h2)

    def conv3x3(x2, w9_ref):
        # 3x3 s=1 p=1 transposed conv == sum over 9 taps of (S_ab @ X) @ W_ab.
        # S_ab (tiny 0/1 matrices) encode the spatial shift + zero padding, so
        # the whole conv is plain 2-D MXU dots accumulated in f32.
        x2b = x2.astype(mm_dtype)
        cout = w9_ref.shape[2]
        acc = jnp.zeros((x2.shape[0], cout), f32)
        for t in range(9):
            if t == 4:                       # centre tap: S is the identity
                xs = x2b
            else:
                xs = jnp.dot(s9_ref[t], x2b,
                             preferred_element_type=f32).astype(mm_dtype)
            acc = acc + jnp.dot(xs, w9_ref[t], preferred_element_type=f32)
        return acc

    # deconv2 || deconv3a: same input -> one conv with concatenated weights
    acc23 = conv3x3(skip_in, w23_ref) + b23_ref[...]              # (M, 2*hdim)
    skip_out = acc23[:, :hdim]
    h3a = jnp.maximum(acc23[:, hdim:], 0.0)

    # deconv3b + skip + ReLU
    out = jnp.maximum(skip_out + conv3x3(h3a, w3b_ref) + b3b_ref[...], 0.0)

    # deconv4: 2x2 stride-2 tconv in column layout; stays in VMEM as residual
    d4 = mm(out, w4_ref[...]) + b4_ref[...]                       # (M, 4*hdim)

    # deconv5: 3x3 tconv + ReLU, then 2x2 stride-2 tconv (column layout)
    h5 = jnp.maximum(conv3x3(out, w5a_ref) + b5a_ref[...], 0.0)   # (M, h2)
    d5 = mm(h5, w5b_ref[...]) + b5b_ref[...]                      # (M, 4*hdim)

    # deconv6: relu(d4 + d5) @ block-diag(W6)  -> lane-dense (M, 16*d) output
    u = jnp.maximum(d4 + d5, 0.0)
    o_ref[0] = mm(u, w6_ref[...]).astype(o_ref.dtype)


# -----------------------------------------------------------------------------
# One-time parameter preparation (BN folding, weight re-layout) - NOT per-forward
# -----------------------------------------------------------------------------
def _bn_fold(bn, eps=1e-5):
    gamma, beta, mean, var = bn
    s = gamma / jnp.sqrt(var + eps)
    return s, beta - mean * s


def _w9_3x3(w, s):
    # ConvTranspose2d weight (Cin, Cout, 3, 3) -> (9, Cin, Cout) tap weights
    # (flipped kernel: tap[a*3+b] = w[:, :, 2-a, 2-b]), BN scale folded in.
    wf = jnp.flip(w, axis=(2, 3))
    w9 = jnp.transpose(wf, (2, 3, 0, 1)).reshape(9, w.shape[0], w.shape[1])
    return w9 * s[None, None, :]


def _wcols_2x2(w, s):
    # (Cin, Cout, 2, 2) stride-2 tconv -> (Cin, 4*Cout), columns ordered (a,b,co)
    # so out[2i+a, 2j+b, co] = x[i,j,:] @ W_cols[:, (a,b,co)]. BN scale folded in.
    cin, cout = w.shape[0], w.shape[1]
    wc = jnp.transpose(w, (0, 2, 3, 1)).reshape(cin, 4 * cout)
    return wc * jnp.tile(s, 4)[None, :]


def _w6_blockdiag(w):
    # Final 2x2 stride-2 tconv applied to an input that is itself in (a,b,ch)
    # column layout -> block-diagonal (4*Cin, 16*Cout) so the whole output is a
    # single lane-dense matmul.
    cin, cout = w.shape[0], w.shape[1]
    wc = jnp.transpose(w, (0, 2, 3, 1)).reshape(cin, 4 * cout)   # (ci, (c,e,co))
    blk = jnp.zeros((4 * cin, 16 * cout), w.dtype)
    for g in range(4):
        blk = blk.at[g * cin:(g + 1) * cin, g * 4 * cout:(g + 1) * 4 * cout].set(wc)
    return blk


def _shift_mats(H, W):
    # S[a*3+b, r, r'] = 1 iff r'=(i+a-1)*W+(j+b-1) is the in-bounds 3x3 source of
    # r=i*W+j (zero rows where the tap falls outside -> padding handled exactly).
    M = H * W
    S = np.zeros((9, M, M), np.float32)
    for a in range(3):
        for b in range(3):
            for i in range(H):
                for j in range(W):
                    ii, jj = i + a - 1, j + b - 1
                    if 0 <= ii < H and 0 <= jj < W:
                        S[a * 3 + b, i * W + j, ii * W + jj] = 1.0
    return jnp.asarray(S)


def prepare_params(p, H, W, mm_dtype=MM_DTYPE):
    """Fold eval-mode BN into weights/biases and pre-lay-out everything the fused
    kernel needs.  Call once, outside the per-forward path."""
    s1, t1 = _bn_fold(p["bn1"]);   s2, t2 = _bn_fold(p["bn2"])
    s3a, t3a = _bn_fold(p["bn3a"]); s3b, t3b = _bn_fold(p["bn3b"])
    s4, t4 = _bn_fold(p["bn4"]);   s5a, t5a = _bn_fold(p["bn5a"])
    s5b, t5b = _bn_fold(p["bn5b"])

    zdim, h2 = p["w1"].shape[0], p["w1"].shape[1]
    row = lambda v: v.reshape(1, -1).astype(jnp.float32)
    wt = lambda v: v.astype(mm_dtype)
    return {
        "s9": wt(_shift_mats(H, W)),
        "w1": wt(p["w1"].reshape(zdim, h2) * s1[None, :]),
        "b1": row(t1),
        "w23": wt(jnp.concatenate([_w9_3x3(p["w2"], s2),
                                   _w9_3x3(p["w3a"], s3a)], axis=2)),
        "b23": row(jnp.concatenate([t2, t3a])),
        "w3b": wt(_w9_3x3(p["w3b"], s3b)),
        "b3b": row(t3b),
        "w4": wt(_wcols_2x2(p["w4"], s4)),
        "b4": row(jnp.tile(t4, 4)),
        "w5a": wt(_w9_3x3(p["w5a"], s5a)),
        "b5a": row(t5a),
        "w5b": wt(_wcols_2x2(p["w5b"], s5b)),
        "b5b": row(jnp.tile(t5b, 4)),
        "w6": wt(_w6_blockdiag(p["w6"])),
    }


_ARG_ORDER = ("s9", "w1", "b1", "w23", "b23", "w3b", "b3b", "w4", "b4",
              "w5a", "b5a", "w5b", "b5b", "w6")


# -----------------------------------------------------------------------------
# Forward pass: one pallas_call + cheap layout reshapes at the boundary
# -----------------------------------------------------------------------------
@jax.jit
def tower_decoder_forward(z_nchw, kp):
    B, Cz, H, W = z_nchw.shape
    M = H * W
    hdim = kp["w4"].shape[0]
    d16 = kp["w6"].shape[1]          # 16 * d
    d = d16 // 16

    z2 = jnp.transpose(z_nchw, (0, 2, 3, 1)).reshape(B, M, Cz)

    def full_spec(arr):
        nd = arr.ndim
        return pl.BlockSpec(arr.shape, lambda b, nd=nd: (0,) * nd)

    args = [z2] + [kp[k] for k in _ARG_ORDER]
    in_specs = ([pl.BlockSpec((1, M, Cz), lambda b: (b, 0, 0))]
                + [full_spec(kp[k]) for k in _ARG_ORDER])

    y_cols = pl.pallas_call(
        functools.partial(_decoder_kernel, hdim=hdim, mm_dtype=MM_DTYPE),
        grid=(B,),
        in_specs=in_specs,
        out_specs=pl.BlockSpec((1, M, d16), lambda b: (b, 0, 0)),
        out_shape=jax.ShapeDtypeStruct((B, M, d16), jnp.float32),
        compiler_params=pltpu.CompilerParams(dimension_semantics=("parallel",)),
    )(*args)

    # column layout (b, i*W+j, (a,b2,c,e,co)) -> spatial (B, 4H, 4W, d) -> NCHW
    y = y_cols.reshape(B, H, W, 2, 2, 2, 2, d)
    y = jnp.transpose(y, (0, 1, 3, 5, 2, 4, 6, 7)).reshape(B, 4 * H, 4 * W, d)
    return jnp.transpose(y, (0, 3, 1, 2))


# -----------------------------------------------------------------------------
# Pure-JAX reference (direct ConvTranspose2d semantics) for correctness check
# -----------------------------------------------------------------------------
def conv_transpose_ref(x, w, stride, padding):
    B, Cin, H, W = x.shape
    _, Cout, kh, kw = w.shape
    Hd, Wd = (H - 1) * stride + 1, (W - 1) * stride + 1
    xd = jnp.zeros((B, Cin, Hd, Wd), x.dtype).at[:, :, ::stride, ::stride].set(x)
    ph, pw = kh - 1 - padding, kw - 1 - padding
    xp = jnp.pad(xd, ((0, 0), (0, 0), (ph, ph), (pw, pw)))
    wc = jnp.transpose(jnp.flip(w, (2, 3)), (1, 0, 2, 3))
    return jax.lax.conv_general_dilated(
        xp, wc, (1, 1), "VALID",
        dimension_numbers=("NCHW", "OIHW", "NCHW"),
        precision=jax.lax.Precision.HIGHEST)


def bn_ref(x, bn, eps=1e-5):
    gamma, beta, mean, var = bn
    s = gamma / jnp.sqrt(var + eps)
    t = beta - mean * s
    return x * s[None, :, None, None] + t[None, :, None, None]


def reference_forward(z, p):
    relu = lambda a: jnp.maximum(a, 0.0)
    skip_in = relu(bn_ref(conv_transpose_ref(z, p["w1"], 1, 0), p["bn1"]))
    skip_out = bn_ref(conv_transpose_ref(skip_in, p["w2"], 1, 1), p["bn2"])
    d3 = relu(bn_ref(conv_transpose_ref(skip_in, p["w3a"], 1, 1), p["bn3a"]))
    d3 = bn_ref(conv_transpose_ref(d3, p["w3b"], 1, 1), p["bn3b"])
    out = relu(skip_out + d3)
    d4 = bn_ref(conv_transpose_ref(out, p["w4"], 2, 0), p["bn4"])
    d5 = relu(bn_ref(conv_transpose_ref(out, p["w5a"], 1, 1), p["bn5a"]))
    d5 = bn_ref(conv_transpose_ref(d5, p["w5b"], 2, 0), p["bn5b"])
    return conv_transpose_ref(relu(d4 + d5), p["w6"], 2, 0)


# -----------------------------------------------------------------------------
# Deterministic parameter init (shapes from the PyTorch __init__, bias=False)
# -----------------------------------------------------------------------------
def init_params(key, zdim=64, hdim=128, d=8):
    ks = jax.random.split(key, 16)

    def w(k, shape, scale):
        return jax.random.normal(k, shape, jnp.float32) * scale

    def bn(k, c):
        k1, k2, k3, k4 = jax.random.split(k, 4)
        return (jax.random.uniform(k1, (c,), jnp.float32, 0.5, 1.5),   # gamma
                jax.random.normal(k2, (c,), jnp.float32) * 0.1,        # beta
                jax.random.normal(k3, (c,), jnp.float32) * 0.1,        # running_mean
                jax.random.uniform(k4, (c,), jnp.float32, 0.5, 1.5))   # running_var

    h2 = hdim // 2
    p = {}
    p["w1"] = w(ks[0], (zdim, h2, 1, 1), 0.1);     p["bn1"] = bn(ks[1], h2)
    p["w2"] = w(ks[2], (h2, hdim, 3, 3), 0.05);    p["bn2"] = bn(ks[3], hdim)
    p["w3a"] = w(ks[4], (h2, hdim, 3, 3), 0.05);   p["bn3a"] = bn(ks[5], hdim)
    p["w3b"] = w(ks[6], (hdim, hdim, 3, 3), 0.05); p["bn3b"] = bn(ks[7], hdim)
    p["w4"] = w(ks[8], (hdim, hdim, 2, 2), 0.05);  p["bn4"] = bn(ks[9], hdim)
    p["w5a"] = w(ks[10], (hdim, h2, 3, 3), 0.05);  p["bn5a"] = bn(ks[11], h2)
    p["w5b"] = w(ks[12], (h2, hdim, 2, 2), 0.05);  p["bn5b"] = bn(ks[13], hdim)
    p["w6"] = w(ks[14], (hdim, d, 2, 2), 0.05)
    return p


if __name__ == "__main__":
    key = jax.random.PRNGKey(0)
    kz, kpk = jax.random.split(key)

    B, zdim, H, W = 2, 64, 4, 4
    hdim, d = 128, 8

    z = jax.random.normal(kz, (B, zdim, H, W), jnp.float32)
    params = init_params(kpk, zdim=zdim, hdim=hdim, d=d)
    kparams = prepare_params(params, H, W)        # once, outside the forward path

    y = jax.block_until_ready(tower_decoder_forward(z, kparams))
    assert y.shape == (B, d, 4 * H, 4 * W), y.shape

    y_ref = jax.block_until_ready(reference_forward(z, params))
    # bf16 matmul operands (f32 accumulation/epilogue) -> slightly looser tolerance
    err = float(jnp.max(jnp.abs(y - y_ref)) / (jnp.max(jnp.abs(y_ref)) + 1e-6))
    assert err < 3e-2, f"mismatch vs reference: rel err {err}"

    print("KERNEL_OK")
</pallas_src>

<mosaic_0001>
module attributes {stable_mosaic.version = 11 : i64} {
  func.func @_decoder_kernel(%arg0: i32, %arg1: memref<1x16x64xf32, #tpu.memory_space<vmem>>, %arg2: memref<9x16x16xbf16, #tpu.memory_space<vmem>>, %arg3: memref<64x64xbf16, #tpu.memory_space<vmem>>, %arg4: memref<1x64xf32, #tpu.memory_space<vmem>>, %arg5: memref<9x64x256xbf16, #tpu.memory_space<vmem>>, %arg6: memref<1x256xf32, #tpu.memory_space<vmem>>, %arg7: memref<9x128x128xbf16, #tpu.memory_space<vmem>>, %arg8: memref<1x128xf32, #tpu.memory_space<vmem>>, %arg9: memref<128x512xbf16, #tpu.memory_space<vmem>>, %arg10: memref<1x512xf32, #tpu.memory_space<vmem>>, %arg11: memref<9x128x64xbf16, #tpu.memory_space<vmem>>, %arg12: memref<1x64xf32, #tpu.memory_space<vmem>>, %arg13: memref<64x512xbf16, #tpu.memory_space<vmem>>, %arg14: memref<1x512xf32, #tpu.memory_space<vmem>>, %arg15: memref<512x128xbf16, #tpu.memory_space<vmem>>, %arg16: memref<1x16x128xf32, #tpu.memory_space<vmem>>) attributes {dimension_semantics = [#tpu.dimension_semantics<parallel>], iteration_bounds = array<i64: 2>, scalar_prefetch = 0 : i64, scratch_operands = 0 : i64, tpu.core_type = #tpu.core_type<tc>, window_params = [{transform_indices = @transform_0, window_bounds = array<i64: 1, 16, 64>}, {pipeline_mode = #tpu.pipeline_mode<synchronous>, transform_indices = @transform_1, window_bounds = array<i64: 9, 16, 16>}, {pipeline_mode = #tpu.pipeline_mode<synchronous>, transform_indices = @transform_2, window_bounds = array<i64: 64, 64>}, {pipeline_mode = #tpu.pipeline_mode<synchronous>, transform_indices = @transform_3, window_bounds = array<i64: 1, 64>}, {pipeline_mode = #tpu.pipeline_mode<synchronous>, transform_indices = @transform_4, window_bounds = array<i64: 9, 64, 256>}, {pipeline_mode = #tpu.pipeline_mode<synchronous>, transform_indices = @transform_5, window_bounds = array<i64: 1, 256>}, {pipeline_mode = #tpu.pipeline_mode<synchronous>, transform_indices = @transform_6, window_bounds = array<i64: 9, 128, 128>}, {pipeline_mode = #tpu.pipeline_mode<synchronous>, transform_indices = @transform_7, window_bounds = array<i64: 1, 128>}, {pipeline_mode = #tpu.pipeline_mode<synchronous>, transform_indices = @transform_8, window_bounds = array<i64: 128, 512>}, {pipeline_mode = #tpu.pipeline_mode<synchronous>, transform_indices = @transform_9, window_bounds = array<i64: 1, 512>}, {pipeline_mode = #tpu.pipeline_mode<synchronous>, transform_indices = @transform_10, window_bounds = array<i64: 9, 128, 64>}, {pipeline_mode = #tpu.pipeline_mode<synchronous>, transform_indices = @transform_11, window_bounds = array<i64: 1, 64>}, {pipeline_mode = #tpu.pipeline_mode<synchronous>, transform_indices = @transform_12, window_bounds = array<i64: 64, 512>}, {pipeline_mode = #tpu.pipeline_mode<synchronous>, transform_indices = @transform_13, window_bounds = array<i64: 1, 512>}, {pipeline_mode = #tpu.pipeline_mode<synchronous>, transform_indices = @transform_14, window_bounds = array<i64: 512, 128>}, {transform_indices = @transform_15, window_bounds = array<i64: 1, 16, 128>}]} {
    %c0 = arith.constant 0 : index
    %c0_0 = arith.constant 0 : index
    %c0_1 = arith.constant 0 : index
    %0 = vector.load %arg1[%c0, %c0_0, %c0_1] : memref<1x16x64xf32, #tpu.memory_space<vmem>>, vector<1x16x64xf32>
    %1 = vector.shape_cast %0 : vector<1x16x64xf32> to vector<16x64xf32>
    %c0_2 = arith.constant 0 : index
    %c0_3 = arith.constant 0 : index
    %2 = vector.load %arg3[%c0_2, %c0_3] : memref<64x64xbf16, #tpu.memory_space<vmem>>, vector<64x64xbf16>
    %3 = arith.truncf %1 : vector<16x64xf32> to vector<16x64xbf16>
    %cst = arith.constant dense<0.000000e+00> : vector<16x64xf32>
    %4 = tpu.matmul %3, %2, %cst {dimension_numbers = #tpu.dot_dimension_numbers<[1], [0], [0], [1], [0, 0, 1, 1], [], []>} : vector<16x64xbf16>, vector<64x64xbf16>, vector<16x64xf32> -> vector<16x64xf32>
    %c0_4 = arith.constant 0 : index
    %c0_5 = arith.constant 0 : index
    %5 = vector.load %arg4[%c0_4, %c0_5] : memref<1x64xf32, #tpu.memory_space<vmem>>, vector<1x64xf32>
    %6 = vector.broadcast %5 : vector<1x64xf32> to vector<16x64xf32>
    %7 = arith.addf %4, %6 : vector<16x64xf32>
    %cst_6 = arith.constant 0.000000e+00 : f32
    %8 = vector.broadcast %cst_6 : f32 to vector<16x64xf32>
    %9 = arith.maximumf %7, %8 : vector<16x64xf32>
    %10 = arith.truncf %9 : vector<16x64xf32> to vector<16x64xbf16>
    %cst_7 = arith.constant 0.000000e+00 : f32
    %11 = vector.broadcast %cst_7 : f32 to vector<16x256xf32>
    %c0_8 = arith.constant 0 : index
    %c0_9 = arith.constant 0 : index
    %c0_10 = arith.constant 0 : index
    %12 = vector.load %arg2[%c0_8, %c0_9, %c0_10] : memref<9x16x16xbf16, #tpu.memory_space<vmem>>, vector<1x16x16xbf16>
    %13 = vector.shape_cast %12 : vector<1x16x16xbf16> to vector<16x16xbf16>
    %cst_11 = arith.constant dense<0.000000e+00> : vector<16x64xf32>
    %14 = tpu.matmul %13, %10, %cst_11 {dimension_numbers = #tpu.dot_dimension_numbers<[1], [0], [0], [1], [0, 0, 1, 1], [], []>} : vector<16x16xbf16>, vector<16x64xbf16>, vector<16x64xf32> -> vector<16x64xf32>
    %15 = arith.truncf %14 : vector<16x64xf32> to vector<16x64xbf16>
    %c0_12 = arith.constant 0 : index
    %c0_13 = arith.constant 0 : index
    %c0_14 = arith.constant 0 : index
    %16 = vector.load %arg5[%c0_12, %c0_13, %c0_14] : memref<9x64x256xbf16, #tpu.memory_space<vmem>>, vector<1x64x256xbf16>
    %17 = vector.shape_cast %16 : vector<1x64x256xbf16> to vector<64x256xbf16>
    %cst_15 = arith.constant dense<0.000000e+00> : vector<16x256xf32>
    %18 = tpu.matmul %15, %17, %cst_15 {dimension_numbers = #tpu.dot_dimension_numbers<[1], [0], [0], [1], [0, 0, 1, 1], [], []>} : vector<16x64xbf16>, vector<64x256xbf16>, vector<16x256xf32> -> vector<16x256xf32>
    %19 = arith.addf %11, %18 : vector<16x256xf32>
    %c1 = arith.constant 1 : index
    %c0_16 = arith.constant 0 : index
    %c0_17 = arith.constant 0 : index
    %20 = vector.load %arg2[%c1, %c0_16, %c0_17] : memref<9x16x16xbf16, #tpu.memory_space<vmem>>, vector<1x16x16xbf16>
    %21 = vector.shape_cast %20 : vector<1x16x16xbf16> to vector<16x16xbf16>
    %cst_18 = arith.constant dense<0.000000e+00> : vector<16x64xf32>
    %22 = tpu.matmul %21, %10, %cst_18 {dimension_numbers = #tpu.dot_dimension_numbers<[1], [0], [0], [1], [0, 0, 1, 1], [], []>} : vector<16x16xbf16>, vector<16x64xbf16>, vector<16x64xf32> -> vector<16x64xf32>
    %23 = arith.truncf %22 : vector<16x64xf32> to vector<16x64xbf16>
    %c1_19 = arith.constant 1 : index
    %c0_20 = arith.constant 0 : index
    %c0_21 = arith.constant 0 : index
    %24 = vector.load %arg5[%c1_19, %c0_20, %c0_21] : memref<9x64x256xbf16, #tpu.memory_space<vmem>>, vector<1x64x256xbf16>
    %25 = vector.shape_cast %24 : vector<1x64x256xbf16> to vector<64x256xbf16>
    %cst_22 = arith.constant dense<0.000000e+00> : vector<16x256xf32>
    %26 = tpu.matmul %23, %25, %cst_22 {dimension_numbers = #tpu.dot_dimension_numbers<[1], [0], [0], [1], [0, 0, 1, 1], [], []>} : vector<16x64xbf16>, vector<64x256xbf16>, vector<16x256xf32> -> vector<16x256xf32>
    %27 = arith.addf %19, %26 : vector<16x256xf32>
    %c2 = arith.constant 2 : index
    %c0_23 = arith.constant 0 : index
    %c0_24 = arith.constant 0 : index
    %28 = vector.load %arg2[%c2, %c0_23, %c0_24] : memref<9x16x16xbf16, #tpu.memory_space<vmem>>, vector<1x16x16xbf16>
    %29 = vector.shape_cast %28 : vector<1x16x16xbf16> to vector<16x16xbf16>
    %cst_25 = arith.constant dense<0.000000e+00> : vector<16x64xf32>
    %30 = tpu.matmul %29, %10, %cst_25 {dimension_numbers = #tpu.dot_dimension_numbers<[1], [0], [0], [1], [0, 0, 1, 1], [], []>} : vector<16x16xbf16>, vector<16x64xbf16>, vector<16x64xf32> -> vector<16x64xf32>
    %31 = arith.truncf %30 : vector<16x64xf32> to vector<16x64xbf16>
    %c2_26 = arith.constant 2 : index
    %c0_27 = arith.constant 0 : index
    %c0_28 = arith.constant 0 : index
    %32 = vector.load %arg5[%c2_26, %c0_27, %c0_28] : memref<9x64x256xbf16, #tpu.memory_space<vmem>>, vector<1x64x256xbf16>
    %33 = vector.shape_cast %32 : vector<1x64x256xbf16> to vector<64x256xbf16>
    %cst_29 = arith.constant dense<0.000000e+00> : vector<16x256xf32>
    %34 = tpu.matmul %31, %33, %cst_29 {dimension_numbers = #tpu.dot_dimension_numbers<[1], [0], [0], [1], [0, 0, 1, 1], [], []>} : vector<16x64xbf16>, vector<64x256xbf16>, vector<16x256xf32> -> vector<16x256xf32>
    %35 = arith.addf %27, %34 : vector<16x256xf32>
    %c3 = arith.constant 3 : index
    %c0_30 = arith.constant 0 : index
    %c0_31 = arith.constant 0 : index
    %36 = vector.load %arg2[%c3, %c0_30, %c0_31] : memref<9x16x16xbf16, #tpu.memory_space<vmem>>, vector<1x16x16xbf16>
    %37 = vector.shape_cast %36 : vector<1x16x16xbf16> to vector<16x16xbf16>
    %cst_32 = arith.constant dense<0.000000e+00> : vector<16x64xf32>
    %38 = tpu.matmul %37, %10, %cst_32 {dimension_numbers = #tpu.dot_dimension_numbers<[1], [0], [0], [1], [0, 0, 1, 1], [], []>} : vector<16x16xbf16>, vector<16x64xbf16>, vector<16x64xf32> -> vector<16x64xf32>
    %39 = arith.truncf %38 : vector<16x64xf32> to vector<16x64xbf16>
    %c3_33 = arith.constant 3 : index
    %c0_34 = arith.constant 0 : index
    %c0_35 = arith.constant 0 : index
    %40 = vector.load %arg5[%c3_33, %c0_34, %c0_35] : memref<9x64x256xbf16, #tpu.memory_space<vmem>>, vector<1x64x256xbf16>
    %41 = vector.shape_cast %40 : vector<1x64x256xbf16> to vector<64x256xbf16>
    %cst_36 = arith.constant dense<0.000000e+00> : vector<16x256xf32>
    %42 = tpu.matmul %39, %41, %cst_36 {dimension_numbers = #tpu.dot_dimension_numbers<[1], [0], [0], [1], [0, 0, 1, 1], [], []>} : vector<16x64xbf16>, vector<64x256xbf16>, vector<16x256xf32> -> vector<16x256xf32>
    %43 = arith.addf %35, %42 : vector<16x256xf32>
    %c4 = arith.constant 4 : index
    %c0_37 = arith.constant 0 : index
    %c0_38 = arith.constant 0 : index
    %44 = vector.load %arg5[%c4, %c0_37, %c0_38] : memref<9x64x256xbf16, #tpu.memory_space<vmem>>, vector<1x64x256xbf16>
    %45 = vector.shape_cast %44 : vector<1x64x256xbf16> to vector<64x256xbf16>
    %cst_39 = arith.constant dense<0.000000e+00> : vector<16x256xf32>
    %46 = tpu.matmul %10, %45, %cst_39 {dimension_numbers = #tpu.dot_dimension_numbers<[1], [0], [0], [1], [0, 0, 1, 1], [], []>} : vector<16x64xbf16>, vector<64x256xbf16>, vector<16x256xf32> -> vector<16x256xf32>
    %47 = arith.addf %43, %46 : vector<16x256xf32>
    %c5 = arith.constant 5 : index
    %c0_40 = arith.constant 0 : index
    %c0_41 = arith.constant 0 : index
    %48 = vector.load %arg2[%c5, %c0_40, %c0_41] : memref<9x16x16xbf16, #tpu.memory_space<vmem>>, vector<1x16x16xbf16>
    %49 = vector.shape_cast %48 : vector<1x16x16xbf16> to vector<16x16xbf16>
    %cst_42 = arith.constant dense<0.000000e+00> : vector<16x64xf32>
    %50 = tpu.matmul %49, %10, %cst_42 {dimension_numbers = #tpu.dot_dimension_numbers<[1], [0], [0], [1], [0, 0, 1, 1], [], []>} : vector<16x16xbf16>, vector<16x64xbf16>, vector<16x64xf32> -> vector<16x64xf32>
    %51 = arith.truncf %50 : vector<16x64xf32> to vector<16x64xbf16>
    %c5_43 = arith.constant 5 : index
    %c0_44 = arith.constant 0 : index
    %c0_45 = arith.constant 0 : index
    %52 = vector.load %arg5[%c5_43, %c0_44, %c0_45] : memref<9x64x256xbf16, #tpu.memory_space<vmem>>, vector<1x64x256xbf16>
    %53 = vector.shape_cast %52 : vector<1x64x256xbf16> to vector<64x256xbf16>
    %cst_46 = arith.constant dense<0.000000e+00> : vector<16x256xf32>
    %54 = tpu.matmul %51, %53, %cst_46 {dimension_numbers = #tpu.dot_dimension_numbers<[1], [0], [0], [1], [0, 0, 1, 1], [], []>} : vector<16x64xbf16>, vector<64x256xbf16>, vector<16x256xf32> -> vector<16x256xf32>
    %55 = arith.addf %47, %54 : vector<16x256xf32>
    %c6 = arith.constant 6 : index
    %c0_47 = arith.constant 0 : index
    %c0_48 = arith.constant 0 : index
    %56 = vector.load %arg2[%c6, %c0_47, %c0_48] : memref<9x16x16xbf16, #tpu.memory_space<vmem>>, vector<1x16x16xbf16>
    %57 = vector.shape_cast %56 : vector<1x16x16xbf16> to vector<16x16xbf16>
    %cst_49 = arith.constant dense<0.000000e+00> : vector<16x64xf32>
    %58 = tpu.matmul %57, %10, %cst_49 {dimension_numbers = #tpu.dot_dimension_numbers<[1], [0], [0], [1], [0, 0, 1, 1], [], []>} : vector<16x16xbf16>, vector<16x64xbf16>, vector<16x64xf32> -> vector<16x64xf32>
    %59 = arith.truncf %58 : vector<16x64xf32> to vector<16x64xbf16>
    %c6_50 = arith.constant 6 : index
    %c0_51 = arith.constant 0 : index
    %c0_52 = arith.constant 0 : index
    %60 = vector.load %arg5[%c6_50, %c0_51, %c0_52] : memref<9x64x256xbf16, #tpu.memory_space<vmem>>, vector<1x64x256xbf16>
    %61 = vector.shape_cast %60 : vector<1x64x256xbf16> to vector<64x256xbf16>
    %cst_53 = arith.constant dense<0.000000e+00> : vector<16x256xf32>
    %62 = tpu.matmul %59, %61, %cst_53 {dimension_numbers = #tpu.dot_dimension_numbers<[1], [0], [0], [1], [0, 0, 1, 1], [], []>} : vector<16x64xbf16>, vector<64x256xbf16>, vector<16x256xf32> -> vector<16x256xf32>
    %63 = arith.addf %55, %62 : vector<16x256xf32>
    %c7 = arith.constant 7 : index
    %c0_54 = arith.constant 0 : index
    %c0_55 = arith.constant 0 : index
    %64 = vector.load %arg2[%c7, %c0_54, %c0_55] : memref<9x16x16xbf16, #tpu.memory_space<vmem>>, vector<1x16x16xbf16>
    %65 = vector.shape_cast %64 : vector<1x16x16xbf16> to vector<16x16xbf16>
    %cst_56 = arith.constant dense<0.000000e+00> : vector<16x64xf32>
    %66 = tpu.matmul %65, %10, %cst_56 {dimension_numbers = #tpu.dot_dimension_numbers<[1], [0], [0], [1], [0, 0, 1, 1], [], []>} : vector<16x16xbf16>, vector<16x64xbf16>, vector<16x64xf32> -> vector<16x64xf32>
    %67 = arith.truncf %66 : vector<16x64xf32> to vector<16x64xbf16>
    %c7_57 = arith.constant 7 : index
    %c0_58 = arith.constant 0 : index
    %c0_59 = arith.constant 0 : index
    %68 = vector.load %arg5[%c7_57, %c0_58, %c0_59] : memref<9x64x256xbf16, #tpu.memory_space<vmem>>, vector<1x64x256xbf16>
    %69 = vector.shape_cast %68 : vector<1x64x256xbf16> to vector<64x256xbf16>
    %cst_60 = arith.constant dense<0.000000e+00> : vector<16x256xf32>
    %70 = tpu.matmul %67, %69, %cst_60 {dimension_numbers = #tpu.dot_dimension_numbers<[1], [0], [0], [1], [0, 0, 1, 1], [], []>} : vector<16x64xbf16>, vector<64x256xbf16>, vector<16x256xf32> -> vector<16x256xf32>
    %71 = arith.addf %63, %70 : vector<16x256xf32>
    %c8 = arith.constant 8 : index
    %c0_61 = arith.constant 0 : index
    %c0_62 = arith.constant 0 : index
    %72 = vector.load %arg2[%c8, %c0_61, %c0_62] : memref<9x16x16xbf16, #tpu.memory_space<vmem>>, vector<1x16x16xbf16>
    %73 = vector.shape_cast %72 : vector<1x16x16xbf16> to vector<16x16xbf16>
    %cst_63 = arith.constant dense<0.000000e+00> : vector<16x64xf32>
    %74 = tpu.matmul %73, %10, %cst_63 {dimension_numbers = #tpu.dot_dimension_numbers<[1], [0], [0], [1], [0, 0, 1, 1], [], []>} : vector<16x16xbf16>, vector<16x64xbf16>, vector<16x64xf32> -> vector<16x64xf32>
    %75 = arith.truncf %74 : vector<16x64xf32> to vector<16x64xbf16>
    %c8_64 = arith.constant 8 : index
    %c0_65 = arith.constant 0 : index
    %c0_66 = arith.constant 0 : index
    %76 = vector.load %arg5[%c8_64, %c0_65, %c0_66] : memref<9x64x256xbf16, #tpu.memory_space<vmem>>, vector<1x64x256xbf16>
    %77 = vector.shape_cast %76 : vector<1x64x256xbf16> to vector<64x256xbf16>
    %cst_67 = arith.constant dense<0.000000e+00> : vector<16x256xf32>
    %78 = tpu.matmul %75, %77, %cst_67 {dimension_numbers = #tpu.dot_dimension_numbers<[1], [0], [0], [1], [0, 0, 1, 1], [], []>} : vector<16x64xbf16>, vector<64x256xbf16>, vector<16x256xf32> -> vector<16x256xf32>
    %79 = arith.addf %71, %78 : vector<16x256xf32>
    %c0_68 = arith.constant 0 : index
    %c0_69 = arith.constant 0 : index
    %80 = vector.load %arg6[%c0_68, %c0_69] : memref<1x256xf32, #tpu.memory_space<vmem>>, vector<1x256xf32>
    %81 = vector.broadcast %80 : vector<1x256xf32> to vector<16x256xf32>
    %82 = arith.addf %79, %81 : vector<16x256xf32>
    %83 = vector.extract_strided_slice %82 {offsets = [0, 0], sizes = [16, 128], strides = [1, 1]} : vector<16x256xf32> to vector<16x128xf32>
    %84 = vector.extract_strided_slice %82 {offsets = [0, 128], sizes = [16, 128], strides = [1, 1]} : vector<16x256xf32> to vector<16x128xf32>
    %cst_70 = arith.constant 0.000000e+00 : f32
    %85 = vector.broadcast %cst_70 : f32 to vector<16x128xf32>
    %86 = arith.maximumf %84, %85 : vector<16x128xf32>
    %87 = arith.truncf %86 : vector<16x128xf32> to vector<16x128xbf16>
    %cst_71 = arith.constant 0.000000e+00 : f32
    %88 = vector.broadcast %cst_71 : f32 to vector<16x128xf32>
    %c0_72 = arith.constant 0 : index
    %c0_73 = arith.constant 0 : index
    %c0_74 = arith.constant 0 : index
    %89 = vector.load %arg2[%c0_72, %c0_73, %c0_74] : memref<9x16x16xbf16, #tpu.memory_space<vmem>>, vector<1x16x16xbf16>
    %90 = vector.shape_cast %89 : vector<1x16x16xbf16> to vector<16x16xbf16>
    %cst_75 = arith.constant dense<0.000000e+00> : vector<16x128xf32>
    %91 = tpu.matmul %90, %87, %cst_75 {dimension_numbers = #tpu.dot_dimension_numbers<[1], [0], [0], [1], [0, 0, 1, 1], [], []>} : vector<16x16xbf16>, vector<16x128xbf16>, vector<16x128xf32> -> vector<16x128xf32>
    %92 = arith.truncf %91 : vector<16x128xf32> to vector<16x128xbf16>
    %c0_76 = arith.constant 0 : index
    %c0_77 = arith.constant 0 : index
    %c0_78 = arith.constant 0 : index
    %93 = vector.load %arg7[%c0_76, %c0_77, %c0_78] : memref<9x128x128xbf16, #tpu.memory_space<vmem>>, vector<1x128x128xbf16>
    %94 = vector.shape_cast %93 : vector<1x128x128xbf16> to vector<128x128xbf16>
    %cst_79 = arith.constant dense<0.000000e+00> : vector<16x128xf32>
    %95 = tpu.matmul %92, %94, %cst_79 {dimension_numbers = #tpu.dot_dimension_numbers<[1], [0], [0], [1], [0, 0, 1, 1], [], []>} : vector<16x128xbf16>, vector<128x128xbf16>, vector<16x128xf32> -> vector<16x128xf32>
    %96 = arith.addf %88, %95 : vector<16x128xf32>
    %c1_80 = arith.constant 1 : index
    %c0_81 = arith.constant 0 : index
    %c0_82 = arith.constant 0 : index
    %97 = vector.load %arg2[%c1_80, %c0_81, %c0_82] : memref<9x16x16xbf16, #tpu.memory_space<vmem>>, vector<1x16x16xbf16>
    %98 = vector.shape_cast %97 : vector<1x16x16xbf16> to vector<16x16xbf16>
    %cst_83 = arith.constant dense<0.000000e+00> : vector<16x128xf32>
    %99 = tpu.matmul %98, %87, %cst_83 {dimension_numbers = #tpu.dot_dimension_numbers<[1], [0], [0], [1], [0, 0, 1, 1], [], []>} : vector<16x16xbf16>, vector<16x128xbf16>, vector<16x128xf32> -> vector<16x128xf32>
    %100 = arith.truncf %99 : vector<16x128xf32> to vector<16x128xbf16>
    %c1_84 = arith.constant 1 : index
    %c0_85 = arith.constant 0 : index
    %c0_86 = arith.constant 0 : index
    %101 = vector.load %arg7[%c1_84, %c0_85, %c0_86] : memref<9x128x128xbf16, #tpu.memory_space<vmem>>, vector<1x128x128xbf16>
    %102 = vector.shape_cast %101 : vector<1x128x128xbf16> to vector<128x128xbf16>
    %cst_87 = arith.constant dense<0.000000e+00> : vector<16x128xf32>
    %103 = tpu.matmul %100, %102, %cst_87 {dimension_numbers = #tpu.dot_dimension_numbers<[1], [0], [0], [1], [0, 0, 1, 1], [], []>} : vector<16x128xbf16>, vector<128x128xbf16>, vector<16x128xf32> -> vector<16x128xf32>
    %104 = arith.addf %96, %103 : vector<16x128xf32>
    %c2_88 = arith.constant 2 : index
    %c0_89 = arith.constant 0 : index
    %c0_90 = arith.constant 0 : index
    %105 = vector.load %arg2[%c2_88, %c0_89, %c0_90] : memref<9x16x16xbf16, #tpu.memory_space<vmem>>, vector<1x16x16xbf16>
    %106 = vector.shape_cast %105 : vector<1x16x16xbf16> to vector<16x16xbf16>
    %cst_91 = arith.constant dense<0.000000e+00> : vector<16x128xf32>
    %107 = tpu.matmul %106, %87, %cst_91 {dimension_numbers = #tpu.dot_dimension_numbers<[1], [0], [0], [1], [0, 0, 1, 1], [], []>} : vector<16x16xbf16>, vector<16x128xbf16>, vector<16x128xf32> -> vector<16x128xf32>
    %108 = arith.truncf %107 : vector<16x128xf32> to vector<16x128xbf16>
    %c2_92 = arith.constant 2 : index
    %c0_93 = arith.constant 0 : index
    %c0_94 = arith.constant 0 : index
    %109 = vector.load %arg7[%c2_92, %c0_93, %c0_94] : memref<9x128x128xbf16, #tpu.memory_space<vmem>>, vector<1x128x128xbf16>
    %110 = vector.shape_cast %109 : vector<1x128x128xbf16> to vector<128x128xbf16>
    %cst_95 = arith.constant dense<0.000000e+00> : vector<16x128xf32>
    %111 = tpu.matmul %108, %110, %cst_95 {dimension_numbers = #tpu.dot_dimension_numbers<[1], [0], [0], [1], [0, 0, 1, 1], [], []>} : vector<16x128xbf16>, vector<128x128xbf16>, vector<16x128xf32> -> vector<16x128xf32>
    %112 = arith.addf %104, %111 : vector<16x128xf32>
    %c3_96 = arith.constant 3 : index
    %c0_97 = arith.constant 0 : index
    %c0_98 = arith.constant 0 : index
    %113 = vector.load %arg2[%c3_96, %c0_97, %c0_98] : memref<9x16x16xbf16, #tpu.memory_space<vmem>>, vector<1x16x16xbf16>
    %114 = vector.shape_cast %113 : vector<1x16x16xbf16> to vector<16x16xbf16>
    %cst_99 = arith.constant dense<0.000000e+00> : vector<16x128xf32>
    %115 = tpu.matmul %114, %87, %cst_99 {dimension_numbers = #tpu.dot_dimension_numbers<[1], [0], [0], [1], [0, 0, 1, 1], [], []>} : vector<16x16xbf16>, vector<16x128xbf16>, vector<16x128xf32> -> vector<16x128xf32>
    %116 = arith.truncf %115 : vector<16x128xf32> to vector<16x128xbf16>
    %c3_100 = arith.constant 3 : index
    %c0_101 = arith.constant 0 : index
    %c0_102 = arith.constant 0 : index
    %117 = vector.load %arg7[%c3_100, %c0_101, %c0_102] : memref<9x128x128xbf16, #tpu.memory_space<vmem>>, vector<1x128x128xbf16>
    %118 = vector.shape_cast %117 : vector<1x128x128xbf16> to vector<128x128xbf16>
    %cst_103 = arith.constant dense<0.000000e+00> : vector<16x128xf32>
    %119 = tpu.matmul %116, %118, %cst_103 {dimension_numbers = #tpu.dot_dimension_numbers<[1], [0], [0], [1], [0, 0, 1, 1], [], []>} : vector<16x128xbf16>, vector<128x128xbf16>, vector<16x128xf32> -> vector<16x128xf32>
    %120 = arith.addf %112, %119 : vector<16x128xf32>
    %c4_104 = arith.constant 4 : index
    %c0_105 = arith.constant 0 : index
    %c0_106 = arith.constant 0 : index
    %121 = vector.load %arg7[%c4_104, %c0_105, %c0_106] : memref<9x128x128xbf16, #tpu.memory_space<vmem>>, vector<1x128x128xbf16>
    %122 = vector.shape_cast %121 : vector<1x128x128xbf16> to vector<128x128xbf16>
    %cst_107 = arith.constant dense<0.000000e+00> : vector<16x128xf32>
    %123 = tpu.matmul %87, %122, %cst_107 {dimension_numbers = #tpu.dot_dimension_numbers<[1], [0], [0], [1], [0, 0, 1, 1], [], []>} : vector<16x128xbf16>, vector<128x128xbf16>, vector<16x128xf32> -> vector<16x128xf32>
    %124 = arith.addf %120, %123 : vector<16x128xf32>
    %c5_108 = arith.constant 5 : index
    %c0_109 = arith.constant 0 : index
    %c0_110 = arith.constant 0 : index
    %125 = vector.load %arg2[%c5_108, %c0_109, %c0_110] : memref<9x16x16xbf16, #tpu.memory_space<vmem>>, vector<1x16x16xbf16>
    %126 = vector.shape_cast %125 : vector<1x16x16xbf16> to vector<16x16xbf16>
    %cst_111 = arith.constant dense<0.000000e+00> : vector<16x128xf32>
    %127 = tpu.matmul %126, %87, %cst_111 {dimension_numbers = #tpu.dot_dimension_numbers<[1], [0], [0], [1], [0, 0, 1, 1], [], []>} : vector<16x16xbf16>, vector<16x128xbf16>, vector<16x128xf32> -> vector<16x128xf32>
    %128 = arith.truncf %127 : vector<16x128xf32> to vector<16x128xbf16>
    %c5_112 = arith.constant 5 : index
    %c0_113 = arith.constant 0 : index
    %c0_114 = arith.constant 0 : index
    %129 = vector.load %arg7[%c5_112, %c0_113, %c0_114] : memref<9x128x128xbf16, #tpu.memory_space<vmem>>, vector<1x128x128xbf16>
    %130 = vector.shape_cast %129 : vector<1x128x128xbf16> to vector<128x128xbf16>
    %cst_115 = arith.constant dense<0.000000e+00> : vector<16x128xf32>
    %131 = tpu.matmul %128, %130, %cst_115 {dimension_numbers = #tpu.dot_dimension_numbers<[1], [0], [0], [1], [0, 0, 1, 1], [], []>} : vector<16x128xbf16>, vector<128x128xbf16>, vector<16x128xf32> -> vector<16x128xf32>
    %132 = arith.addf %124, %131 : vector<16x128xf32>
    %c6_116 = arith.constant 6 : index
    %c0_117 = arith.constant 0 : index
    %c0_118 = arith.constant 0 : index
    %133 = vector.load %arg2[%c6_116, %c0_117, %c0_118] : memref<9x16x16xbf16, #tpu.memory_space<vmem>>, vector<1x16x16xbf16>
    %134 = vector.shape_cast %133 : vector<1x16x16xbf16> to vector<16x16xbf16>
    %cst_119 = arith.constant dense<0.000000e+00> : vector<16x128xf32>
    %135 = tpu.matmul %134, %87, %cst_119 {dimension_numbers = #tpu.dot_dimension_numbers<[1], [0], [0], [1], [0, 0, 1, 1], [], []>} : vector<16x16xbf16>, vector<16x128xbf16>, vector<16x128xf32> -> vector<16x128xf32>
    %136 = arith.truncf %135 : vector<16x128xf32> to vector<16x128xbf16>
    %c6_120 = arith.constant 6 : index
    %c0_121 = arith.constant 0 : index
    %c0_122 = arith.constant 0 : index
    %137 = vector.load %arg7[%c6_120, %c0_121, %c0_122] : memref<9x128x128xbf16, #tpu.memory_space<vmem>>, vector<1x128x128xbf16>
    %138 = vector.shape_cast %137 : vector<1x128x128xbf16> to vector<128x128xbf16>
    %cst_123 = arith.constant dense<0.000000e+00> : vector<16x128xf32>
    %139 = tpu.matmul %136, %138, %cst_123 {dimension_numbers = #tpu.dot_dimension_numbers<[1], [0], [0], [1], [0, 0, 1, 1], [], []>} : vector<16x128xbf16>, vector<128x128xbf16>, vector<16x128xf32> -> vector<16x128xf32>
    %140 = arith.addf %132, %139 : vector<16x128xf32>
    %c7_124 = arith.constant 7 : index
    %c0_125 = arith.constant 0 : index
    %c0_126 = arith.constant 0 : index
    %141 = vector.load %arg2[%c7_124, %c0_125, %c0_126] : memref<9x16x16xbf16, #tpu.memory_space<vmem>>, vector<1x16x16xbf16>
    %142 = vector.shape_cast %141 : vector<1x16x16xbf16> to vector<16x16xbf16>
    %cst_127 = arith.constant dense<0.000000e+00> : vector<16x128xf32>
    %143 = tpu.matmul %142, %87, %cst_127 {dimension_numbers = #tpu.dot_dimension_numbers<[1], [0], [0], [1], [0, 0, 1, 1], [], []>} : vector<16x16xbf16>, vector<16x128xbf16>, vector<16x128xf32> -> vector<16x128xf32>
    %144 = arith.truncf %143 : vector<16x128xf32> to vector<16x128xbf16>
    %c7_128 = arith.constant 7 : index
    %c0_129 = arith.constant 0 : index
    %c0_130 = arith.constant 0 : index
    %145 = vector.load %arg7[%c7_128, %c0_129, %c0_130] : memref<9x128x128xbf16, #tpu.memory_space<vmem>>, vector<1x128x128xbf16>
    %146 = vector.shape_cast %145 : vector<1x128x128xbf16> to vector<128x128xbf16>
    %cst_131 = arith.constant dense<0.000000e+00> : vector<16x128xf32>
    %147 = tpu.matmul %144, %146, %cst_131 {dimension_numbers = #tpu.dot_dimension_numbers<[1], [0], [0], [1], [0, 0, 1, 1], [], []>} : vector<16x128xbf16>, vector<128x128xbf16>, vector<16x128xf32> -> vector<16x128xf32>
    %148 = arith.addf %140, %147 : vector<16x128xf32>
    %c8_132 = arith.constant 8 : index
    %c0_133 = arith.constant 0 : index
    %c0_134 = arith.constant 0 : index
    %149 = vector.load %arg2[%c8_132, %c0_133, %c0_134] : memref<9x16x16xbf16, #tpu.memory_space<vmem>>, vector<1x16x16xbf16>
    %150 = vector.shape_cast %149 : vector<1x16x16xbf16> to vector<16x16xbf16>
    %cst_135 = arith.constant dense<0.000000e+00> : vector<16x128xf32>
    %151 = tpu.matmul %150, %87, %cst_135 {dimension_numbers = #tpu.dot_dimension_numbers<[1], [0], [0], [1], [0, 0, 1, 1], [], []>} : vector<16x16xbf16>, vector<16x128xbf16>, vector<16x128xf32> -> vector<16x128xf32>
    %152 = arith.truncf %151 : vector<16x128xf32> to vector<16x128xbf16>
    %c8_136 = arith.constant 8 : index
    %c0_137 = arith.constant 0 : index
    %c0_138 = arith.constant 0 : index
    %153 = vector.load %arg7[%c8_136, %c0_137, %c0_138] : memref<9x128x128xbf16, #tpu.memory_space<vmem>>, vector<1x128x128xbf16>
    %154 = vector.shape_cast %153 : vector<1x128x128xbf16> to vector<128x128xbf16>
    %cst_139 = arith.constant dense<0.000000e+00> : vector<16x128xf32>
    %155 = tpu.matmul %152, %154, %cst_139 {dimension_numbers = #tpu.dot_dimension_numbers<[1], [0], [0], [1], [0, 0, 1, 1], [], []>} : vector<16x128xbf16>, vector<128x128xbf16>, vector<16x128xf32> -> vector<16x128xf32>
    %156 = arith.addf %148, %155 : vector<16x128xf32>
    %157 = arith.addf %83, %156 : vector<16x128xf32>
    %c0_140 = arith.constant 0 : index
    %c0_141 = arith.constant 0 : index
    %158 = vector.load %arg8[%c0_140, %c0_141] : memref<1x128xf32, #tpu.memory_space<vmem>>, vector<1x128xf32>
    %159 = vector.broadcast %158 : vector<1x128xf32> to vector<16x128xf32>
    %160 = arith.addf %157, %159 : vector<16x128xf32>
    %cst_142 = arith.constant 0.000000e+00 : f32
    %161 = vector.broadcast %cst_142 : f32 to vector<16x128xf32>
    %162 = arith.maximumf %160, %161 : vector<16x128xf32>
    %c0_143 = arith.constant 0 : index
    %c0_144 = arith.constant 0 : index
    %163 = vector.load %arg9[%c0_143, %c0_144] : memref<128x512xbf16, #tpu.memory_space<vmem>>, vector<128x512xbf16>
    %164 = arith.truncf %162 : vector<16x128xf32> to vector<16x128xbf16>
    %cst_145 = arith.constant dense<0.000000e+00> : vector<16x512xf32>
    %165 = tpu.matmul %164, %163, %cst_145 {dimension_numbers = #tpu.dot_dimension_numbers<[1], [0], [0], [1], [0, 0, 1, 1], [], []>} : vector<16x128xbf16>, vector<128x512xbf16>, vector<16x512xf32> -> vector<16x512xf32>
    %c0_146 = arith.constant 0 : index
    %c0_147 = arith.constant 0 : index
    %166 = vector.load %arg10[%c0_146, %c0_147] : memref<1x512xf32, #tpu.memory_space<vmem>>, vector<1x512xf32>
    %167 = vector.broadcast %166 : vector<1x512xf32> to vector<16x512xf32>
    %168 = arith.addf %165, %167 : vector<16x512xf32>
    %169 = arith.truncf %162 : vector<16x128xf32> to vector<16x128xbf16>
    %cst_148 = arith.constant 0.000000e+00 : f32
    %170 = vector.broadcast %cst_148 : f32 to vector<16x64xf32>
    %c0_149 = arith.constant 0 : index
    %c0_150 = arith.constant 0 : index
    %c0_151 = arith.constant 0 : index
    %171 = vector.load %arg2[%c0_149, %c0_150, %c0_151] : memref<9x16x16xbf16, #tpu.memory_space<vmem>>, vector<1x16x16xbf16>
    %172 = vector.shape_cast %171 : vector<1x16x16xbf16> to vector<16x16xbf16>
    %cst_152 = arith.constant dense<0.000000e+00> : vector<16x128xf32>
    %173 = tpu.matmul %172, %169, %cst_152 {dimension_numbers = #tpu.dot_dimension_numbers<[1], [0], [0], [1], [0, 0, 1, 1], [], []>} : vector<16x16xbf16>, vector<16x128xbf16>, vector<16x128xf32> -> vector<16x128xf32>
    %174 = arith.truncf %173 : vector<16x128xf32> to vector<16x128xbf16>
    %c0_153 = arith.constant 0 : index
    %c0_154 = arith.constant 0 : index
    %c0_155 = arith.constant 0 : index
    %175 = vector.load %arg11[%c0_153, %c0_154, %c0_155] : memref<9x128x64xbf16, #tpu.memory_space<vmem>>, vector<1x128x64xbf16>
    %176 = vector.shape_cast %175 : vector<1x128x64xbf16> to vector<128x64xbf16>
    %cst_156 = arith.constant dense<0.000000e+00> : vector<16x64xf32>
    %177 = tpu.matmul %174, %176, %cst_156 {dimension_numbers = #tpu.dot_dimension_numbers<[1], [0], [0], [1], [0, 0, 1, 1], [], []>} : vector<16x128xbf16>, vector<128x64xbf16>, vector<16x64xf32> -> vector<16x64xf32>
    %178 = arith.addf %170, %177 : vector<16x64xf32>
    %c1_157 = arith.constant 1 : index
    %c0_158 = arith.constant 0 : index
    %c0_159 = arith.constant 0 : index
    %179 = vector.load %arg2[%c1_157, %c0_158, %c0_159] : memref<9x16x16xbf16, #tpu.memory_space<vmem>>, vector<1x16x16xbf16>
    %180 = vector.shape_cast %179 : vector<1x16x16xbf16> to vector<16x16xbf16>
    %cst_160 = arith.constant dense<0.000000e+00> : vector<16x128xf32>
    %181 = tpu.matmul %180, %169, %cst_160 {dimension_numbers = #tpu.dot_dimension_numbers<[1], [0], [0], [1], [0, 0, 1, 1], [], []>} : vector<16x16xbf16>, vector<16x128xbf16>, vector<16x128xf32> -> vector<16x128xf32>
    %182 = arith.truncf %181 : vector<16x128xf32> to vector<16x128xbf16>
    %c1_161 = arith.constant 1 : index
    %c0_162 = arith.constant 0 : index
    %c0_163 = arith.constant 0 : index
    %183 = vector.load %arg11[%c1_161, %c0_162, %c0_163] : memref<9x128x64xbf16, #tpu.memory_space<vmem>>, vector<1x128x64xbf16>
    %184 = vector.shape_cast %183 : vector<1x128x64xbf16> to vector<128x64xbf16>
    %cst_164 = arith.constant dense<0.000000e+00> : vector<16x64xf32>
    %185 = tpu.matmul %182, %184, %cst_164 {dimension_numbers = #tpu.dot_dimension_numbers<[1], [0], [0], [1], [0, 0, 1, 1], [], []>} : vector<16x128xbf16>, vector<128x64xbf16>, vector<16x64xf32> -> vector<16x64xf32>
    %186 = arith.addf %178, %185 : vector<16x64xf32>
    %c2_165 = arith.constant 2 : index
    %c0_166 = arith.constant 0 : index
    %c0_167 = arith.constant 0 : index
    %187 = vector.load %arg2[%c2_165, %c0_166, %c0_167] : memref<9x16x16xbf16, #tpu.memory_space<vmem>>, vector<1x16x16xbf16>
    %188 = vector.shape_cast %187 : vector<1x16x16xbf16> to vector<16x16xbf16>
    %cst_168 = arith.constant dense<0.000000e+00> : vector<16x128xf32>
    %189 = tpu.matmul %188, %169, %cst_168 {dimension_numbers = #tpu.dot_dimension_numbers<[1], [0], [0], [1], [0, 0, 1, 1], [], []>} : vector<16x16xbf16>, vector<16x128xbf16>, vector<16x128xf32> -> vector<16x128xf32>
    %190 = arith.truncf %189 : vector<16x128xf32> to vector<16x128xbf16>
    %c2_169 = arith.constant 2 : index
    %c0_170 = arith.constant 0 : index
    %c0_171 = arith.constant 0 : index
    %191 = vector.load %arg11[%c2_169, %c0_170, %c0_171] : memref<9x128x64xbf16, #tpu.memory_space<vmem>>, vector<1x128x64xbf16>
    %192 = vector.shape_cast %191 : vector<1x128x64xbf16> to vector<128x64xbf16>
    %cst_172 = arith.constant dense<0.000000e+00> : vector<16x64xf32>
    %193 = tpu.matmul %190, %192, %cst_172 {dimension_numbers = #tpu.dot_dimension_numbers<[1], [0], [0], [1], [0, 0, 1, 1], [], []>} : vector<16x128xbf16>, vector<128x64xbf16>, vector<16x64xf32> -> vector<16x64xf32>
    %194 = arith.addf %186, %193 : vector<16x64xf32>
    %c3_173 = arith.constant 3 : index
    %c0_174 = arith.constant 0 : index
    %c0_175 = arith.constant 0 : index
    %195 = vector.load %arg2[%c3_173, %c0_174, %c0_175] : memref<9x16x16xbf16, #tpu.memory_space<vmem>>, vector<1x16x16xbf16>
    %196 = vector.shape_cast %195 : vector<1x16x16xbf16> to vector<16x16xbf16>
    %cst_176 = arith.constant dense<0.000000e+00> : vector<16x128xf32>
    %197 = tpu.matmul %196, %169, %cst_176 {dimension_numbers = #tpu.dot_dimension_numbers<[1], [0], [0], [1], [0, 0, 1, 1], [], []>} : vector<16x16xbf16>, vector<16x128xbf16>, vector<16x128xf32> -> vector<16x128xf32>
    %198 = arith.truncf %197 : vector<16x128xf32> to vector<16x128xbf16>
    %c3_177 = arith.constant 3 : index
    %c0_178 = arith.constant 0 : index
    %c0_179 = arith.constant 0 : index
    %199 = vector.load %arg11[%c3_177, %c0_178, %c0_179] : memref<9x128x64xbf16, #tpu.memory_space<vmem>>, vector<1x128x64xbf16>
    %200 = vector.shape_cast %199 : vector<1x128x64xbf16> to vector<128x64xbf16>
    %cst_180 = arith.constant dense<0.000000e+00> : vector<16x64xf32>
    %201 = tpu.matmul %198, %200, %cst_180 {dimension_numbers = #tpu.dot_dimension_numbers<[1], [0], [0], [1], [0, 0, 1, 1], [], []>} : vector<16x128xbf16>, vector<128x64xbf16>, vector<16x64xf32> -> vector<16x64xf32>
    %202 = arith.addf %194, %201 : vector<16x64xf32>
    %c4_181 = arith.constant 4 : index
    %c0_182 = arith.constant 0 : index
    %c0_183 = arith.constant 0 : index
    %203 = vector.load %arg11[%c4_181, %c0_182, %c0_183] : memref<9x128x64xbf16, #tpu.memory_space<vmem>>, vector<1x128x64xbf16>
    %204 = vector.shape_cast %203 : vector<1x128x64xbf16> to vector<128x64xbf16>
    %cst_184 = arith.constant dense<0.000000e+00> : vector<16x64xf32>
    %205 = tpu.matmul %169, %204, %cst_184 {dimension_numbers = #tpu.dot_dimension_numbers<[1], [0], [0], [1], [0, 0, 1, 1], [], []>} : vector<16x128xbf16>, vector<128x64xbf16>, vector<16x64xf32> -> vector<16x64xf32>
    %206 = arith.addf %202, %205 : vector<16x64xf32>
    %c5_185 = arith.constant 5 : index
    %c0_186 = arith.constant 0 : index
    %c0_187 = arith.constant 0 : index
    %207 = vector.load %arg2[%c5_185, %c0_186, %c0_187] : memref<9x16x16xbf16, #tpu.memory_space<vmem>>, vector<1x16x16xbf16>
    %208 = vector.shape_cast %207 : vector<1x16x16xbf16> to vector<16x16xbf16>
    %cst_188 = arith.constant dense<0.000000e+00> : vector<16x128xf32>
    %209 = tpu.matmul %208, %169, %cst_188 {dimension_numbers = #tpu.dot_dimension_numbers<[1], [0], [0], [1], [0, 0, 1, 1], [], []>} : vector<16x16xbf16>, vector<16x128xbf16>, vector<16x128xf32> -> vector<16x128xf32>
    %210 = arith.truncf %209 : vector<16x128xf32> to vector<16x128xbf16>
    %c5_189 = arith.constant 5 : index
    %c0_190 = arith.constant 0 : index
    %c0_191 = arith.constant 0 : index
    %211 = vector.load %arg11[%c5_189, %c0_190, %c0_191] : memref<9x128x64xbf16, #tpu.memory_space<vmem>>, vector<1x128x64xbf16>
    %212 = vector.shape_cast %211 : vector<1x128x64xbf16> to vector<128x64xbf16>
    %cst_192 = arith.constant dense<0.000000e+00> : vector<16x64xf32>
    %213 = tpu.matmul %210, %212, %cst_192 {dimension_numbers = #tpu.dot_dimension_numbers<[1], [0], [0], [1], [0, 0, 1, 1], [], []>} : vector<16x128xbf16>, vector<128x64xbf16>, vector<16x64xf32> -> vector<16x64xf32>
    %214 = arith.addf %206, %213 : vector<16x64xf32>
    %c6_193 = arith.constant 6 : index
    %c0_194 = arith.constant 0 : index
    %c0_195 = arith.constant 0 : index
    %215 = vector.load %arg2[%c6_193, %c0_194, %c0_195] : memref<9x16x16xbf16, #tpu.memory_space<vmem>>, vector<1x16x16xbf16>
    %216 = vector.shape_cast %215 : vector<1x16x16xbf16> to vector<16x16xbf16>
    %cst_196 = arith.constant dense<0.000000e+00> : vector<16x128xf32>
    %217 = tpu.matmul %216, %169, %cst_196 {dimension_numbers = #tpu.dot_dimension_numbers<[1], [0], [0], [1], [0, 0, 1, 1], [], []>} : vector<16x16xbf16>, vector<16x128xbf16>, vector<16x128xf32> -> vector<16x128xf32>
    %218 = arith.truncf %217 : vector<16x128xf32> to vector<16x128xbf16>
    %c6_197 = arith.constant 6 : index
    %c0_198 = arith.constant 0 : index
    %c0_199 = arith.constant 0 : index
    %219 = vector.load %arg11[%c6_197, %c0_198, %c0_199] : memref<9x128x64xbf16, #tpu.memory_space<vmem>>, vector<1x128x64xbf16>
    %220 = vector.shape_cast %219 : vector<1x128x64xbf16> to vector<128x64xbf16>
    %cst_200 = arith.constant dense<0.000000e+00> : vector<16x64xf32>
    %221 = tpu.matmul %218, %220, %cst_200 {dimension_numbers = #tpu.dot_dimension_numbers<[1], [0], [0], [1], [0, 0, 1, 1], [], []>} : vector<16x128xbf16>, vector<128x64xbf16>, vector<16x64xf32> -> vector<16x64xf32>
    %222 = arith.addf %214, %221 : vector<16x64xf32>
    %c7_201 = arith.constant 7 : index
    %c0_202 = arith.constant 0 : index
    %c0_203 = arith.constant 0 : index
    %223 = vector.load %arg2[%c7_201, %c0_202, %c0_203] : memref<9x16x16xbf16, #tpu.memory_space<vmem>>, vector<1x16x16xbf16>
    %224 = vector.shape_cast %223 : vector<1x16x16xbf16> to vector<16x16xbf16>
    %cst_204 = arith.constant dense<0.000000e+00> : vector<16x128xf32>
    %225 = tpu.matmul %224, %169, %cst_204 {dimension_numbers = #tpu.dot_dimension_numbers<[1], [0], [0], [1], [0, 0, 1, 1], [], []>} : vector<16x16xbf16>, vector<16x128xbf16>, vector<16x128xf32> -> vector<16x128xf32>
    %226 = arith.truncf %225 : vector<16x128xf32> to vector<16x128xbf16>
    %c7_205 = arith.constant 7 : index
    %c0_206 = arith.constant 0 : index
    %c0_207 = arith.constant 0 : index
    %227 = vector.load %arg11[%c7_205, %c0_206, %c0_207] : memref<9x128x64xbf16, #tpu.memory_space<vmem>>, vector<1x128x64xbf16>
    %228 = vector.shape_cast %227 : vector<1x128x64xbf16> to vector<128x64xbf16>
    %cst_208 = arith.constant dense<0.000000e+00> : vector<16x64xf32>
    %229 = tpu.matmul %226, %228, %cst_208 {dimension_numbers = #tpu.dot_dimension_numbers<[1], [0], [0], [1], [0, 0, 1, 1], [], []>} : vector<16x128xbf16>, vector<128x64xbf16>, vector<16x64xf32> -> vector<16x64xf32>
    %230 = arith.addf %222, %229 : vector<16x64xf32>
    %c8_209 = arith.constant 8 : index
    %c0_210 = arith.constant 0 : index
    %c0_211 = arith.constant 0 : index
    %231 = vector.load %arg2[%c8_209, %c0_210, %c0_211] : memref<9x16x16xbf16, #tpu.memory_space<vmem>>, vector<1x16x16xbf16>
    %232 = vector.shape_cast %231 : vector<1x16x16xbf16> to vector<16x16xbf16>
    %cst_212 = arith.constant dense<0.000000e+00> : vector<16x128xf32>
    %233 = tpu.matmul %232, %169, %cst_212 {dimension_numbers = #tpu.dot_dimension_numbers<[1], [0], [0], [1], [0, 0, 1, 1], [], []>} : vector<16x16xbf16>, vector<16x128xbf16>, vector<16x128xf32> -> vector<16x128xf32>
    %234 = arith.truncf %233 : vector<16x128xf32> to vector<16x128xbf16>
    %c8_213 = arith.constant 8 : index
    %c0_214 = arith.constant 0 : index
    %c0_215 = arith.constant 0 : index
    %235 = vector.load %arg11[%c8_213, %c0_214, %c0_215] : memref<9x128x64xbf16, #tpu.memory_space<vmem>>, vector<1x128x64xbf16>
    %236 = vector.shape_cast %235 : vector<1x128x64xbf16> to vector<128x64xbf16>
    %cst_216 = arith.constant dense<0.000000e+00> : vector<16x64xf32>
    %237 = tpu.matmul %234, %236, %cst_216 {dimension_numbers = #tpu.dot_dimension_numbers<[1], [0], [0], [1], [0, 0, 1, 1], [], []>} : vector<16x128xbf16>, vector<128x64xbf16>, vector<16x64xf32> -> vector<16x64xf32>
    %238 = arith.addf %230, %237 : vector<16x64xf32>
    %c0_217 = arith.constant 0 : index
    %c0_218 = arith.constant 0 : index
    %239 = vector.load %arg12[%c0_217, %c0_218] : memref<1x64xf32, #tpu.memory_space<vmem>>, vector<1x64xf32>
    %240 = vector.broadcast %239 : vector<1x64xf32> to vector<16x64xf32>
    %241 = arith.addf %238, %240 : vector<16x64xf32>
    %cst_219 = arith.constant 0.000000e+00 : f32
    %242 = vector.broadcast %cst_219 : f32 to vector<16x64xf32>
    %243 = arith.maximumf %241, %242 : vector<16x64xf32>
    %c0_220 = arith.constant 0 : index
    %c0_221 = arith.constant 0 : index
    %244 = vector.load %arg13[%c0_220, %c0_221] : memref<64x512xbf16, #tpu.memory_space<vmem>>, vector<64x512xbf16>
    %245 = arith.truncf %243 : vector<16x64xf32> to vector<16x64xbf16>
    %cst_222 = arith.constant dense<0.000000e+00> : vector<16x512xf32>
    %246 = tpu.matmul %245, %244, %cst_222 {dimension_numbers = #tpu.dot_dimension_numbers<[1], [0], [0], [1], [0, 0, 1, 1], [], []>} : vector<16x64xbf16>, vector<64x512xbf16>, vector<16x512xf32> -> vector<16x512xf32>
    %c0_223 = arith.constant 0 : index
    %c0_224 = arith.constant 0 : index
    %247 = vector.load %arg14[%c0_223, %c0_224] : memref<1x512xf32, #tpu.memory_space<vmem>>, vector<1x512xf32>
    %248 = vector.broadcast %247 : vector<1x512xf32> to vector<16x512xf32>
    %249 = arith.addf %246, %248 : vector<16x512xf32>
    %250 = arith.addf %168, %249 : vector<16x512xf32>
    %cst_225 = arith.constant 0.000000e+00 : f32
    %251 = vector.broadcast %cst_225 : f32 to vector<16x512xf32>
    %252 = arith.maximumf %250, %251 : vector<16x512xf32>
    %c0_226 = arith.constant 0 : index
    %c0_227 = arith.constant 0 : index
    %253 = vector.load %arg15[%c0_226, %c0_227] : memref<512x128xbf16, #tpu.memory_space<vmem>>, vector<512x128xbf16>
    %254 = arith.truncf %252 : vector<16x512xf32> to vector<16x512xbf16>
    %cst_228 = arith.constant dense<0.000000e+00> : vector<16x128xf32>
    %255 = tpu.matmul %254, %253, %cst_228 {dimension_numbers = #tpu.dot_dimension_numbers<[1], [0], [0], [1], [0, 0, 1, 1], [], []>} : vector<16x512xbf16>, vector<512x128xbf16>, vector<16x128xf32> -> vector<16x128xf32>
    %c0_229 = arith.constant 0 : index
    %c0_230 = arith.constant 0 : index
    %c0_231 = arith.constant 0 : index
    %256 = vector.load %arg16[%c0_229, %c0_230, %c0_231] : memref<1x16x128xf32, #tpu.memory_space<vmem>>, vector<1x16x128xf32>
    %257 = vector.shape_cast %256 : vector<1x16x128xf32> to vector<16x128xf32>
    %258 = vector.shape_cast %255 : vector<16x128xf32> to vector<1x16x128xf32>
    tpu.vector_store %arg16[%c0_229, %c0_230, %c0_231], %258 {strides = array<i32>} : memref<1x16x128xf32, #tpu.memory_space<vmem>>, vector<1x16x128xf32>,
    return
  }
  func.func @transform_0(%arg0: i32) -> (i32, i32, i32) {
    %c0_i32 = arith.constant 0 : i32
    %c0_i32_0 = arith.constant 0 : i32
    %c0_i32_1 = arith.constant 0 : i32
    return %arg0, %c0_i32, %c0_i32_0 : i32, i32, i32
  }
  func.func @transform_1(%arg0: i32) -> (i32, i32, i32) {
    %c0_i32 = arith.constant 0 : i32
    %c0_i32_0 = arith.constant 0 : i32
    %c0_i32_1 = arith.constant 0 : i32
    %c0_i32_2 = arith.constant 0 : i32
    return %c0_i32, %c0_i32_0, %c0_i32_1 : i32, i32, i32
  }
  func.func @transform_2(%arg0: i32) -> (i32, i32) {
    %c0_i32 = arith.constant 0 : i32
    %c0_i32_0 = arith.constant 0 : i32
    %c0_i32_1 = arith.constant 0 : i32
    return %c0_i32, %c0_i32_0 : i32, i32
  }
  func.func @transform_3(%arg0: i32) -> (i32, i32) {
    %c0_i32 = arith.constant 0 : i32
    %c0_i32_0 = arith.constant 0 : i32
    %c0_i32_1 = arith.constant 0 : i32
    return %c0_i32, %c0_i32_0 : i32, i32
  }
  func.func @transform_4(%arg0: i32) -> (i32, i32, i32) {
    %c0_i32 = arith.constant 0 : i32
    %c0_i32_0 = arith.constant 0 : i32
    %c0_i32_1 = arith.constant 0 : i32
    %c0_i32_2 = arith.constant 0 : i32
    return %c0_i32, %c0_i32_0, %c0_i32_1 : i32, i32, i32
  }
  func.func @transform_5(%arg0: i32) -> (i32, i32) {
    %c0_i32 = arith.constant 0 : i32
    %c0_i32_0 = arith.constant 0 : i32
    %c0_i32_1 = arith.constant 0 : i32
    return %c0_i32, %c0_i32_0 : i32, i32
  }
  func.func @transform_6(%arg0: i32) -> (i32, i32, i32) {
    %c0_i32 = arith.constant 0 : i32
    %c0_i32_0 = arith.constant 0 : i32
    %c0_i32_1 = arith.constant 0 : i32
    %c0_i32_2 = arith.constant 0 : i32
    return %c0_i32, %c0_i32_0, %c0_i32_1 : i32, i32, i32
  }
  func.func @transform_7(%arg0: i32) -> (i32, i32) {
    %c0_i32 = arith.constant 0 : i32
    %c0_i32_0 = arith.constant 0 : i32
    %c0_i32_1 = arith.constant 0 : i32
    return %c0_i32, %c0_i32_0 : i32, i32
  }
  func.func @transform_8(%arg0: i32) -> (i32, i32) {
    %c0_i32 = arith.constant 0 : i32
    %c0_i32_0 = arith.constant 0 : i32
    %c0_i32_1 = arith.constant 0 : i32
    return %c0_i32, %c0_i32_0 : i32, i32
  }
  func.func @transform_9(%arg0: i32) -> (i32, i32) {
    %c0_i32 = arith.constant 0 : i32
    %c0_i32_0 = arith.constant 0 : i32
    %c0_i32_1 = arith.constant 0 : i32
    return %c0_i32, %c0_i32_0 : i32, i32
  }
  func.func @transform_10(%arg0: i32) -> (i32, i32, i32) {
    %c0_i32 = arith.constant 0 : i32
    %c0_i32_0 = arith.constant 0 : i32
    %c0_i32_1 = arith.constant 0 : i32
    %c0_i32_2 = arith.constant 0 : i32
    return %c0_i32, %c0_i32_0, %c0_i32_1 : i32, i32, i32
  }
  func.func @transform_11(%arg0: i32) -> (i32, i32) {
    %c0_i32 = arith.constant 0 : i32
    %c0_i32_0 = arith.constant 0 : i32
    %c0_i32_1 = arith.constant 0 : i32
    return %c0_i32, %c0_i32_0 : i32, i32
  }
  func.func @transform_12(%arg0: i32) -> (i32, i32) {
    %c0_i32 = arith.constant 0 : i32
    %c0_i32_0 = arith.constant 0 : i32
    %c0_i32_1 = arith.constant 0 : i32
    return %c0_i32, %c0_i32_0 : i32, i32
  }
  func.func @transform_13(%arg0: i32) -> (i32, i32) {
    %c0_i32 = arith.constant 0 : i32
    %c0_i32_0 = arith.constant 0 : i32
    %c0_i32_1 = arith.constant 0 : i32
    return %c0_i32, %c0_i32_0 : i32, i32
  }
  func.func @transform_14(%arg0: i32) -> (i32, i32) {
    %c0_i32 = arith.constant 0 : i32
    %c0_i32_0 = arith.constant 0 : i32
    %c0_i32_1 = arith.constant 0 : i32
    return %c0_i32, %c0_i32_0 : i32, i32
  }
  func.func @transform_15(%arg0: i32) -> (i32, i32, i32) {
    %c0_i32 = arith.constant 0 : i32
    %c0_i32_0 = arith.constant 0 : i32
    %c0_i32_1 = arith.constant 0 : i32
    return %arg0, %c0_i32, %c0_i32_0 : i32, i32, i32
  }
}

</mosaic_0001>

<bundles_post_ra>
// kernel: tower_decoder_forward.1
= control target key start
LH: loop header
LB: loop body
LE: loop exit
PB: predicated region body
PF: predicated region fallthrough
CT: control target
= control target key end

     0   :  { %s7704_s0 = inlined_call_operand.vmem [shape: f32[2,16,64], index: 0, kind: input, shape index: {}]   ;;  %s7705_s1 = inlined_call_operand.hbm [shape: bf16[9,16,16], index: 1, kind: input, shape index: {}]   ;;  %s7706_s2 = inlined_call_operand.hbm [shape: bf16[64,64], index: 2, kind: input, shape index: {}]   ;;  %s7707_s3 = inlined_call_operand.vmem [shape: f32[1,64], index: 3, kind: input, shape index: {}]   ;;  %s7708_s4 = inlined_call_operand.vmem [shape: bf16[9,64,256], index: 4, kind: input, shape index: {}]   ;;  %s7709_s5 = inlined_call_operand.hbm [shape: f32[1,256], index: 5, kind: input, shape index: {}]   ;;  %s7710_s6 = inlined_call_operand.hbm [shape: bf16[9,128,128], index: 6, kind: input, shape index: {}]   ;;  %s7711_s7 = inlined_call_operand.hbm [shape: f32[1,128], index: 7, kind: input, shape index: {}]   ;;  %s7712_s8 = inlined_call_operand.vmem [shape: bf16[128,512], index: 8, kind: input, shape index: {}]   ;;  %s7713_s9 = inlined_call_operand.vmem [shape: f32[1,512], index: 9, kind: input, shape index: {}]   ;;  %s7714_s10 = inlined_call_operand.vmem [shape: bf16[9,128,64], index: 10, kind: input, shape index: {}]   ;;  %s7715_s11 = inlined_call_operand.hbm [shape: f32[1,64], index: 11, kind: input, shape index: {}]   ;;  %s7716_s12 = inlined_call_operand.hbm [shape: bf16[64,512], index: 12, kind: input, shape index: {}]   ;;  %s7717_s13 = inlined_call_operand.vmem [shape: f32[1,512], index: 13, kind: input, shape index: {}]   ;;  %s7718_s14 = inlined_call_operand.hbm [shape: bf16[512,128], index: 14, kind: input, shape index: {}]   ;;  %s7719_s15 = inlined_call_operand.vmem [shape: f32[2,16,128], index: 15, kind: output, shape index: {}]  }
   0x1   :  { %7721 = sst [smem:[#allocation21_spill]] %s7706_s2 }
   0x2   :  { %7722 = sst [smem:[#allocation22_spill]] %s7710_s6 }
   0x3   :  { %7723 = sst [smem:[#allocation23_spill]] %s7715_s11 }
   0x4   :  { %20 = vsyncpa [#allocation3], 0 }
   0x5   :  { %21 = vsyncpa [#allocation5], 0 }
   0x6   :  { %22 = vsyncpa [#allocation8], 0 }
   0x7   :  { %23 = vsyncpa [#allocation11], 0 }
   0x8   :  { %24 = vsyncpa [#allocation14], 0  ;;  %s6522_s18 = smov 0  }
   0x9 LB: > { %7724 = sst [smem:[#allocation20_spill]] %s6428_s18  ;;  %s6528_s19 = sadd.s32 4294967295, %s6428_s18   ;;  %s6428_s18 = sphi %s6522_s18, %s30_s18  }
   0xa   : > { %p4252_p0 = scmp.ge.s32.totalorder %s6428_s18, 1  ;;  %p381_p1 = scmp.lt.s32.totalorder %s6428_s18, 3 }
   0xb   : > { %p6115_p2 = scmp.eq.s32.totalorder %s6528_s19, 0  ;;  %s7725_s2 = sld [smem:[#allocation21_spill]] }
   0xc   : > { %p6536_p3 = pnand %p4252_p0, %p381_p1  ;;  %s7727_s6 = sld [smem:[#allocation22_spill]] }
   0xd   : > { %s6430_s27 = smov [#allocation4]   ;;  %s6431_s30 = smov [#allocation7]  }
   0xe   : > { %p6090_p4 = pneg %p6536_p3  ;;  %s408_s28 = sshll.u32 %s6430_s27, 4  ;;  %s409_s28 = int_to_ptr.vmem [resolvable:$true] %s408_s28 }
   0xf   : > { %s440_s16 = sshll.u32 %s6431_s30, 4  ;;  %s7729_s11 = sld [smem:[#allocation23_spill]]  ;;  %s441_s16 = int_to_ptr.vmem [resolvable:$true] %s440_s16 }
  0x10   : > { %p6547_p5 = pnand %p6115_p2, %p6090_p4  ;;  %s6432_s24 = smov 64  }
  0x11   : > { %s406_s22 = sshll.u32 %s7725_s2, 4  ;;  %s6433_s25 = smov 4   ;;  %s407_s22 = int_to_ptr.hbm [resolvable:$true] %s406_s22 }
  0x12   : > { %s438_s26 = sshll.u32 %s7727_s6, 4  ;;  %s6434_s27 = smov [#allocation10]   ;;  %s439_s26 = int_to_ptr.hbm [resolvable:$true] %s438_s26 }
  0x13   : > { %6096 = dma.hbm_to_vmem [thread:$0]  (!%p6547_p5), %s407_s22, 512, %s409_s28, [#allocation5], %s6432_s24, %s6432_s24, %s6433_s25  }
  0x14   : > { %6102 = dma.hbm_to_vmem [thread:$0]  (!%p6547_p5), %s439_s26, 9216, %s441_s16, [#allocation8], %s6432_s24, %s6432_s24, %s6433_s25  }
  0x15   : > { %s474_s21 = sshll.u32 %s7729_s11, 4  ;;  %s476_s30 = sshll.u32 %s6434_s27, 4  ;;  %s475_s21 = int_to_ptr.hbm [resolvable:$true] %s474_s21  ;;  %s477_s30 = int_to_ptr.vmem [resolvable:$true] %s476_s30 }
  0x16   : > { %s392_s20 = sshll.u32 %s7705_s1, 4  ;;  %s427_s22 = sshll.u32 %s7709_s5, 4  ;;  %s393_s20 = int_to_ptr.hbm [resolvable:$true] %s392_s20  ;;  %s428_s22 = int_to_ptr.hbm [resolvable:$true] %s427_s22 }
  0x17   : > { %6108 = dma.hbm_to_vmem [thread:$0]  (!%p6547_p5), %s475_s21, 16, %s477_s30, [#allocation11]  }
  0x18   : > { %s6435_s28 = smov [#allocation2]   ;;  %s6436_s2 = smov [#allocation6]  }
  0x19   : > { %s394_s18 = sshll.u32 %s6435_s28, 4  ;;  %s429_s26 = sshll.u32 %s6436_s2, 4  ;;  %s395_s18 = int_to_ptr.vmem [resolvable:$true] %s394_s18  ;;  %s430_s26 = int_to_ptr.vmem [resolvable:$true] %s429_s26 }
  0x1a   : > { %6093 = dma.hbm_to_vmem [thread:$0]  (!%p6547_p5), %s393_s20, 1152, %s395_s18, [#allocation3], %s6432_s24, %s6432_s24, %s6433_s25  }
  0x1b   : > { %s453_s21 = sshll.u32 %s7711_s7, 4  ;;  %s485_s30 = sshll.u32 %s7716_s12, 4  ;;  %s454_s21 = int_to_ptr.hbm [resolvable:$true] %s453_s21  ;;  %s486_s30 = int_to_ptr.hbm [resolvable:$true] %s485_s30 }
  0x1c   : > { %6099 = dma.hbm_to_vmem [thread:$0]  (!%p6547_p5), %s428_s22, 32, %s430_s26, [#allocation5]  }
  0x1d   : > { %s6437_s17 = smov [#allocation9]   ;;  %s6438_s18 = smov [#allocation12]  }
  0x1e   : > { %s455_s28 = sshll.u32 %s6437_s17, 4  ;;  %s487_s20 = sshll.u32 %s6438_s18, 4  ;;  %s456_s28 = int_to_ptr.vmem [resolvable:$true] %s455_s28  ;;  %s488_s20 = int_to_ptr.vmem [resolvable:$true] %s487_s20 }
  0x1f   : > { %6105 = dma.hbm_to_vmem [thread:$0]  (!%p6547_p5), %s454_s21, 16, %s456_s28, [#allocation8]  }
  0x20   : > { %s6439_s2 = smov 256   ;;  %s6440_s16 = smov 16  }
  0x21   : > { %6111 = dma.hbm_to_vmem [thread:$0]  (!%p6547_p5), %s486_s30, 2048, %s488_s20, [#allocation11], %s6439_s2, %s6439_s2, %s6440_s16  }
  0x22   : > { %s502_s26 = sshll.u32 %s7718_s14, 4  ;;  %s6441_s6 = smov [#allocation13]   ;;  %s503_s26 = int_to_ptr.hbm [resolvable:$true] %s502_s26 }
  0x23   : > { %s504_s11 = sshll.u32 %s6441_s6, 4  ;;  %528 = sbr.rel (%p6536_p3) target bundleno = 2254 (0x8ce), region = 80  ;;  %s505_s11 = int_to_ptr.vmem [resolvable:$true] %s504_s11 }
  0x24   : > { %6114 = dma.hbm_to_vmem [thread:$0]  (!%p6547_p5), %s503_s26, 4096, %s505_s11, [#allocation14], %s6432_s24, %s6432_s24, %s6433_s25  }
  0x28   : > { %6407 = dma.done.wait (%p6115_p2), [#allocation3], 1152  }
  0x29   : > { %6409 = vsyncadd (%p6115_p2), [#allocation3], 4294966144 }
  0x2a   : > { %6411 = dma.done.wait (%p6115_p2), [#allocation5], 544  }
  0x2b   : > { %6413 = vsyncadd (%p6115_p2), [#allocation5], 4294966752 }
  0x2c   : > { %6415 = dma.done.wait (%p6115_p2), [#allocation8], 9232  }
  0x2d   : > { %6417 = vsyncadd (%p6115_p2), [#allocation8], 4294958064 }
  0x2e   : > { %6419 = dma.done.wait (%p6115_p2), [#allocation11], 2064  }
  0x2f   : > { %6421 = vsyncadd (%p6115_p2), [#allocation11], 4294965232 }
  0x30   : > { %6423 = dma.done.wait (%p6115_p2), [#allocation14], 4096  }
  0x31   : > { %6425 = vsyncadd (%p6115_p2), [#allocation14], 4294963200  ;;  %p612_p6 = scmp.lt.s32.totalorder %s6528_s19, 1  ;;  %v5753_v0 = vld [vmem:[#allocation4 + $0x18] sm:$0xff]  ;;  %v5752_v1 = vld [vmem:[#allocation4 + $0x10] sm:$0xff]  ;;  %vm662_vm0 = vcmask 523264  }
  0x32   : > { %670 = vmatpush.bf16.msra.mxu0 %v5753_v0  ;;  %v5751_v2 = vld [vmem:[#allocation4 + $0x8] sm:$0xff]  ;;  %v5750_v3 = vld [vmem:[#allocation4] sm:$0xff]  ;;  %v5771_v8 = vld [vmem:[%s7708_s4 + $0x74] sm:$0xf0]  ;;  %vm690_vm1 = vcmask 130048  }
  0x33   : > { %s7732_s19 = smov (!%p612_p6, %s6528_s19), 1  ;;  %v4336_v7 = vld [vmem:[%s7708_s4 + $0x70] sm:$0xf]  ;;  %v5761_v9 = vld [vmem:[%s7708_s4 + $0x34] sm:$0xf]  ;;  %v6689_v42 = vld [vmem:[#allocation2] sm:$0xff] }
  0x34   : > { %s5748_s23 = sshll.u32 %s7732_s19, 4  ;;  %v4337_v10 = vor.u32 %v5771_v8, %v4336_v7  ;;  %v4372_v11 = vld [vmem:[%s7708_s4 + $0x38] sm:$0xf0]  ;;  %v4328_v13 = vld [vmem:[%s7708_s4 + $0x60] sm:$0xf]  ;;  %v6691_v43 = vld [vmem:[#allocation2 + $0x8] sm:$0xff] }
  0x35   : > { %s616_s25 = scalar_lea.vmem %s7704_s0, %s5748_s23  ;;  %v4375_v12 = vor.u32 %v5761_v9, %v4372_v11  ;;  %v5769_v14 = vld [vmem:[%s7708_s4 + $0x64] sm:$0xf0]  ;;  %v5759_v15 = vld [vmem:[%s7708_s4 + $0x24] sm:$0xf]  ;;  %v4364_v17 = vld [vmem:[%s7708_s4 + $0x28] sm:$0xf0]  ;;  %s621_s27 = scalar_lea.vmem %s7719_s15, %s5748_s23 }
  0x36   : > { %671 = vmatpush.bf16.msra.mxu0 %v5752_v1  ;;  %v623_v4 = vld [vmem:[%s616_s25] sm:$0xff]  ;;  %v624_v5 = vld [vmem:[%s616_s25 + $0x8] sm:$0xff]  ;;  %799 = vmatpush.bf16.msra.mxu3 %v4337_v10  ;;  %v4329_v16 = vor.u32 %v5769_v14, %v4328_v13  ;;  %v4367_v18 = vor.u32 %v5759_v15, %v4364_v17  ;;  %v4320_v19 = vld [vmem:[%s7708_s4 + $0x50] sm:$0xf] }
  0x37   : > { %v633_v6 = vpack.c.bf16 %v624_v5, %v623_v4  ;;  %v5767_v20 = vld [vmem:[%s7708_s4 + $0x54] sm:$0xf0]  ;;  %v5757_v21 = vld [vmem:[%s7708_s4 + $0x14] sm:$0xf]  ;;  %v4356_v23 = vld [vmem:[%s7708_s4 + $0x18] sm:$0xf0] }
  0x38   : > { %v4321_v22 = vor.u32 %v5767_v20, %v4320_v19  ;;  %v4359_v24 = vor.u32 %v5757_v21, %v4356_v23  ;;  %v4312_v25 = vld [vmem:[%s7708_s4 + $0x40] sm:$0xf]  ;;  %v5765_v26 = vld [vmem:[%s7708_s4 + $0x44] sm:$0xf0]  ;;  %v5755_v27 = vld [vmem:[%s7708_s4 + $0x4] sm:$0xf] }
  0x39   : > { %v4313_v28 = vor.u32 %v5765_v26, %v4312_v25  ;;  %v4348_v29 = vld [vmem:[%s7708_s4 + $0x8] sm:$0xf0]  ;;  %v6151_v32 = vld [vmem:[%s7707_s3] ss:$0 sm:$0xff]  ;;  %v4370_v36 = vld [vmem:[%s7708_s4 + $0x30] sm:$0xf] }
  0x3a   : > { %672 = vmatpush.bf16.msra.mxu0 %v5751_v2  ;;  %800 = vmatpush.bf16.msra.mxu3 %v4329_v16  ;;  %v4351_v30 = vor.u32 %v5755_v27, %v4348_v29  ;;  %v5762_v37 = vld [vmem:[%s7708_s4 + $0x34] sm:$0xf0]  ;;  %v4362_v44 = vld [vmem:[%s7708_s4 + $0x20] sm:$0xf]  ;;  %v5760_v45 = vld [vmem:[%s7708_s4 + $0x24] sm:$0xf0] }
  0x3b   : > { %v4371_v41 = vor.u32 %v5762_v37, %v4370_v36  ;;  %v4363_v46 = vor.u32 %v5760_v45, %v4362_v44  ;;  %v5770_v47 = vld [vmem:[%s7708_s4 + $0x74] sm:$0xf]  ;;  %v4338_v48 = vld [vmem:[%s7708_s4 + $0x78] sm:$0xf0]  ;;  %v4354_v49 = vld [vmem:[%s7708_s4 + $0x10] sm:$0xf] }
  0x3c   : > { %v4341_v50 = vor.u32 %v5770_v47, %v4338_v48  ;;  %v5758_v51 = vld [vmem:[%s7708_s4 + $0x14] sm:$0xf0]  ;;  %v5768_v53 = vld [vmem:[%s7708_s4 + $0x64] sm:$0xf]  ;;  %v4330_v54 = vld [vmem:[%s7708_s4 + $0x68] sm:$0xf0] }
  0x3d   : > { %v4355_v52 = vor.u32 %v5758_v51, %v4354_v49  ;;  %v4333_v55 = vor.u32 %v5768_v53, %v4330_v54  ;;  %v4346_v56 = vld [vmem:[%s7708_s4] sm:$0xf]  ;;  %v5756_v57 = vld [vmem:[%s7708_s4 + $0x4] sm:$0xf0]  ;;  %v5766_v59 = vld [vmem:[%s7708_s4 + $0x54] sm:$0xf] }
  0x3e   : > { %673 = vmatpush.bf16.msra.mxu0 %v5750_v3  ;;  %801 = vmatpush.bf16.msra.mxu3 %v4321_v22  ;;  %v4347_v58 = vor.u32 %v5756_v57, %v4346_v56  ;;  %v4322_v60 = vld [vmem:[%s7708_s4 + $0x58] sm:$0xf0]  ;;  %v5764_v62 = vld [vmem:[%s7708_s4 + $0x44] sm:$0xf]  ;;  %v4314_v63 = vld [vmem:[%s7708_s4 + $0x48] sm:$0xf0] }
  0x3f   : > { %v4325_v61 = vor.u32 %v5766_v59, %v4322_v60  ;;  %v4317_v0 = vor.u32 %v5764_v62, %v4314_v63  ;;  %v5796_v2 = vld [vmem:[%s7708_s4 + $0x134] sm:$0xf]  ;;  %v4508_v3 = vld [vmem:[%s7708_s4 + $0x138] sm:$0xf0]  ;;  %v5794_v8 = vld [vmem:[%s7708_s4 + $0x124] sm:$0xf] }
  0x40   : > { %v4500_v9 = vld [vmem:[%s7708_s4 + $0x128] sm:$0xf0]  ;;  %v4464_v10 = vld [vmem:[%s7708_s4 + $0xf0] sm:$0xf]  ;;  %v5789_v11 = vld [vmem:[%s7708_s4 + $0xf4] sm:$0xf0] }
  0x41   : > { %4291 = vmatmul.msk.bf16.vlgmr.msra.gmra.mxu0 %vm662_vm0, %v633_v6  ;;  %v4511_v6 = vor.u32 %v5796_v2, %v4508_v3  ;;  %v5792_v13 = vld [vmem:[%s7708_s4 + $0x114] sm:$0xf]  ;;  %v4492_v14 = vld [vmem:[%s7708_s4 + $0x118] sm:$0xf0]  ;;  %v4465_v16 = vor.u32 %v5789_v11, %v4464_v10  ;;  %v5787_v19 = vld [vmem:[%s7708_s4 + $0xe4] sm:$0xf0] }
  0x42   : > { %884 = vmatpush.bf16.msrb.mxu0 %v4375_v12  ;;  %802 = vmatpush.bf16.msra.mxu3 %v4313_v28  ;;  %v4503_v12 = vor.u32 %v5794_v8, %v4500_v9  ;;  %v4495_v20 = vor.u32 %v5792_v13, %v4492_v14  ;;  %v5790_v21 = vld [vmem:[%s7708_s4 + $0x104] sm:$0xf]  ;;  %v4484_v22 = vld [vmem:[%s7708_s4 + $0x108] sm:$0xf0]  ;;  %v5785_v25 = vld [vmem:[%s7708_s4 + $0xd4] sm:$0xf0] }
  0x43   : > { %v4487_v26 = vor.u32 %v5790_v21, %v4484_v22  ;;  %v6789_v28 = vld [vmem:[#allocation2 + $0x18] sm:$0xff]  ;;  %v4440_v29 = vld [vmem:[%s7708_s4 + $0xc0] sm:$0xf]  ;;  %v5777_v36 = vld [vmem:[%s7708_s4 + $0xa4] sm:$0xf] }
  0x44   : > { %v4411_v37 = vld [vmem:[%s7708_s4 + $0xa8] sm:$0xf0]  ;;  %v5775_v44 = vld [vmem:[%s7708_s4 + $0x94] sm:$0xf]  ;;  %v4409_v48 = vld [vmem:[%s7708_s4 + $0xa0] sm:$0xf] }
  0x45   : > { %v5778_v49 = vld [vmem:[%s7708_s4 + $0xa4] sm:$0xf0]  ;;  %v4506_v53 = vld [vmem:[%s7708_s4 + $0x130] sm:$0xf]  ;;  %v5797_v54 = vld [vmem:[%s7708_s4 + $0x134] sm:$0xf0] }
  0x46   : > { %885 = vmatpush.bf16.msrb.mxu0 %v4367_v18  ;;  %v4456_v18 = vld [vmem:[%s7708_s4 + $0xe0] sm:$0xf]  ;;  %v4410_v51 = vor.u32 %v5778_v49, %v4409_v48  ;;  %v4507_v56 = vor.u32 %v5797_v54, %v4506_v53  ;;  %v4401_v57 = vld [vmem:[%s7708_s4 + $0x90] sm:$0xf]  ;;  %v4466_v8 = vld [vmem:[%s7708_s4 + $0xf8] sm:$0xf0] }
  0x47   : > { %v4457_v23 = vor.u32 %v5787_v19, %v4456_v18  ;;  %v4498_v60 = vld [vmem:[%s7708_s4 + $0x120] sm:$0xf]  ;;  %v4490_v3 = vld [vmem:[%s7708_s4 + $0x110] sm:$0xf]  ;;  %v5784_v21 = vld [vmem:[%s7708_s4 + $0xd4] sm:$0xf] }
  0x48   : > { %v4482_v11 = vld [vmem:[%s7708_s4 + $0x100] sm:$0xf]  ;;  %v6895_v18 = vld [vmem:[#allocation2 + $0x30] sm:$0xff]  ;;  %v4450_v22 = vld [vmem:[%s7708_s4 + $0xd8] sm:$0xf0] }
  0x49   : > { %v4539_v48 = vld [vmem:[%s7708_s4 + $0x158] sm:$0xf0]  ;;  %v4553_v54 = vld [vmem:[%s7708_s4 + $0x170] sm:$0xf] }
  0x4a   : > { %886 = vmatpush.bf16.msrb.mxu0 %v4359_v24  ;;  %v4448_v24 = vld [vmem:[%s7708_s4 + $0xd0] sm:$0xf] }
  0x4b   : > { %v4449_v27 = vor.u32 %v5785_v25, %v4448_v24  ;;  %v4453_v24 = vor.u32 %v5784_v21, %v4450_v22  ;;  %v4576_v22 = vld [vmem:[%s7708_s4 + $0x180] sm:$0xf] }
  0x4e   : > { %887 = vmatpush.bf16.msrb.mxu0 %v4351_v30  ;;  %v5783_v30 = vld [vmem:[%s7708_s4 + $0xc4] sm:$0xf0] }
  0xbe   : > { %v675_v31 = vpop.f32.mrf.mxu0 }
  0xbf   : > { %v676_v33 = vadd.f32 %v6151_v32, %v675_v31  ;;  %v4441_v31 = vor.u32 %v5783_v30, %v4440_v29 }
  0xc1   : > { %v680_v38 = vmax.f32 %v676_v33, 0.0  ;;  %v5779_v33 = vld [vmem:[%s7708_s4 + $0xb4] sm:$0xf] }
  0xc6   : > { %v677_v34 = vpop.f32.mrf.mxu0 }
  0xc7   : > { %v678_v35 = vadd.f32 %v6151_v32, %v677_v34  ;;  %v6800_v32 = vld [vmem:[#allocation2 + $0x10] sm:$0xff]  ;;  %v4419_v34 = vld [vmem:[%s7708_s4 + $0xb8] sm:$0xf0] }
  0xc9   : > { %v681_v39 = vmax.f32 %v678_v35, 0.0  ;;  %v4422_v35 = vor.u32 %v5779_v33, %v4419_v34 }
  0xcb   : > { %v6687_v40 = vpack.c.bf16 %v681_v39, %v680_v38  ;;  %v4414_v38 = vor.u32 %v5777_v36, %v4411_v37  ;;  %v4417_v39 = vld [vmem:[%s7708_s4 + $0xb0] sm:$0xf]  ;;  %v4555_v36 = vld [vmem:[%s7708_s4 + $0x178] sm:$0xf0] }
  0xcd   : > { %701 = vmatpush.bf16.msra.mxu1 %v6687_v40  ;;  %735 = vmatpush.bf16.msra.mxu2 %v6687_v40 }
  0xce   : > { %912 = vmatpush.bf16.msrb.mxu3 %v6687_v40  ;;  %1022 = vmatpush.bf16.msra.mxu0 %v6687_v40 }
  0xd0   : > { %4296 = vmatmul.msk.bf16.vlgmr.msra.gmra.mxu1 %vm690_vm1, %v6689_v42  ;;  %4301 = vmatmul.msk.bf16.vlgmr.msra.gmra.mxu2 %vm690_vm1, %v6691_v43 }
  0xd1   : > { %870 = vmatpush.bf16.msrb.mxu2 %v4371_v41  ;;  %813 = vmatpush.bf16.msrb.mxu1 %v4341_v50  ;;  %v5780_v41 = vld [vmem:[%s7708_s4 + $0xb4] sm:$0xf0]  ;;  %v5773_v50 = vld [vmem:[%s7708_s4 + $0x84] sm:$0xf] }
  0xd2   : > { %v4418_v45 = vor.u32 %v5780_v41, %v4417_v39  ;;  %v5803_v41 = vld [vmem:[%s7708_s4 + $0x164] sm:$0xf] }
  0xd5   : > { %871 = vmatpush.bf16.msrb.mxu2 %v4363_v46  ;;  %814 = vmatpush.bf16.msrb.mxu1 %v4333_v55  ;;  %v4403_v46 = vld [vmem:[%s7708_s4 + $0x98] sm:$0xf0] }
  0xd6   : > { %v4406_v47 = vor.u32 %v5775_v44, %v4403_v46  ;;  %v4547_v44 = vld [vmem:[%s7708_s4 + $0x168] sm:$0xf0] }
  0xd7   : > { %v4550_v46 = vor.u32 %v5803_v41, %v4547_v44 }
  0xd9   : > { %872 = vmatpush.bf16.msrb.mxu2 %v4355_v52  ;;  %815 = vmatpush.bf16.msrb.mxu1 %v4325_v61  ;;  %v4395_v52 = vld [vmem:[%s7708_s4 + $0x88] sm:$0xf0]  ;;  %v5795_v61 = vld [vmem:[%s7708_s4 + $0x124] sm:$0xf0] }
  0xda   : > { %v4398_v55 = vor.u32 %v5773_v50, %v4395_v52  ;;  %v4499_v63 = vor.u32 %v5795_v61, %v4498_v60  ;;  %v5799_v50 = vld [vmem:[%s7708_s4 + $0x144] sm:$0xf]  ;;  %v4600_v61 = vld [vmem:[%s7708_s4 + $0x1b0] sm:$0xf] }
  0xdd   : > { %873 = vmatpush.bf16.msrb.mxu2 %v4347_v58  ;;  %816 = vmatpush.bf16.msrb.mxu1 %v4317_v0  ;;  %v5776_v58 = vld [vmem:[%s7708_s4 + $0x94] sm:$0xf0]  ;;  %v4393_v0 = vld [vmem:[%s7708_s4 + $0x80] sm:$0xf] }
  0xde   : > { %v4402_v59 = vor.u32 %v5776_v58, %v4401_v57  ;;  %v4545_v57 = vld [vmem:[%s7708_s4 + $0x160] sm:$0xf]  ;;  %v5804_v58 = vld [vmem:[%s7708_s4 + $0x164] sm:$0xf0] }
  0xe1   : > { %990 = vmatpush.bf16.msra.mxu2 %v4422_v35  ;;  %976 = vmatpush.bf16.msra.mxu1 %v4418_v45  ;;  %v5805_v35 = vld [vmem:[%s7708_s4 + $0x174] sm:$0xf]  ;;  %v6930_v45 = vld [vmem:[#allocation2 + $0x28] sm:$0xff] }
  0xe5   : > { %991 = vmatpush.bf16.msra.mxu2 %v4414_v38  ;;  %977 = vmatpush.bf16.msra.mxu1 %v4410_v51  ;;  %v4558_v38 = vor.u32 %v5805_v35, %v4555_v36  ;;  %v4531_v51 = vld [vmem:[%s7708_s4 + $0x148] sm:$0xf0] }
  0xe6   : > { %v4534_v52 = vor.u32 %v5799_v50, %v4531_v51  ;;  %v4578_v35 = vld [vmem:[%s7708_s4 + $0x188] sm:$0xf0] }
  0xe9   : > { %992 = vmatpush.bf16.msra.mxu2 %v4406_v47  ;;  %978 = vmatpush.bf16.msra.mxu1 %v4402_v59  ;;  %v5801_v47 = vld [vmem:[%s7708_s4 + $0x154] sm:$0xf]  ;;  %v4546_v59 = vor.u32 %v5804_v58, %v4545_v57 }
  0xea   : > { %v4542_v49 = vor.u32 %v5801_v47, %v4539_v48 }
  0xed   : > { %993 = vmatpush.bf16.msra.mxu2 %v4398_v55  ;;  %v5806_v55 = vld [vmem:[%s7708_s4 + $0x174] sm:$0xf0] }
 0x14d   : > { %v703_v1 = vpop.f32.mrf.mxu1 }
 0x153   : > { %v737_v4 = vpop.f32.mrf.mxu2 }
 0x155   : > { %v705_v5 = vpop.f32.mrf.mxu1 }
 0x156   : > { %v708_v7 = vpack.c.bf16 %v705_v5, %v703_v1  ;;  %v5774_v1 = vld [vmem:[%s7708_s4 + $0x84] sm:$0xf0] }
 0x157   : > { %v4394_v2 = vor.u32 %v5774_v1, %v4393_v0  ;;  %v4537_v0 = vld [vmem:[%s7708_s4 + $0x150] sm:$0xf]  ;;  %v5802_v1 = vld [vmem:[%s7708_s4 + $0x154] sm:$0xf0] }
 0x158   : > { %4376 = vmatmul.msk.bf16.vlgmr.msrb.gmra.mxu2 %vm662_vm0, %v708_v7  ;;  %4377 = vmatmul.msk.bf16.vlgmr.msrb.gmra.mxu0 %vm662_vm0, %v708_v7  ;;  %v5788_v7 = vld [vmem:[%s7708_s4 + $0xf4] sm:$0xf] }
 0x159   : > { %1184 = vmatpush.bf16.msrb.mxu0 %v4511_v6  ;;  %1170 = vmatpush.bf16.msrb.mxu2 %v4507_v56  ;;  %v4469_v10 = vor.u32 %v5788_v7, %v4466_v8  ;;  %v4554_v56 = vor.u32 %v5806_v55, %v4553_v54  ;;  %v5800_v7 = vld [vmem:[%s7708_s4 + $0x144] sm:$0xf0] }
 0x15a   : > { %979 = vmatpush.bf16.msra.mxu1 %v4394_v2  ;;  %v4538_v2 = vor.u32 %v5802_v1, %v4537_v0  ;;  %v4649_v0 = vld [vmem:[%s7708_s4 + $0x1f8] sm:$0xf0] }
 0x15b   : > { %v739_v15 = vpop.f32.mrf.mxu2 }
 0x15c   : > { %v742_v17 = vpack.c.bf16 %v739_v15, %v737_v4  ;;  %v5793_v4 = vld [vmem:[%s7708_s4 + $0x114] sm:$0xf0]  ;;  %v5786_v15 = vld [vmem:[%s7708_s4 + $0xe4] sm:$0xf] }
 0x15d   : > { %1185 = vmatpush.bf16.msrb.mxu0 %v4503_v12  ;;  %1171 = vmatpush.bf16.msrb.mxu2 %v4499_v63  ;;  %v4491_v5 = vor.u32 %v5793_v4, %v4490_v3  ;;  %v5791_v12 = vld [vmem:[%s7708_s4 + $0x104] sm:$0xf0]  ;;  %v4592_v3 = vld [vmem:[%s7708_s4 + $0x1a0] sm:$0xf] }
 0x15e   : > { %4342 = vmatmul.msk.bf16.vlgmr.msra.gmra.mxu3 %vm662_vm0, %v742_v17  ;;  %4343 = vmatmul.msk.bf16.vlgmr.msrb.gmra.mxu1 %vm662_vm0, %v742_v17  ;;  %v4483_v14 = vor.u32 %v5791_v12, %v4482_v11  ;;  %v5813_v4 = vld [vmem:[%s7708_s4 + $0x1a4] sm:$0xf0]  ;;  %v4602_v11 = vld [vmem:[%s7708_s4 + $0x1b8] sm:$0xf0] }
 0x15f   : > { %1086 = vmatpush.bf16.msra.mxu3 %v4465_v16  ;;  %1100 = vmatpush.bf16.msrb.mxu1 %v4469_v10  ;;  %v4458_v16 = vld [vmem:[%s7708_s4 + $0xe8] sm:$0xf0]  ;;  %v5814_v10 = vld [vmem:[%s7708_s4 + $0x1b4] sm:$0xf] }
 0x160   : > { %v4461_v17 = vor.u32 %v5786_v15, %v4458_v16  ;;  %v4584_v15 = vld [vmem:[%s7708_s4 + $0x190] sm:$0xf]  ;;  %v5811_v16 = vld [vmem:[%s7708_s4 + $0x194] sm:$0xf0] }
 0x161   : > { %1186 = vmatpush.bf16.msrb.mxu0 %v4495_v20  ;;  %1172 = vmatpush.bf16.msrb.mxu2 %v4491_v5  ;;  %v4593_v5 = vor.u32 %v5813_v4, %v4592_v3  ;;  %v5822_v3 = vld [vmem:[%s7708_s4 + $0x1e4] sm:$0xf0]  ;;  %v5821_v4 = vld [vmem:[%s7708_s4 + $0x1e4] sm:$0xf] }
 0x163   : > { %1087 = vmatpush.bf16.msra.mxu3 %v4457_v23  ;;  %1101 = vmatpush.bf16.msrb.mxu1 %v4461_v17  ;;  %v4585_v17 = vor.u32 %v5811_v16, %v4584_v15  ;;  %v4633_v15 = vld [vmem:[%s7708_s4 + $0x1d8] sm:$0xf0]  ;;  %v4694_v16 = vld [vmem:[%s7708_s4 + $0x230] sm:$0xf] }
 0x165   : > { %1187 = vmatpush.bf16.msrb.mxu0 %v4487_v26  ;;  %1173 = vmatpush.bf16.msrb.mxu2 %v4483_v14  ;;  %v5782_v26 = vld [vmem:[%s7708_s4 + $0xc4] sm:$0xf]  ;;  %v4605_v14 = vor.u32 %v5814_v10, %v4602_v11  ;;  %v4631_v10 = vld [vmem:[%s7708_s4 + $0x1d0] sm:$0xf]  ;;  %v5820_v11 = vld [vmem:[%s7708_s4 + $0x1d4] sm:$0xf0] }
 0x167   : > { %1088 = vmatpush.bf16.msra.mxu3 %v4449_v27  ;;  %v4442_v27 = vld [vmem:[%s7708_s4 + $0xc8] sm:$0xf0]  ;;  %1102 = vmatpush.bf16.msrb.mxu1 %v4453_v24  ;;  %v5809_v24 = vld [vmem:[%s7708_s4 + $0x184] sm:$0xf0] }
 0x168   : > { %4429 = vmatmul.msk.bf16.vlgmr.msra.gmra.mxu0 %vm690_vm1, %v6789_v28  ;;  %v4445_v29 = vor.u32 %v5782_v26, %v4442_v27  ;;  %v5810_v26 = vld [vmem:[%s7708_s4 + $0x194] sm:$0xf]  ;;  %v4586_v27 = vld [vmem:[%s7708_s4 + $0x198] sm:$0xf0] }
 0x169   : > { %1326 = vmatpush.bf16.msra.mxu0 %v6687_v40 }
 0x16b   : > { %1089 = vmatpush.bf16.msra.mxu3 %v4441_v31  ;;  %1103 = vmatpush.bf16.msrb.mxu1 %v4445_v29 }
 0x16e   : > { %4382 = vmatmul.msk.bf16.vlgmr.msrb.gmra.mxu3 %vm690_vm1, %v6800_v32 }
 0x16f   : > { %1216 = vmatpush.bf16.msrb.mxu3 %v6687_v40 }
 0x178   : > { %4513 = vmatmul.msk.bf16.vlgmr.msrb.gmra.mxu0 %vm662_vm0, %v6687_v40 }
 0x188   : > { %4565 = vmatmul.msk.bf16.vlgmr.msra.gmra.mxu0 %vm690_vm1, %v6895_v18 }
 0x1d5   : > { %v889_v62 = vpop.f32.mrf.mxu0 }
 0x1db   : > { %v818_v6 = vpop.f32.mrf.mxu1  ;;  %v875_v19 = vpop.f32.mrf.mxu2 }
 0x1dc   : > { %v6879_v9 = vadd.f32 %v889_v62, %v818_v6  ;;  %v5815_v62 = vld [vmem:[%s7708_s4 + $0x1b4] sm:$0xf0]  ;;  %v4529_v6 = vld [vmem:[%s7708_s4 + $0x140] sm:$0xf] }
 0x1dd   : > { %v6887_v13 = vpop.f32.mrf.mxu0  ;;  %v4601_v63 = vor.u32 %v5815_v62, %v4600_v61  ;;  %v4530_v8 = vor.u32 %v5800_v7, %v4529_v6  ;;  %v4647_v61 = vld [vmem:[%s7708_s4 + $0x1f0] sm:$0xf]  ;;  %v5823_v62 = vld [vmem:[%s7708_s4 + $0x1f4] sm:$0xf]  ;;  %v4641_v6 = vld [vmem:[%s7708_s4 + $0x1e8] sm:$0xf0] }
 0x1de   : > { %v4652_v1 = vor.u32 %v5823_v62, %v4649_v0  ;;  %v4644_v7 = vor.u32 %v5821_v4, %v4641_v6  ;;  %v5827_v62 = vld [vmem:[%s7708_s4 + $0x204] sm:$0xf0]  ;;  %v4672_v4 = vld [vmem:[%s7708_s4 + $0x208] sm:$0xf0] }
 0x1e1   : > { %v804_v20 = vpop.f32.mrf.mxu3 }
 0x1e2   : > { %v6903_v23 = vadd.f32 %v875_v19, %v804_v20  ;;  %v5812_v19 = vld [vmem:[%s7708_s4 + $0x1a4] sm:$0xf]  ;;  %v4594_v20 = vld [vmem:[%s7708_s4 + $0x1a8] sm:$0xf0] }
 0x1e3   : > { %v4597_v21 = vor.u32 %v5812_v19, %v4594_v20 }
 0x1e5   : > { %v1024_v25 = vpop.f32.mrf.mxu0 }
 0x1e9   : > { %v6913_v30 = vpop.f32.mrf.mxu3 }
 0x1ed   : > { %v1026_v31 = vpop.f32.mrf.mxu0 }
 0x1ee   : > { %v1029_v33 = vpack.c.bf16 %v1026_v31, %v1024_v25  ;;  %v4577_v25 = vor.u32 %v5809_v24, %v4576_v22  ;;  %v4589_v31 = vor.u32 %v5810_v26, %v4586_v27  ;;  %v5818_v22 = vld [vmem:[%s7708_s4 + $0x1c4] sm:$0xf0]  ;;  %v5817_v24 = vld [vmem:[%s7708_s4 + $0x1c4] sm:$0xf]  ;;  %v4625_v26 = vld [vmem:[%s7708_s4 + $0x1c8] sm:$0xf0] }
 0x1f0   : > { %4470 = vmatmul.msk.bf16.vlgmr.msra.gmra.mxu3 %vm662_vm0, %v1029_v33 }
 0x1f1   : > { %v914_v34 = vpop.f32.mrf.mxu3  ;;  %1390 = vmatpush.bf16.msra.mxu3 %v4601_v63 }
 0x1f5   : > { %v6950_v53 = vpop.f32.mrf.mxu0  ;;  %1391 = vmatpush.bf16.msra.mxu3 %v4593_v5 }
 0x1f9   : > { %v916_v37 = vpop.f32.mrf.mxu3  ;;  %1392 = vmatpush.bf16.msra.mxu3 %v4585_v17  ;;  %v5833_v17 = vld [vmem:[%s7708_s4 + $0x234] sm:$0xf0] }
 0x1fa   : > { %v919_v39 = vpack.c.bf16 %v916_v37, %v914_v34  ;;  %v5808_v34 = vld [vmem:[%s7708_s4 + $0x184] sm:$0xf]  ;;  %v7027_v37 = vpop.f32.mrf.mxu1  ;;  %v4695_v20 = vor.u32 %v5833_v17, %v4694_v16 }
 0x1fb   : > { %v4581_v36 = vor.u32 %v5808_v34, %v4578_v35 }
 0x1fc   : > { %4423 = vmatmul.msk.bf16.vlgmr.msra.gmra.mxu1 %vm662_vm0, %v919_v39  ;;  %4424 = vmatmul.msk.bf16.vlgmr.msra.gmra.mxu2 %vm662_vm0, %v919_v39  ;;  %v7029_v39 = vpop.f32.mrf.mxu2 }
 0x1fd   : > { %1294 = vmatpush.bf16.msra.mxu2 %v4558_v38  ;;  %1280 = vmatpush.bf16.msra.mxu1 %v4554_v56  ;;  %v6964_v60 = vpop.f32.mrf.mxu0 }
 0x1fe   : > { %1393 = vmatpush.bf16.msra.mxu3 %v4577_v25 }
 0x200   : > { %4518 = vmatmul.msk.bf16.vlgmr.msrb.gmra.mxu3 %vm690_vm1, %v6930_v45 }
 0x201   : > { %1295 = vmatpush.bf16.msra.mxu2 %v4550_v46  ;;  %1281 = vmatpush.bf16.msra.mxu1 %v4546_v59  ;;  %v7044_v59 = vld [vmem:[#allocation2 + $0x38] sm:$0xff] }
 0x202   : > { %1514 = vmatpush.bf16.msrb.mxu3 %v4652_v1 }
 0x205   : > { %1296 = vmatpush.bf16.msra.mxu2 %v4542_v49  ;;  %1282 = vmatpush.bf16.msra.mxu1 %v4538_v2  ;;  %v1328_v12 = vpop.f32.mrf.mxu0  ;;  %v4639_v2 = vld [vmem:[%s7708_s4 + $0x1e0] sm:$0xf] }
 0x206   : > { %v4640_v5 = vor.u32 %v5822_v3, %v4639_v2  ;;  %1515 = vmatpush.bf16.msrb.mxu3 %v4644_v7  ;;  %v5828_v2 = vld [vmem:[%s7708_s4 + $0x214] sm:$0xf]  ;;  %v5826_v3 = vld [vmem:[%s7708_s4 + $0x204] sm:$0xf] }
 0x209   : > { %1297 = vmatpush.bf16.msra.mxu2 %v4534_v52  ;;  %1283 = vmatpush.bf16.msra.mxu1 %v4530_v8 }
 0x20c   : > { %4471 = vmatmul.msk.bf16.vlgmr.msrb.gmra.mxu1 %vm662_vm0, %v1029_v33  ;;  %4512 = vmatmul.msk.bf16.vlgmr.msrb.gmra.mxu2 %vm662_vm0, %v6687_v40 }
 0x20d   : > { %1436 = vmatpush.bf16.msrb.mxu2 %v6687_v40  ;;  %1404 = vmatpush.bf16.msrb.mxu1 %v4605_v14  ;;  %v1330_v29 = vpop.f32.mrf.mxu0  ;;  %v4632_v14 = vor.u32 %v5820_v11, %v4631_v10 }
 0x20e   : > { %v1333_v33 = vpack.c.bf16 %v1330_v29, %v1328_v12  ;;  %v5819_v12 = vld [vmem:[%s7708_s4 + $0x1d4] sm:$0xf]  ;;  %v4628_v29 = vor.u32 %v5817_v24, %v4625_v26 }
 0x20f   : > { %v4636_v19 = vor.u32 %v5819_v12, %v4633_v15 }
 0x210   : > { %4606 = vmatmul.msk.bf16.vlgmr.msra.gmra.mxu3 %vm662_vm0, %v1333_v33 }
 0x211   : > { %1405 = vmatpush.bf16.msrb.mxu1 %v4597_v21  ;;  %1516 = vmatpush.bf16.msrb.mxu3 %v4636_v19  ;;  %v4623_v21 = vld [vmem:[%s7708_s4 + $0x1c0] sm:$0xf] }
 0x212   : > { %v4624_v25 = vor.u32 %v5818_v22, %v4623_v21 }
 0x215   : > { %1406 = vmatpush.bf16.msrb.mxu1 %v4589_v31  ;;  %v4686_v31 = vld [vmem:[%s7708_s4 + $0x220] sm:$0xf]  ;;  %1517 = vmatpush.bf16.msrb.mxu3 %v4628_v29 }
 0x219   : > { %1407 = vmatpush.bf16.msrb.mxu1 %v4581_v36 }
 0x273   : > { %v1091_v38 = vpop.f32.mrf.mxu3 }
 0x279   : > { %v981_v41 = vpop.f32.mrf.mxu1 }
 0x27a   : > { %v1000_v44 = vadd.f32 %v981_v41, %v6903_v23  ;;  %v4696_v41 = vld [vmem:[%s7708_s4 + $0x238] sm:$0xf0] }
 0x27b   : > { %v7032_v46 = vpop.f32.mrf.mxu3 }
 0x27c   : > { %v1110_v47 = vadd.f32 %v1091_v38, %v1000_v44  ;;  %v5832_v38 = vld [vmem:[%s7708_s4 + $0x234] sm:$0xf] }
 0x27f   : > { %v995_v48 = vpop.f32.mrf.mxu2 }
 0x280   : > { %v1001_v49 = vadd.f32 %v995_v48, %v6879_v9  ;;  %v7049_v9 = vld [vmem:[#allocation2 + $0x40] sm:$0xff]  ;;  %v4678_v48 = vld [vmem:[%s7708_s4 + $0x210] sm:$0xf] }
 0x281   : > { %v7035_v50 = vpop.f32.mrf.mxu1 }
 0x283   : > { %v1218_v51 = vpop.f32.mrf.mxu3 }
 0x287   : > { %v7037_v52 = vpop.f32.mrf.mxu2 }
 0x289   : > { %v1105_v54 = vpop.f32.mrf.mxu1 }
 0x28a   : > { %v7039_v55 = vadd.f32 %v1105_v54, %v1001_v49  ;;  %v5829_v49 = vld [vmem:[%s7708_s4 + $0x214] sm:$0xf0] }
 0x28b   : > { %v1220_v56 = vpop.f32.mrf.mxu3  ;;  %v4679_v54 = vor.u32 %v5829_v49, %v4678_v48 }
 0x28c   : > { %v1223_v57 = vpack.c.bf16 %v1220_v56, %v1218_v51  ;;  %v5830_v51 = vld [vmem:[%s7708_s4 + $0x224] sm:$0xf]  ;;  %v4688_v56 = vld [vmem:[%s7708_s4 + $0x228] sm:$0xf0] }
 0x28e   : > { %4559 = vmatmul.msk.bf16.vlgmr.msra.gmra.mxu1 %vm662_vm0, %v1223_v57  ;;  %4560 = vmatmul.msk.bf16.vlgmr.msra.gmra.mxu2 %vm662_vm0, %v1223_v57 }
 0x28f   : > { %1546 = vmatpush.bf16.msra.mxu1 %v6687_v40  ;;  %v1175_v23 = vpop.f32.mrf.mxu2  ;;  %v5824_v40 = vld [vmem:[%s7708_s4 + $0x1f4] sm:$0xf0]  ;;  %1610 = vmatpush.bf16.msra.mxu2 %v4695_v20 }
 0x290   : > { %v1194_v58 = vadd.f32 %v1175_v23, %v1110_v47  ;;  %v4648_v63 = vor.u32 %v5824_v40, %v4647_v61  ;;  %v4699_v47 = vor.u32 %v5832_v38, %v4696_v41  ;;  %v4691_v23 = vor.u32 %v5830_v51, %v4688_v56  ;;  %v4670_v40 = vld [vmem:[%s7708_s4 + $0x200] sm:$0xf] }
 0x291   : > { %v7077_v8 = vpop.f32.mrf.mxu1  ;;  %v4671_v0 = vor.u32 %v5827_v62, %v4670_v40  ;;  %v5857_v40 = vld [vmem:[#allocation7 + $0xb8] sm:$0xff]  ;;  %v5840_v62 = vld [vmem:[#allocation7 + $0x30] sm:$0xff] }
 0x292   : > { %1500 = vmatpush.bf16.msrb.mxu0 %v4648_v63 }
 0x293   : > { %v1395_v36 = vpop.f32.mrf.mxu3 }
 0x296   : > { %1501 = vmatpush.bf16.msrb.mxu0 %v4640_v5  ;;  %v4675_v5 = vor.u32 %v5826_v3, %v4672_v4  ;;  %v5837_v3 = vld [vmem:[#allocation7 + $0x18] sm:$0xff] }
 0x297   : > { %v7109_v27 = vpop.f32.mrf.mxu2  ;;  %v5853_v4 = vld [vmem:[#allocation7 + $0x98] sm:$0xff] }
 0x29a   : > { %1502 = vmatpush.bf16.msrb.mxu0 %v4632_v14 }
 0x29b   : > { %v7161_v22 = vpop.f32.mrf.mxu3 }
 0x29e   : > { %4607 = vmatmul.msk.bf16.vlgmr.msrb.gmra.mxu1 %vm662_vm0, %v1333_v33  ;;  %4612 = vmatmul.msk.bf16.vlgmr.msrb.gmra.mxu2 %vm690_vm1, %v7044_v59  ;;  %v5831_v33 = vld [vmem:[%s7708_s4 + $0x224] sm:$0xf0] }
 0x29f   : > { %1503 = vmatpush.bf16.msrb.mxu0 %v4624_v25  ;;  %v4687_v34 = vor.u32 %v5831_v33, %v4686_v31  ;;  %v892_v25 = vadd.f32 %v6887_v13, %v7027_v37  ;;  %v7168_v31 = vld [vmem:[#allocation6] sm:$0x3] }
 0x2a0   : > { %v1641_v49 = vperm.slane %v7168_v31, 1 }
 0x2a1   : > { %1611 = vmatpush.bf16.msra.mxu2 %v4687_v34  ;;  %v1003_v29 = vadd.f32 %v7037_v52, %v892_v25  ;;  %v1640_v34 = vperm.slane %v7168_v31, 0  ;;  %v5881_v25 = vld [vmem:[#allocation7 + $0x178] sm:$0xff] }
 0x2a2   : > { %v6154_v31 = vld [vmem:[#allocation2] sm:$0xff] }
 0x2a3   : > { %1624 = vmatpush.bf16.msra.mxu0 %v4699_v47  ;;  %v1113_v33 = vadd.f32 %v7077_v8, %v1003_v29  ;;  %v5868_v29 = vld [vmem:[#allocation7 + $0x110] sm:$0xff] }
 0x2a5   : > { %1612 = vmatpush.bf16.msra.mxu2 %v4679_v54  ;;  %v1197_v38 = vadd.f32 %v6964_v60, %v1113_v33  ;;  %v5880_v33 = vld [vmem:[#allocation7 + $0x170] sm:$0xff] }
 0x2a7   : > { %1625 = vmatpush.bf16.msra.mxu0 %v4691_v23 }
 0x2a9   : > { %1613 = vmatpush.bf16.msra.mxu2 %v4671_v0  ;;  %v5839_v0 = vld [vmem:[#allocation7 + $0x28] sm:$0xff] }
 0x2ae   : > { %4659 = vmatmul.msk.bf16.vlgmr.msra.gmra.mxu1 %vm690_vm1, %v7049_v9 }
 0x30b   : > { %v1285_v35 = vpop.f32.mrf.mxu1 }
 0x30c   : > { %v1304_v44 = vadd.f32 %v1285_v35, %v1194_v58  ;;  %v1195_v58 = vadd.f32 %v6950_v53, %v7039_v55  ;;  %v4680_v53 = vld [vmem:[%s7708_s4 + $0x218] sm:$0xf0] }
 0x30d   : > { %v4683_v55 = vor.u32 %v5828_v2, %v4680_v53  ;;  %v5847_v2 = vld [vmem:[#allocation7 + $0x68] sm:$0xff]  ;;  %v5838_v53 = vld [vmem:[#allocation7 + $0x20] sm:$0xff] }
 0x30e   : > { %v1414_v57 = vadd.f32 %v1395_v36, %v1304_v44 }
 0x30f   : > { %1626 = vmatpush.bf16.msra.mxu0 %v4683_v55  ;;  %v5846_v55 = vld [vmem:[#allocation7 + $0x60] sm:$0xff] }
 0x311   : > { %v1299_v61 = vpop.f32.mrf.mxu2 }
 0x312   : > { %v1305_v63 = vadd.f32 %v1299_v61, %v1195_v58  ;;  %v5841_v61 = vld [vmem:[#allocation7 + $0x38] sm:$0xff] }
 0x313   : > { %v7143_v1 = vpop.f32.mrf.mxu1  ;;  %1627 = vmatpush.bf16.msra.mxu0 %v4675_v5  ;;  %v5845_v5 = vld [vmem:[#allocation7 + $0x58] sm:$0xff] }
 0x319   : > { %v1301_v6 = vpop.f32.mrf.mxu2 }
 0x31a   : > { %v1307_v44 = vadd.f32 %v1301_v6, %v1197_v38  ;;  %v5836_v6 = vld [vmem:[#allocation7 + $0x10] sm:$0xff]  ;;  %v5878_v38 = vld [vmem:[#allocation7 + $0x160] sm:$0xff] }
 0x31b   : > { %v1409_v7 = vpop.f32.mrf.mxu1 }
 0x31c   : > { %v1415_v10 = vadd.f32 %v1409_v7, %v1305_v63  ;;  %v5856_v63 = vld [vmem:[#allocation7 + $0xb0] sm:$0xff] }
 0x31d   : > { %v5852_v7 = vld [vmem:[#allocation7 + $0x90] sm:$0xff] }
 0x321   : > { %v1438_v11 = vpop.f32.mrf.mxu2 }
 0x323   : > { %v1411_v12 = vpop.f32.mrf.mxu1 }
 0x324   : > { %v1417_v37 = vadd.f32 %v1411_v12, %v1307_v44  ;;  %v5834_v12 = vld [vmem:[#allocation7] sm:$0xff]  ;;  %v5877_v44 = vld [vmem:[#allocation7 + $0x158] sm:$0xff] }
 0x329   : > { %v1440_v14 = vpop.f32.mrf.mxu2 }
 0x32a   : > { %v1443_v15 = vpack.c.bf16 %v1440_v14, %v1438_v11  ;;  %v5851_v11 = vld [vmem:[#allocation7 + $0x88] sm:$0xff]  ;;  %v5873_v14 = vld [vmem:[#allocation7 + $0x138] sm:$0xff] }
 0x32b   : > { %v1548_v16 = vpop.f32.mrf.mxu1 }
 0x32c   : > { %4653 = vmatmul.msk.bf16.vlgmr.msrb.gmra.mxu0 %vm662_vm0, %v1443_v15  ;;  %4654 = vmatmul.msk.bf16.vlgmr.msrb.gmra.mxu3 %vm662_vm0, %v1443_v15  ;;  %v5872_v15 = vld [vmem:[#allocation7 + $0x130] sm:$0xff] }
 0x32d   : > { %1824 = vmatpush.bf16.msrb.mxu0 %v5841_v61 }
 0x331   : > { %1825 = vmatpush.bf16.msrb.mxu0 %v5840_v62 }
 0x333   : > { %v1550_v17 = vpop.f32.mrf.mxu1 }
 0x334   : > { %v1553_v19 = vpack.c.bf16 %v1550_v17, %v1548_v16  ;;  %v5844_v16 = vld [vmem:[#allocation7 + $0x50] sm:$0xff]  ;;  %v5870_v17 = vld [vmem:[#allocation7 + $0x120] sm:$0xff] }
 0x335   : > { %1826 = vmatpush.bf16.msrb.mxu0 %v5839_v0 }
 0x336   : > { %4700 = vmatmul.msk.bf16.vlgmr.msra.gmra.mxu2 %vm662_vm0, %v1553_v19 }
 0x339   : > { %1827 = vmatpush.bf16.msrb.mxu0 %v5838_v53 }
 0x33c   : > { %4701 = vmatmul.msk.bf16.vlgmr.msra.gmra.mxu0 %vm662_vm0, %v1553_v19  ;;  %v5850_v19 = vld [vmem:[#allocation7 + $0x80] sm:$0xff] }
 0x33d   : > { %1828 = vmatpush.bf16.msrb.mxu0 %v5837_v3  ;;  %v5884_v3 = vld [vmem:[#allocation7 + $0x190] sm:$0xff] }
 0x341   : > { %1829 = vmatpush.bf16.msrb.mxu0 %v5836_v6  ;;  %v5882_v6 = vld [vmem:[#allocation7 + $0x180] sm:$0xff] }
 0x3a9   : > { %v1505_v20 = vpop.f32.mrf.mxu0 }
 0x3aa   : > { %v1524_v21 = vadd.f32 %v1505_v20, %v1414_v57  ;;  %v5843_v20 = vld [vmem:[#allocation7 + $0x48] sm:$0xff] }
 0x3af   : > { %v1519_v26 = vpop.f32.mrf.mxu3 }
 0x3b0   : > { %v1525_v47 = vadd.f32 %v1519_v26, %v1415_v10  ;;  %v5835_v10 = vld [vmem:[#allocation7 + $0x8] sm:$0xff]  ;;  %v5842_v26 = vld [vmem:[#allocation7 + $0x40] sm:$0xff] }
 0x3b1   : > { %v7163_v24 = vpop.f32.mrf.mxu0  ;;  %1830 = vmatpush.bf16.msrb.mxu0 %v5835_v10 }
 0x3b5   : > { %1831 = vmatpush.bf16.msrb.mxu0 %v5834_v12 }
 0x3b7   : > { %v1521_v13 = vpop.f32.mrf.mxu3 }
 0x3b8   : > { %v1527_v51 = vadd.f32 %v1521_v13, %v1417_v37  ;;  %v5876_v13 = vld [vmem:[#allocation7 + $0x150] sm:$0xff]  ;;  %v5863_v37 = vld [vmem:[#allocation7 + $0xe8] sm:$0xff] }
 0x3b9   : > { %v1615_v35 = vpop.f32.mrf.mxu2  ;;  %v1629_v36 = vpop.f32.mrf.mxu0  ;;  %2095 = vmatpush.bf16.msra.mxu0 %v5873_v14 }
 0x3ba   : > { %v1634_v41 = vadd.f32 %v1615_v35, %v1524_v21  ;;  %v1635_v52 = vadd.f32 %v1629_v36, %v1525_v47  ;;  %v5869_v21 = vld [vmem:[#allocation7 + $0x118] sm:$0xff]  ;;  %v5879_v35 = vld [vmem:[#allocation7 + $0x168] sm:$0xff]  ;;  %v5866_v36 = vld [vmem:[#allocation7 + $0x100] sm:$0xff] }
 0x3bb   : > { %v5864_v47 = vld [vmem:[#allocation7 + $0xf0] sm:$0xff] }
 0x3bc   : > { %v7175_v48 = vadd.f32 %v1640_v34, %v1634_v41  ;;  %v1645_v54 = vadd.f32 %v1641_v49, %v1635_v52  ;;  %v5865_v41 = vld [vmem:[#allocation7 + $0xf8] sm:$0xff]  ;;  %v5875_v52 = vld [vmem:[#allocation7 + $0x148] sm:$0xff] }
 0x3bd   : > { %2096 = vmatpush.bf16.msra.mxu0 %v5872_v15 }
 0x3be   : > { %v1648_v23 = vmax.f32 %v1645_v54, 0.0  ;;  %v5861_v54 = vld [vmem:[#allocation7 + $0xd8] sm:$0xff] }
 0x3c1   : > { %v1631_v8 = vpop.f32.mrf.mxu0 }
 0x3c2   : > { %v1637_v56 = vadd.f32 %v1631_v8, %v1527_v51  ;;  %v5874_v51 = vld [vmem:[#allocation7 + $0x140] sm:$0xff] }
 0x3c4   : > { %v1647_v57 = vadd.f32 %v1641_v49, %v1637_v56  ;;  %v5862_v49 = vld [vmem:[#allocation7 + $0xe0] sm:$0xff]  ;;  %v5860_v56 = vld [vmem:[#allocation7 + $0xd0] sm:$0xff] }
 0x3c6   : > { %v1649_v58 = vmax.f32 %v1647_v57, 0.0 }
 0x3c8   : > { %v7178_v60 = vpack.c.bf16 %v1649_v58, %v1648_v23  ;;  %v5859_v58 = vld [vmem:[#allocation7 + $0xc8] sm:$0xff] }
 0x3ca   : > { %1658 = vmatpush.bf16.msra.mxu3 %v7178_v60  ;;  %1689 = vmatpush.bf16.msrb.mxu1 %v7178_v60 }
 0x3cd   : > { %4702 = vmatmul.msk.bf16.vlgmr.msra.gmra.mxu3 %vm690_vm1, %v6689_v42  ;;  %4703 = vmatmul.msk.bf16.vlgmr.msrb.gmra.mxu1 %vm690_vm1, %v6691_v43  ;;  %v5849_v42 = vld [vmem:[#allocation7 + $0x78] sm:$0xff]  ;;  %v5848_v43 = vld [vmem:[#allocation7 + $0x70] sm:$0xff] }
 0x3ce   : > { %1845 = vmatpush.bf16.msrb.mxu3 %v7178_v60  ;;  %1918 = vmatpush.bf16.msra.mxu1 %v5857_v40  ;;  %v5858_v40 = vld [vmem:[#allocation7 + $0xc0] sm:$0xff] }
 0x3cf   : > { %1762 = vmatpush.bf16.msrb.mxu2 %v5849_v42 }
 0x3d2   : > { %1941 = vmatpush.bf16.msra.mxu3 %v7178_v60  ;;  %1919 = vmatpush.bf16.msra.mxu1 %v5856_v63  ;;  %v5889_v63 = vld [vmem:[#allocation7 + $0x1b8] sm:$0xff] }
 0x3d3   : > { %1763 = vmatpush.bf16.msrb.mxu2 %v5848_v43  ;;  %v5888_v43 = vld [vmem:[#allocation7 + $0x1b0] sm:$0xff] }
 0x3d7   : > { %1764 = vmatpush.bf16.msrb.mxu2 %v5847_v2  ;;  %v5886_v2 = vld [vmem:[#allocation7 + $0x1a0] sm:$0xff] }
 0x3db   : > { %1765 = vmatpush.bf16.msrb.mxu2 %v5846_v55  ;;  %v5885_v55 = vld [vmem:[#allocation7 + $0x198] sm:$0xff] }
 0x3dd   : > { %4768 = vmatmul.msk.bf16.vlgmr.msrb.gmra.mxu3 %vm690_vm1, %v6800_v32  ;;  %v5855_v32 = vld [vmem:[#allocation7 + $0xa8] sm:$0xff] }
 0x3de   : > { %2118 = vmatpush.bf16.msrb.mxu3 %v7178_v60  ;;  %1920 = vmatpush.bf16.msra.mxu1 %v5855_v32  ;;  %v5887_v32 = vld [vmem:[#allocation7 + $0x1a8] sm:$0xff] }
 0x3df   : > { %1766 = vmatpush.bf16.msrb.mxu2 %v5845_v5  ;;  %v5883_v5 = vld [vmem:[#allocation7 + $0x188] sm:$0xff] }
 0x3e3   : > { %1767 = vmatpush.bf16.msrb.mxu2 %v5844_v16  ;;  %v5897_v16 = vld [vmem:[#allocation7 + $0x1f8] sm:$0xff] }
 0x3e7   : > { %1768 = vmatpush.bf16.msrb.mxu2 %v5843_v20  ;;  %v5894_v20 = vld [vmem:[#allocation7 + $0x1e0] sm:$0xff] }
 0x3eb   : > { %1769 = vmatpush.bf16.msrb.mxu2 %v5842_v26  ;;  %v5891_v26 = vld [vmem:[#allocation7 + $0x1c8] sm:$0xff] }
 0x3ed   : > { %4801 = vmatmul.msk.bf16.vlgmr.msra.gmra.mxu3 %vm690_vm1, %v6789_v28  ;;  %v5854_v28 = vld [vmem:[#allocation7 + $0xa0] sm:$0xff] }
 0x3ee   : > { %2214 = vmatpush.bf16.msra.mxu3 %v7178_v60  ;;  %1921 = vmatpush.bf16.msra.mxu1 %v5854_v28 }
 0x3ef   : > { %2014 = vmatpush.bf16.msra.mxu2 %v5865_v41 }
 0x3f2   : > { %1922 = vmatpush.bf16.msra.mxu1 %v5853_v4 }
 0x3f3   : > { %2015 = vmatpush.bf16.msra.mxu2 %v5864_v47 }
 0x3f6   : > { %1923 = vmatpush.bf16.msra.mxu1 %v5852_v7 }
 0x3f7   : > { %2016 = vmatpush.bf16.msra.mxu2 %v5863_v37 }
 0x3fa   : > { %1924 = vmatpush.bf16.msra.mxu1 %v5851_v11 }
 0x3fb   : > { %2017 = vmatpush.bf16.msra.mxu2 %v5862_v49  ;;  %v5902_v49 = vld [vmem:[#allocation7 + $0x220] sm:$0xff] }
 0x3fd   : > { %4866 = vmatmul.msk.bf16.vlgmr.msrb.gmra.mxu3 %vm690_vm1, %v6930_v45  ;;  %v5871_v45 = vld [vmem:[#allocation7 + $0x128] sm:$0xff] }
 0x3fe   : > { %2097 = vmatpush.bf16.msra.mxu0 %v5871_v45  ;;  %1925 = vmatpush.bf16.msra.mxu1 %v5850_v19  ;;  %v5895_v19 = vld [vmem:[#allocation7 + $0x1e8] sm:$0xff] }
 0x3ff   : > { %2018 = vmatpush.bf16.msra.mxu2 %v5861_v54  ;;  %2383 = vmatpush.bf16.msrb.mxu3 %v5897_v16 }
 0x402   : > { %2098 = vmatpush.bf16.msra.mxu0 %v5870_v17  ;;  %2191 = vmatpush.bf16.msrb.mxu1 %v5881_v25  ;;  %v5896_v17 = vld [vmem:[#allocation7 + $0x1f0] sm:$0xff] }
 0x403   : > { %2019 = vmatpush.bf16.msra.mxu2 %v5860_v56  ;;  %2384 = vmatpush.bf16.msrb.mxu3 %v5896_v17  ;;  %v5901_v56 = vld [vmem:[#allocation7 + $0x218] sm:$0xff]  ;;  %v5935_v17 = vld [vmem:[%s7712_s8 + $0xec] sm:$0xf] }
 0x406   : > { %2099 = vmatpush.bf16.msra.mxu0 %v5869_v21  ;;  %2192 = vmatpush.bf16.msrb.mxu1 %v5880_v33  ;;  %v5892_v21 = vld [vmem:[#allocation7 + $0x1d0] sm:$0xff]  ;;  %v5890_v33 = vld [vmem:[#allocation7 + $0x1c0] sm:$0xff] }
 0x407   : > { %2020 = vmatpush.bf16.msra.mxu2 %v5859_v58  ;;  %2385 = vmatpush.bf16.msrb.mxu3 %v5895_v19  ;;  %v5899_v58 = vld [vmem:[#allocation7 + $0x208] sm:$0xff]  ;;  %v5122_v19 = vld [vmem:[%s7712_s8 + $0xf8] sm:$0xf0] }
 0x40a   : > { %2100 = vmatpush.bf16.msra.mxu0 %v5868_v29  ;;  %2193 = vmatpush.bf16.msrb.mxu1 %v5879_v35  ;;  %v7205_v29 = vpop.f32.mrf.mxu2  ;;  %v5905_v35 = vld [vmem:[#allocation7 + $0x238] sm:$0xff] }
 0x40b   : > { %2021 = vmatpush.bf16.msra.mxu2 %v5858_v40  ;;  %2386 = vmatpush.bf16.msrb.mxu3 %v5894_v20  ;;  %v5096_v20 = vld [vmem:[%s7712_s8 + $0xc0] sm:$0xf] }
 0x40d   : > { %4899 = vmatmul.msk.bf16.vlgmr.msra.gmra.mxu3 %vm690_vm1, %v6895_v18  ;;  %v5867_v18 = vld [vmem:[#allocation7 + $0x108] sm:$0xff] }
 0x40e   : > { %2101 = vmatpush.bf16.msra.mxu0 %v5867_v18  ;;  %2194 = vmatpush.bf16.msrb.mxu1 %v5878_v38  ;;  %v5904_v38 = vld [vmem:[#allocation7 + $0x230] sm:$0xff] }
 0x412   : > { %2102 = vmatpush.bf16.msra.mxu0 %v5866_v36  ;;  %2195 = vmatpush.bf16.msrb.mxu1 %v5877_v44 }
 0x416   : > { %2196 = vmatpush.bf16.msrb.mxu1 %v5876_v13  ;;  %v5903_v13 = vld [vmem:[#allocation7 + $0x228] sm:$0xff] }
 0x41a   : > { %2197 = vmatpush.bf16.msrb.mxu1 %v5875_v52 }
 0x41e   : > { %2198 = vmatpush.bf16.msrb.mxu1 %v5874_v51 }
 0x44a   : > { %v1691_v8 = vpop.f32.mrf.mxu1 }
 0x450   : > { %v1660_v57 = vpop.f32.mrf.mxu3 }
 0x452   : > { %v1693_v23 = vpop.f32.mrf.mxu1 }
 0x453   : > { %v1696_v61 = vpack.c.bf16 %v1693_v23, %v1691_v8 }
 0x455   : > { %1770 = vmatmul.bf16.vlgmr.msrb.gmra.mxu2 %v1696_v61 }
 0x456   : > { %2287 = vmatpush.bf16.msrb.mxu2 %v5889_v63 }
 0x458   : > { %v1662_v62 = vpop.f32.mrf.mxu3 }
 0x459   : > { %v1665_v42 = vpack.c.bf16 %v1662_v62, %v1660_v57  ;;  %v5900_v57 = vld [vmem:[#allocation7 + $0x210] sm:$0xff]  ;;  %v5898_v62 = vld [vmem:[#allocation7 + $0x200] sm:$0xff] }
 0x45a   : > { %2288 = vmatpush.bf16.msrb.mxu2 %v5888_v43 }
 0x45b   : > { %1832 = vmatmul.bf16.vlgmr.msrb.gmra.mxu0 %v1665_v42 }
 0x45c   : > { %2310 = vmatpush.bf16.msrb.mxu0 %v7178_v60 }
 0x45e   : > { %2289 = vmatpush.bf16.msrb.mxu2 %v5887_v32 }
 0x460   : > { %v1847_v0 = vpop.f32.mrf.mxu3 }
 0x462   : > { %2290 = vmatpush.bf16.msrb.mxu2 %v5886_v2 }
 0x466   : > { %2291 = vmatpush.bf16.msrb.mxu2 %v5885_v55 }
 0x468   : > { %v1849_v53 = vpop.f32.mrf.mxu3 }
 0x469   : > { %v1852_v28 = vpack.c.bf16 %v1849_v53, %v1847_v0 }
 0x46a   : > { %2292 = vmatpush.bf16.msrb.mxu2 %v5884_v3 }
 0x46b   : > { %1926 = vmatmul.bf16.vlgmr.msra.gmra.mxu1 %v1852_v28  ;;  %2103 = vmatmul.bf16.vlgmr.msra.gmra.mxu0 %v7178_v60 }
 0x46c   : > { %2406 = vmatpush.bf16.msra.mxu1 %v7178_v60  ;;  %2479 = vmatpush.bf16.msra.mxu0 %v5905_v35  ;;  %v5933_v35 = vld [vmem:[%s7712_s8 + $0xd4] sm:$0xf0] }
 0x46e   : > { %2293 = vmatpush.bf16.msrb.mxu2 %v5883_v5 }
 0x470   : > { %v1943_v4 = vpop.f32.mrf.mxu3  ;;  %2480 = vmatpush.bf16.msra.mxu0 %v5904_v38 }
 0x472   : > { %2294 = vmatpush.bf16.msrb.mxu2 %v5882_v6 }
 0x474   : > { %2481 = vmatpush.bf16.msra.mxu0 %v5903_v13 }
 0x478   : > { %v1945_v7 = vpop.f32.mrf.mxu3  ;;  %2482 = vmatpush.bf16.msra.mxu0 %v5902_v49  ;;  %v5088_v49 = vld [vmem:[%s7712_s8 + $0xa8] sm:$0xf] }
 0x479   : > { %v1948_v10 = vpack.c.bf16 %v1945_v7, %v1943_v4  ;;  %v5112_v7 = vld [vmem:[%s7712_s8 + $0xe0] sm:$0xf] }
 0x47b   : > { %2022 = vmatmul.bf16.vlgmr.msra.gmra.mxu2 %v1948_v10  ;;  %4932 = vmatmul.msk.bf16.vlgmr.msrb.gmra.mxu0 %vm690_vm1, %v7044_v59  ;;  %v5893_v59 = vld [vmem:[#allocation7 + $0x1d8] sm:$0xff]  ;;  %v5936_v10 = vld [vmem:[%s7712_s8 + $0xec] sm:$0xf0] }
 0x47c   : > { %2387 = vmatpush.bf16.msrb.mxu3 %v5893_v59  ;;  %2483 = vmatpush.bf16.msra.mxu0 %v5901_v56  ;;  %v5125_v59 = vor.u32 %v5935_v17, %v5122_v19  ;;  %v5090_v56 = vld [vmem:[%s7712_s8 + $0xb8] sm:$0xf0]  ;;  %v5032_v19 = vld [vmem:[%s7712_s8 + $0x40] sm:$0xf] }
 0x480   : > { %v2120_v11 = vpop.f32.mrf.mxu3  ;;  %2388 = vmatpush.bf16.msrb.mxu3 %v5892_v21  ;;  %2484 = vmatpush.bf16.msra.mxu0 %v5900_v57  ;;  %v5932_v21 = vld [vmem:[%s7712_s8 + $0xcc] sm:$0xf0] }
 0x484   : > { %2389 = vmatpush.bf16.msrb.mxu3 %v5891_v26  ;;  %2485 = vmatpush.bf16.msra.mxu0 %v5899_v58  ;;  %v5098_v26 = vld [vmem:[%s7712_s8 + $0xd0] sm:$0xf0] }
 0x488   : > { %v2122_v12 = vpop.f32.mrf.mxu3  ;;  %2390 = vmatpush.bf16.msrb.mxu3 %v5890_v33  ;;  %2486 = vmatpush.bf16.msra.mxu0 %v5898_v62  ;;  %v5097_v33 = vor.u32 %v5932_v21, %v5096_v20  ;;  %v5922_v62 = vld [vmem:[%s7712_s8 + $0x84] sm:$0xf]  ;;  %v5916_v20 = vld [vmem:[%s7712_s8 + $0x4c] sm:$0xf0] }
 0x489   : > { %v2125_v14 = vpack.c.bf16 %v2122_v12, %v2120_v11  ;;  %v5934_v11 = vld [vmem:[%s7712_s8 + $0xe4] sm:$0xf]  ;;  %v5113_v12 = vor.u32 %v5936_v10, %v5112_v7  ;;  %v5033_v21 = vor.u32 %v5916_v20, %v5032_v19  ;;  %v6152_v19 = vld [vmem:[#allocation9] ss:$0 sm:$0xff] }
 0x48a   : > { %v5918_v7 = vld [vmem:[%s7712_s8 + $0x64] sm:$0xf] }
 0x48b   : > { %2199 = vmatmul.bf16.vlgmr.msrb.gmra.mxu1 %v2125_v14  ;;  %v5114_v14 = vld [vmem:[%s7712_s8 + $0xf0] sm:$0xf0] }
 0x48c   : > { %2708 = vmatpush.bf16.msrb.mxu1 %v5113_v12  ;;  %2750 = vmatpush.bf16.msrb.mxu0 %v5125_v59  ;;  %v5056_v12 = vld [vmem:[%s7712_s8 + $0x68] sm:$0xf]  ;;  %v5914_v59 = vld [vmem:[%s7712_s8 + $0x44] sm:$0xf] }
 0x490   : > { %v2216_v15 = vpop.f32.mrf.mxu3  ;;  %2709 = vmatpush.bf16.msrb.mxu1 %v5097_v33  ;;  %v5917_v33 = vld [vmem:[%s7712_s8 + $0x54] sm:$0xf0] }
 0x498   : > { %v2218_v60 = vpop.f32.mrf.mxu3 }
 0x499   : > { %v2221_v45 = vpack.c.bf16 %v2218_v60, %v2216_v15  ;;  %v5120_v15 = vld [vmem:[%s7712_s8 + $0xe8] sm:$0xf]  ;;  %v5937_v60 = vld [vmem:[%s7712_s8 + $0xf4] sm:$0xf0] }
 0x49a   : > { %v5121_v16 = vor.u32 %v5937_v60, %v5120_v15  ;;  %v5921_v15 = vld [vmem:[%s7712_s8 + $0x74] sm:$0xf0]  ;;  %v5919_v60 = vld [vmem:[%s7712_s8 + $0x6c] sm:$0xf] }
 0x49b   : > { %2295 = vmatmul.bf16.vlgmr.msrb.gmra.mxu2 %v2221_v45  ;;  %4965 = vmatmul.msk.bf16.vlgmr.msra.gmra.mxu1 %vm690_vm1, %v7049_v9  ;;  %v5117_v45 = vor.u32 %v5934_v11, %v5114_v14  ;;  %v5050_v11 = vld [vmem:[%s7712_s8 + $0x70] sm:$0xf0] }
 0x49c   : > { %2736 = vmatpush.bf16.msra.mxu3 %v5121_v16  ;;  %v5053_v14 = vor.u32 %v5918_v7, %v5050_v11  ;;  %v5057_v16 = vor.u32 %v5921_v15, %v5056_v12 }
 0x49d   : > { %2722 = vmatpush.bf16.msra.mxu2 %v5117_v45  ;;  %v5058_v45 = vld [vmem:[%s7712_s8 + $0x78] sm:$0xf0] }
 0x49e   : > { %v5061_v17 = vor.u32 %v5919_v60, %v5058_v45 }
 0x4d8   : > { %v1833_v25 = vpop.f32.mrf.mxu0  ;;  %v1771_v9 = vpop.f32.mrf.mxu2 }
 0x4d9   : > { %v1834_v36 = vadd.f32 %v1833_v25, %v1771_v9  ;;  %v5930_v25 = vld [vmem:[%s7712_s8 + $0xc4] sm:$0xf]  ;;  %v5104_v9 = vld [vmem:[%s7712_s8 + $0xc8] sm:$0xf] }
 0x4da   : > { %v5105_v38 = vor.u32 %v5933_v35, %v5104_v9  ;;  %v5915_v35 = vld [vmem:[%s7712_s8 + $0x4c] sm:$0xf] }
 0x4dc   : > { %2737 = vmatpush.bf16.msra.mxu3 %v5105_v38 }
 0x4e0   : > { %v1835_v18 = vpop.f32.mrf.mxu0  ;;  %v1773_v37 = vpop.f32.mrf.mxu2 }
 0x4e1   : > { %v1836_v52 = vadd.f32 %v1835_v18, %v1773_v37  ;;  %v5101_v18 = vor.u32 %v5930_v25, %v5098_v26  ;;  %v5926_v37 = vld [vmem:[%s7712_s8 + $0xa4] sm:$0xf]  ;;  %v5034_v25 = vld [vmem:[%s7712_s8 + $0x50] sm:$0xf0]  ;;  %v5040_v26 = vld [vmem:[%s7712_s8 + $0x48] sm:$0xf] }
 0x4e2   : > { %v5041_v9 = vor.u32 %v5917_v33, %v5040_v26  ;;  %v5944_v33 = vld [vmem:[%s7714_s10 + $0x30] sm:$0xff] }
 0x4e3   : > { %2723 = vmatpush.bf16.msra.mxu2 %v5101_v18  ;;  %v5037_v18 = vor.u32 %v5914_v59, %v5034_v25 }
 0x4e8   : > { %v1927_v41 = vpop.f32.mrf.mxu1  ;;  %v2104_v44 = vpop.f32.mrf.mxu0 }
 0x4e9   : > { %v1932_v47 = vadd.f32 %v1927_v41, %v1834_v36  ;;  %v5931_v36 = vld [vmem:[%s7712_s8 + $0xcc] sm:$0xf]  ;;  %v5106_v41 = vld [vmem:[%s7712_s8 + $0xd8] sm:$0xf0] }
 0x4ea   : > { %v5109_v13 = vor.u32 %v5931_v36, %v5106_v41  ;;  %v5042_v36 = vld [vmem:[%s7712_s8 + $0x58] sm:$0xf0]  ;;  %v5016_v41 = vld [vmem:[%s7712_s8 + $0x20] sm:$0xf] }
 0x4eb   : > { %v5045_v38 = vor.u32 %v5915_v35, %v5042_v36  ;;  %v5943_v35 = vld [vmem:[%s7714_s10 + $0x28] sm:$0xff] }
 0x4ec   : > { %2751 = vmatpush.bf16.msrb.mxu0 %v5109_v13  ;;  %v5959_v36 = vld [vmem:[%s7714_s10 + $0xa8] sm:$0xff] }
 0x4f0   : > { %v1929_v51 = vpop.f32.mrf.mxu1  ;;  %v2106_v8 = vpop.f32.mrf.mxu0 }
 0x4f1   : > { %v1933_v54 = vadd.f32 %v1929_v51, %v1836_v52  ;;  %v5082_v52 = vld [vmem:[%s7712_s8 + $0xb0] sm:$0xf0] }
 0x4f2   : > { %v5085_v57 = vor.u32 %v5926_v37, %v5082_v52  ;;  %v5018_v37 = vld [vmem:[%s7712_s8 + $0x30] sm:$0xf0]  ;;  %v5024_v52 = vld [vmem:[%s7712_s8 + $0x28] sm:$0xf] }
 0x4f4   : > { %2724 = vmatpush.bf16.msra.mxu2 %v5085_v57 }
 0x4f8   : > { %v2312_v23 = vpop.f32.mrf.mxu0 }
 0x4fe   : > { %v2023_v61 = vpop.f32.mrf.mxu2 }
 0x4ff   : > { %v2028_v40 = vadd.f32 %v2023_v61, %v1932_v47  ;;  %v5928_v47 = vld [vmem:[%s7712_s8 + $0xac] sm:$0xf0]  ;;  %v5064_v61 = vld [vmem:[%s7712_s8 + $0x80] sm:$0xf] }
 0x500   : > { %v2314_v42 = vpop.f32.mrf.mxu0 }
 0x501   : > { %v2317_v63 = vpack.c.bf16 %v2314_v42, %v2312_v23  ;;  %v2109_v43 = vadd.f32 %v2104_v44, %v2028_v40  ;;  %v5080_v44 = vld [vmem:[%s7712_s8 + $0xa0] sm:$0xf]  ;;  %v5924_v40 = vld [vmem:[%s7712_s8 + $0x8c] sm:$0xf0] }
 0x502   : > { %v5081_v51 = vor.u32 %v5928_v47, %v5080_v44  ;;  %v5065_v42 = vor.u32 %v5924_v40, %v5064_v61  ;;  %v5912_v44 = vld [vmem:[%s7712_s8 + $0x2c] sm:$0xf0]  ;;  %v5910_v47 = vld [vmem:[%s7712_s8 + $0x24] sm:$0xf] }
 0x503   : > { %2391 = vmatmul.bf16.vlgmr.msrb.gmra.mxu3 %v2317_v63  ;;  %v5066_v63 = vld [vmem:[%s7712_s8 + $0x90] sm:$0xf0]  ;;  %v5017_v13 = vor.u32 %v5912_v44, %v5016_v41  ;;  %v5906_v61 = vld [vmem:[%s7712_s8 + $0x4] sm:$0xf]  ;;  %v5941_v41 = vld [vmem:[%s7714_s10 + $0x18] sm:$0xff] }
 0x504   : > { %2710 = vmatpush.bf16.msrb.mxu1 %v5081_v51  ;;  %v5021_v51 = vor.u32 %v5910_v47, %v5018_v37  ;;  %v6158_v44 = vld [vmem:[#allocation2 + $0x28] sm:$0xff]  ;;  %v5940_v47 = vld [vmem:[%s7714_s10 + $0x10] sm:$0xff]  ;;  %v5938_v37 = vld [vmem:[%s7714_s10] sm:$0xff] }
 0x506   : > { %v2025_v0 = vpop.f32.mrf.mxu2 }
 0x507   : > { %v2029_v32 = vadd.f32 %v2025_v0, %v1933_v54  ;;  %v5927_v54 = vld [vmem:[%s7712_s8 + $0xac] sm:$0xf]  ;;  %v5925_v0 = vld [vmem:[%s7712_s8 + $0x94] sm:$0xf0] }
 0x508   : > { %v2200_v2 = vpop.f32.mrf.mxu1  ;;  %v5093_v58 = vor.u32 %v5927_v54, %v5090_v56  ;;  %2711 = vmatpush.bf16.msrb.mxu1 %v5065_v42  ;;  %v5911_v54 = vld [vmem:[%s7712_s8 + $0x2c] sm:$0xf]  ;;  %v5026_v56 = vld [vmem:[%s7712_s8 + $0x38] sm:$0xf0]  ;;  %v5008_v42 = vld [vmem:[%s7712_s8 + $0x8] sm:$0xf] }
 0x509   : > { %v7207_v53 = vadd.f32 %v2200_v2, %v2109_v43  ;;  %v2110_v28 = vadd.f32 %v2106_v8, %v2029_v32  ;;  %v5929_v8 = vld [vmem:[%s7712_s8 + $0xb4] sm:$0xf0]  ;;  %v5072_v43 = vld [vmem:[%s7712_s8 + $0x88] sm:$0xf]  ;;  %v5069_v32 = vor.u32 %v5922_v62, %v5066_v63  ;;  %v5029_v57 = vor.u32 %v5911_v54, %v5026_v56  ;;  %v5002_v62 = vld [vmem:[%s7712_s8 + $0x10] sm:$0xf0] }
 0x50a   : > { %v5089_v23 = vor.u32 %v5929_v8, %v5088_v49  ;;  %2752 = vmatpush.bf16.msrb.mxu0 %v5093_v58  ;;  %v5073_v2 = vor.u32 %v5925_v0, %v5072_v43  ;;  %v5913_v49 = vld [vmem:[%s7712_s8 + $0x34] sm:$0xf0]  ;;  %v5908_v58 = vld [vmem:[%s7712_s8 + $0xc] sm:$0xf0]  ;;  %v5005_v43 = vor.u32 %v5906_v61, %v5002_v62  ;;  %v5958_v54 = vld [vmem:[%s7714_s10 + $0xa0] sm:$0xff] }
 0x50b   : > { %2725 = vmatpush.bf16.msra.mxu2 %v5069_v32  ;;  %v5025_v8 = vor.u32 %v5913_v49, %v5024_v52  ;;  %v5909_v63 = vld [vmem:[%s7712_s8 + $0x14] sm:$0xf0]  ;;  %v5907_v32 = vld [vmem:[%s7712_s8 + $0xc] sm:$0xf]  ;;  %v6159_v49 = vld [vmem:[#allocation2 + $0x30] sm:$0xff] }
 0x50c   : > { %2738 = vmatpush.bf16.msra.mxu3 %v5089_v23  ;;  %v5000_v23 = vld [vmem:[%s7712_s8] sm:$0xf]  ;;  %v5009_v0 = vor.u32 %v5909_v63, %v5008_v42  ;;  %v5977_v52 = vld [vmem:[%s7714_s10 + $0x138] sm:$0xff]  ;;  %v5952_v56 = vld [vmem:[%s7714_s10 + $0x70] sm:$0xff] }
 0x50d   : > { %v5001_v40 = vor.u32 %v5908_v58, %v5000_v23  ;;  %v5957_v23 = vld [vmem:[%s7714_s10 + $0x98] sm:$0xff]  ;;  %v5951_v58 = vld [vmem:[%s7714_s10 + $0x68] sm:$0xff]  ;;  %v5974_v61 = vld [vmem:[%s7714_s10 + $0x120] sm:$0xff] }
 0x50e   : > { %v5950_v62 = vld [vmem:[%s7714_s10 + $0x60] sm:$0xff]  ;;  %v5973_v42 = vld [vmem:[%s7714_s10 + $0x118] sm:$0xff]  ;;  %v5955_v63 = vld [vmem:[%s7714_s10 + $0x88] sm:$0xff] }
 0x50f   : > { %2726 = vmatpush.bf16.msra.mxu2 %v5053_v14 }
 0x510   : > { %v2202_v55 = vpop.f32.mrf.mxu1  ;;  %2739 = vmatpush.bf16.msra.mxu3 %v5073_v2  ;;  %v5010_v2 = vld [vmem:[%s7712_s8 + $0x18] sm:$0xf0] }
 0x511   : > { %v7209_v3 = vadd.f32 %v2202_v55, %v2110_v28  ;;  %v5923_v28 = vld [vmem:[%s7712_s8 + $0x8c] sm:$0xf]  ;;  %v5074_v55 = vld [vmem:[%s7712_s8 + $0x98] sm:$0xf0] }
 0x513   : > { %2727 = vmatpush.bf16.msra.mxu2 %v5037_v18  ;;  %v5961_v18 = vld [vmem:[%s7714_s10 + $0xb8] sm:$0xff] }
 0x514   : > { %2740 = vmatpush.bf16.msra.mxu3 %v5057_v16 }
 0x517   : > { %2728 = vmatpush.bf16.msra.mxu2 %v5021_v51  ;;  %v5953_v51 = vld [vmem:[%s7714_s10 + $0x78] sm:$0xff] }
 0x518   : > { %v2408_v4 = vpop.f32.mrf.mxu1  ;;  %2741 = vmatpush.bf16.msra.mxu3 %v5041_v9  ;;  %v5960_v9 = vld [vmem:[%s7714_s10 + $0xb0] sm:$0xff] }
 0x51b   : > { %2729 = vmatpush.bf16.msra.mxu2 %v5005_v43  ;;  %v5949_v43 = vld [vmem:[%s7714_s10 + $0x58] sm:$0xff] }
 0x51c   : > { %2742 = vmatpush.bf16.msra.mxu3 %v5025_v8  ;;  %v5976_v8 = vld [vmem:[%s7714_s10 + $0x130] sm:$0xff] }
 0x520   : > { %v2410_v5 = vpop.f32.mrf.mxu1  ;;  %2743 = vmatpush.bf16.msra.mxu3 %v5009_v0  ;;  %v5972_v0 = vld [vmem:[%s7714_s10 + $0x110] sm:$0xff] }
 0x521   : > { %v2413_v6 = vpack.c.bf16 %v2410_v5, %v2408_v4  ;;  %v5077_v4 = vor.u32 %v5923_v28, %v5074_v55  ;;  %v5048_v5 = vld [vmem:[%s7712_s8 + $0x60] sm:$0xf]  ;;  %v5013_v28 = vor.u32 %v5907_v32, %v5010_v2  ;;  %v878_v55 = vadd.f32 %v7029_v39, %v6913_v30  ;;  %v5985_v2 = vld [vmem:[%s7714_s10 + $0x178] sm:$0xff] }
 0x522   : > { %v5954_v32 = vld [vmem:[%s7714_s10 + $0x80] sm:$0xff] }
 0x523   : > { %2487 = vmatmul.bf16.vlgmr.msra.gmra.mxu0 %v2413_v6  ;;  %v5920_v6 = vld [vmem:[%s7712_s8 + $0x6c] sm:$0xf0] }
 0x524   : > { %2753 = vmatpush.bf16.msrb.mxu0 %v5077_v4  ;;  %v5049_v10 = vor.u32 %v5920_v6, %v5048_v5  ;;  %v1002_v4 = vadd.f32 %v7035_v50, %v878_v55  ;;  %v2296_v5 = vpop.f32.mrf.mxu2  ;;  %2875 = vmatpush.bf16.msrb.mxu3 %v5953_v51  ;;  %v5971_v55 = vld [vmem:[%s7714_s10 + $0x108] sm:$0xff] }
 0x525   : > { %v2301_v12 = vadd.f32 %v2296_v5, %v7207_v53  ;;  %v5947_v5 = vld [vmem:[%s7714_s10 + $0x48] sm:$0xff] }
 0x526   : > { %2712 = vmatpush.bf16.msrb.mxu1 %v5049_v10  ;;  %v1112_v6 = vadd.f32 %v7032_v46, %v1002_v4  ;;  %v5984_v4 = vld [vmem:[%s7714_s10 + $0x170] sm:$0xff] }
 0x528   : > { %2754 = vmatpush.bf16.msrb.mxu0 %v5061_v17  ;;  %v1196_v10 = vadd.f32 %v7109_v27, %v1112_v6  ;;  %2876 = vmatpush.bf16.msrb.mxu3 %v5952_v56  ;;  %v5970_v6 = vld [vmem:[%s7714_s10 + $0x100] sm:$0xff] }
 0x529   : > { %v6161_v56 = vld [vmem:[#allocation2 + $0x40] sm:$0xff] }
 0x52a   : > { %2713 = vmatpush.bf16.msrb.mxu1 %v5033_v21  ;;  %v1306_v11 = vadd.f32 %v7143_v1, %v1196_v10  ;;  %v5946_v10 = vld [vmem:[%s7714_s10 + $0x40] sm:$0xff] }
 0x52c   : > { %2755 = vmatpush.bf16.msrb.mxu0 %v5045_v38  ;;  %v1416_v60 = vadd.f32 %v7161_v22, %v1306_v11  ;;  %v2298_v30 = vpop.f32.mrf.mxu2  ;;  %v5942_v38 = vld [vmem:[%s7714_s10 + $0x20] sm:$0xff]  ;;  %2877 = vmatpush.bf16.msrb.mxu3 %v5951_v58  ;;  %v5999_v58 = vld [vmem:[%s7714_s10 + $0x1e8] sm:$0xff] }
 0x52d   : > { %v2302_v17 = vadd.f32 %v2298_v30, %v7209_v3  ;;  %v5945_v3 = vld [vmem:[%s7714_s10 + $0x38] sm:$0xff]  ;;  %v5982_v11 = vld [vmem:[%s7714_s10 + $0x160] sm:$0xff]  ;;  %v5980_v30 = vld [vmem:[%s7714_s10 + $0x150] sm:$0xff] }
 0x52e   : > { %2714 = vmatpush.bf16.msrb.mxu1 %v5017_v13  ;;  %v1526_v39 = vadd.f32 %v7163_v24, %v1416_v60  ;;  %v5939_v13 = vld [vmem:[%s7714_s10 + $0x8] sm:$0xff] }
 0x530   : > { %2756 = vmatpush.bf16.msrb.mxu0 %v5029_v57  ;;  %v1636_v46 = vadd.f32 %v7205_v29, %v1526_v39  ;;  %v6157_v29 = vld [vmem:[#allocation2 + $0x18] sm:$0xff]  ;;  %v5975_v57 = vld [vmem:[%s7714_s10 + $0x128] sm:$0xff]  ;;  %2878 = vmatpush.bf16.msrb.mxu3 %v5950_v62 }
 0x532   : > { %2715 = vmatpush.bf16.msrb.mxu1 %v5001_v40  ;;  %v1646_v53 = vadd.f32 %v1640_v34, %v1636_v46  ;;  %v6155_v34 = vld [vmem:[#allocation2 + $0x8] sm:$0xff]  ;;  %v5956_v40 = vld [vmem:[%s7714_s10 + $0x90] sm:$0xff] }
 0x534   : > { %2757 = vmatpush.bf16.msrb.mxu0 %v5013_v28  ;;  %2879 = vmatpush.bf16.msrb.mxu3 %v5949_v43  ;;  %v5948_v28 = vld [vmem:[%s7714_s10 + $0x50] sm:$0xff]  ;;  %v5995_v43 = vld [vmem:[%s7714_s10 + $0x1c8] sm:$0xff] }
 0x538   : > { %3031 = vmatpush.bf16.msra.mxu0 %v5961_v18  ;;  %2880 = vmatpush.bf16.msrb.mxu3 %v5948_v28  ;;  %v5990_v18 = vld [vmem:[%s7714_s10 + $0x1a0] sm:$0xff] }
 0x539   : > { %v5994_v28 = vld [vmem:[%s7714_s10 + $0x1c0] sm:$0xff] }
 0x53c   : > { %3032 = vmatpush.bf16.msra.mxu0 %v5960_v9  ;;  %2881 = vmatpush.bf16.msrb.mxu3 %v5947_v5 }
 0x540   : > { %3033 = vmatpush.bf16.msra.mxu0 %v5959_v36  ;;  %2882 = vmatpush.bf16.msrb.mxu3 %v5946_v10 }
 0x544   : > { %3034 = vmatpush.bf16.msra.mxu0 %v5958_v54 }
 0x548   : > { %3035 = vmatpush.bf16.msra.mxu0 %v5957_v23  ;;  %v6000_v23 = vld [vmem:[%s7714_s10 + $0x1f0] sm:$0xff] }
 0x54c   : > { %3036 = vmatpush.bf16.msra.mxu0 %v5956_v40  ;;  %v5997_v40 = vld [vmem:[%s7714_s10 + $0x1d8] sm:$0xff] }
 0x550   : > { %3037 = vmatpush.bf16.msra.mxu0 %v5955_v63  ;;  %v5996_v63 = vld [vmem:[%s7714_s10 + $0x1d0] sm:$0xff] }
 0x554   : > { %3038 = vmatpush.bf16.msra.mxu0 %v5954_v32 }
 0x586   : > { %v2392_v7 = vpop.f32.mrf.mxu3 }
 0x587   : > { %v2397_v14 = vadd.f32 %v2392_v7, %v2301_v12  ;;  %v5983_v7 = vld [vmem:[%s7714_s10 + $0x168] sm:$0xff] }
 0x58e   : > { %v2394_v16 = vpop.f32.mrf.mxu3 }
 0x58f   : > { %v2398_v27 = vadd.f32 %v2394_v16, %v2302_v17  ;;  %v5979_v16 = vld [vmem:[%s7714_s10 + $0x148] sm:$0xff]  ;;  %v5966_v17 = vld [vmem:[%s7714_s10 + $0xe0] sm:$0xff] }
 0x5a0   : > { %v2488_v15 = vpop.f32.mrf.mxu0 }
 0x5a1   : > { %v2493_v45 = vadd.f32 %v2488_v15, %v2397_v14  ;;  %v5969_v14 = vld [vmem:[%s7714_s10 + $0xf8] sm:$0xff] }
 0x5a2   : > { %v5981_v15 = vld [vmem:[%s7714_s10 + $0x158] sm:$0xff] }
 0x5a3   : > { %v2495_v50 = vadd.f32 %v2493_v45, %v7175_v48  ;;  %v6156_v48 = vld [vmem:[#allocation2 + $0x10] sm:$0xff] }
 0x5a4   : > { %v5968_v45 = vld [vmem:[%s7714_s10 + $0xf0] sm:$0xff] }
 0x5a5   : > { %v2501_v59 = vadd.f32 %v6152_v19, %v2495_v50  ;;  %v5967_v50 = vld [vmem:[%s7714_s10 + $0xe8] sm:$0xff] }
 0x5a7   : > { %v2503_v25 = vmax.f32 %v2501_v59, 0.0 }
 0x5a8   : > { %v2490_v1 = vpop.f32.mrf.mxu0 }
 0x5a9   : > { %v2494_v20 = vadd.f32 %v2490_v1, %v2398_v27  ;;  %v5978_v27 = vld [vmem:[%s7714_s10 + $0x140] sm:$0xff]  ;;  %v5965_v1 = vld [vmem:[%s7714_s10 + $0xd8] sm:$0xff] }
 0x5ab   : > { %v2496_v22 = vadd.f32 %v2494_v20, %v1646_v53  ;;  %v5964_v20 = vld [vmem:[%s7714_s10 + $0xd0] sm:$0xff] }
 0x5ad   : > { %v2502_v21 = vadd.f32 %v6152_v19, %v2496_v22  ;;  %v5963_v22 = vld [vmem:[%s7714_s10 + $0xc8] sm:$0xff] }
 0x5af   : > { %v2504_v26 = vmax.f32 %v2502_v21, 0.0 }
 0x5b1   : > { %v7417_v24 = vpack.c.bf16 %v2504_v26, %v2503_v25  ;;  %v5962_v26 = vld [vmem:[%s7714_s10 + $0xc0] sm:$0xff] }
 0x5b3   : > { %2716 = vmatmul.bf16.vlgmr.msrb.gmra.mxu1 %v7417_v24  ;;  %2730 = vmatmul.bf16.vlgmr.msra.gmra.mxu2 %v7417_v24 }
 0x5b4   : > { %2744 = vmatmul.bf16.vlgmr.msra.gmra.mxu3 %v7417_v24  ;;  %2758 = vmatmul.bf16.vlgmr.msrb.gmra.mxu0 %v7417_v24 }
 0x5b5   : > { %2771 = vmatpush.bf16.msra.mxu1 %v7417_v24  ;;  %2802 = vmatpush.bf16.msrb.mxu2 %v7417_v24 }
 0x5b6   : > { %3304 = vmatpush.bf16.msrb.mxu0 %v5985_v2  ;;  %3127 = vmatpush.bf16.msra.mxu3 %v5969_v14 }
 0x5b9   : > { %2958 = vmatpush.bf16.msra.mxu2 %v7417_v24  ;;  %2937 = vmatpush.bf16.msrb.mxu1 %v5945_v3  ;;  %v5991_v3 = vld [vmem:[%s7714_s10 + $0x1a8] sm:$0xff] }
 0x5ba   : > { %3305 = vmatpush.bf16.msrb.mxu0 %v5984_v4  ;;  %3128 = vmatpush.bf16.msra.mxu3 %v5968_v45  ;;  %v6007_v45 = vld [vmem:[%s7714_s10 + $0x228] sm:$0xff] }
 0x5bd   : > { %2938 = vmatpush.bf16.msrb.mxu1 %v5944_v33 }
 0x5be   : > { %3306 = vmatpush.bf16.msrb.mxu0 %v5983_v7  ;;  %3129 = vmatpush.bf16.msra.mxu3 %v5967_v50 }
 0x5c1   : > { %2939 = vmatpush.bf16.msrb.mxu1 %v5943_v35  ;;  %v5989_v35 = vld [vmem:[%s7714_s10 + $0x198] sm:$0xff] }
 0x5c2   : > { %3307 = vmatpush.bf16.msrb.mxu0 %v5982_v11  ;;  %3130 = vmatpush.bf16.msra.mxu3 %v5966_v17  ;;  %v6008_v11 = vld [vmem:[%s7714_s10 + $0x230] sm:$0xff]  ;;  %v6006_v17 = vld [vmem:[%s7714_s10 + $0x220] sm:$0xff] }
 0x5c3   : > { %5126 = vmatmul.msk.bf16.vlgmr.msra.gmra.mxu1 %vm690_vm1, %v6154_v31  ;;  %5127 = vmatmul.msk.bf16.vlgmr.msrb.gmra.mxu2 %vm690_vm1, %v6155_v34  ;;  %v5993_v34 = vld [vmem:[%s7714_s10 + $0x1b8] sm:$0xff] }
 0x5c4   : > { %3054 = vmatpush.bf16.msrb.mxu2 %v7417_v24 }
 0x5c5   : > { %2940 = vmatpush.bf16.msrb.mxu1 %v5942_v38  ;;  %v5988_v38 = vld [vmem:[%s7714_s10 + $0x190] sm:$0xff] }
 0x5c6   : > { %3308 = vmatpush.bf16.msrb.mxu0 %v5981_v15  ;;  %3131 = vmatpush.bf16.msra.mxu3 %v5965_v1  ;;  %v6005_v1 = vld [vmem:[%s7714_s10 + $0x218] sm:$0xff] }
 0x5c9   : > { %2941 = vmatpush.bf16.msrb.mxu1 %v5941_v41  ;;  %v5987_v41 = vld [vmem:[%s7714_s10 + $0x188] sm:$0xff] }
 0x5ca   : > { %3309 = vmatpush.bf16.msrb.mxu0 %v5980_v30  ;;  %3132 = vmatpush.bf16.msra.mxu3 %v5964_v20 }
 0x5cd   : > { %2942 = vmatpush.bf16.msrb.mxu1 %v5940_v47 }
 0x5ce   : > { %3310 = vmatpush.bf16.msrb.mxu0 %v5979_v16  ;;  %3133 = vmatpush.bf16.msra.mxu3 %v5963_v22 }
 0x5d1   : > { %2943 = vmatpush.bf16.msrb.mxu1 %v5939_v13 }
 0x5d2   : > { %3311 = vmatpush.bf16.msrb.mxu0 %v5978_v27  ;;  %3134 = vmatpush.bf16.msra.mxu3 %v5962_v26  ;;  %v6002_v26 = vld [vmem:[%s7714_s10 + $0x200] sm:$0xff] }
 0x5d3   : > { %5208 = vmatmul.msk.bf16.vlgmr.msra.gmra.mxu2 %vm690_vm1, %v6156_v48 }
 0x5d4   : > { %3231 = vmatpush.bf16.msra.mxu2 %v7417_v24 }
 0x5d5   : > { %2944 = vmatpush.bf16.msrb.mxu1 %v5938_v37 }
 0x5d9   : > { %3208 = vmatpush.bf16.msra.mxu1 %v5977_v52 }
 0x5dd   : > { %3209 = vmatpush.bf16.msra.mxu1 %v5976_v8 }
 0x5e1   : > { %3210 = vmatpush.bf16.msra.mxu1 %v5975_v57  ;;  %v6001_v57 = vld [vmem:[%s7714_s10 + $0x1f8] sm:$0xff] }
 0x5e3   : > { %5257 = vmatmul.msk.bf16.vlgmr.msrb.gmra.mxu2 %vm690_vm1, %v6157_v29  ;;  %v5992_v29 = vld [vmem:[%s7714_s10 + $0x1b0] sm:$0xff] }
 0x5e4   : > { %3327 = vmatpush.bf16.msrb.mxu2 %v7417_v24 }
 0x5e5   : > { %3211 = vmatpush.bf16.msra.mxu1 %v5974_v61  ;;  %v5998_v61 = vld [vmem:[%s7714_s10 + $0x1e0] sm:$0xff] }
 0x5e9   : > { %3212 = vmatpush.bf16.msra.mxu1 %v5973_v42 }
 0x5ed   : > { %3213 = vmatpush.bf16.msra.mxu1 %v5972_v0 }
 0x5f1   : > { %3214 = vmatpush.bf16.msra.mxu1 %v5971_v55  ;;  %v6009_v55 = vld [vmem:[%s7714_s10 + $0x238] sm:$0xff] }
 0x5f3   : > { %5354 = vmatmul.msk.bf16.vlgmr.msra.gmra.mxu2 %vm690_vm1, %v6158_v44  ;;  %v6160_v44 = vld [vmem:[#allocation2 + $0x38] sm:$0xff] }
 0x5f4   : > { %3496 = vmatpush.bf16.msra.mxu2 %v6001_v57 }
 0x5f5   : > { %3215 = vmatpush.bf16.msra.mxu1 %v5970_v6 }
 0x5f8   : > { %3497 = vmatpush.bf16.msra.mxu2 %v6000_v23  ;;  %v5586_v23 = vld [vmem:[#allocation12 + $0x50] sm:$0xf0] }
 0x5fc   : > { %3498 = vmatpush.bf16.msra.mxu2 %v5999_v58  ;;  %v5592_v58 = vld [vmem:[#allocation12 + $0x48] sm:$0xf] }
 0x600   : > { %3499 = vmatpush.bf16.msra.mxu2 %v5998_v61  ;;  %v6021_v61 = vld [vmem:[#allocation12 + $0x54] sm:$0xf0] }
 0x603   : > { %5403 = vmatmul.msk.bf16.vlgmr.msrb.gmra.mxu2 %vm690_vm1, %v6159_v49 }
 0x604   : > { %3500 = vmatpush.bf16.msra.mxu2 %v5997_v40 }
 0x608   : > { %3501 = vmatpush.bf16.msra.mxu2 %v5996_v63  ;;  %v5568_v63 = vld [vmem:[#allocation12 + $0x20] sm:$0xf] }
 0x60c   : > { %3502 = vmatpush.bf16.msra.mxu2 %v5995_v43  ;;  %v6016_v43 = vld [vmem:[#allocation12 + $0x2c] sm:$0xf0] }
 0x610   : > { %3503 = vmatpush.bf16.msra.mxu2 %v5994_v28  ;;  %v5569_v28 = vor.u32 %v6016_v43, %v5568_v63  ;;  %v6047_v43 = vld [vmem:[#allocation13 + $0xa8] sm:$0xff] }
 0x630   : > { %v7543_v12 = vpop.f32.mrf.mxu1 }
 0x631   : > { %v7639_v0 = vpop.f32.mrf.mxu0 }
 0x636   : > { %v7551_v60 = vpop.f32.mrf.mxu2 }
 0x637   : > { %v7631_v62 = vpop.f32.mrf.mxu3 }
 0x638   : > { %v7559_v39 = vpop.f32.mrf.mxu1 }
 0x639   : > { %v7649_v4 = vpop.f32.mrf.mxu0 }
 0x63e   : > { %v7567_v46 = vpop.f32.mrf.mxu2 }
 0x63f   : > { %v7641_v32 = vpop.f32.mrf.mxu3 }
 0x640   : > { %v2773_v19 = vpop.f32.mrf.mxu1 }
 0x646   : > { %v2804_v53 = vpop.f32.mrf.mxu2 }
 0x648   : > { %v2775_v59 = vpop.f32.mrf.mxu1 }
 0x649   : > { %v2778_v21 = vpack.c.bf16 %v2775_v59, %v2773_v19  ;;  %v6003_v59 = vld [vmem:[%s7714_s10 + $0x208] sm:$0xff] }
 0x64b   : > { %2945 = vmatmul.bf16.vlgmr.msrb.gmra.mxu1 %v2778_v21 }
 0x64c   : > { %3423 = vmatpush.bf16.msrb.mxu1 %v7417_v24 }
 0x64e   : > { %v2806_v25 = vpop.f32.mrf.mxu2 }
 0x64f   : > { %v2809_v31 = vpack.c.bf16 %v2806_v25, %v2804_v53  ;;  %v6004_v53 = vld [vmem:[%s7714_s10 + $0x210] sm:$0xff] }
 0x651   : > { %2883 = vmatmul.bf16.vlgmr.msrb.gmra.mxu3 %v2809_v31 }
 0x652   : > { %3400 = vmatpush.bf16.msrb.mxu3 %v5993_v34 }
 0x656   : > { %v2960_v48 = vpop.f32.mrf.mxu2  ;;  %3401 = vmatpush.bf16.msrb.mxu3 %v5992_v29 }
 0x65a   : > { %3402 = vmatpush.bf16.msrb.mxu3 %v5991_v3 }
 0x65b   : > { %3216 = vmatmul.bf16.vlgmr.msra.gmra.mxu1 %v7417_v24 }
 0x65c   : > { %3592 = vmatpush.bf16.msra.mxu1 %v6009_v55  ;;  %v5570_v55 = vld [vmem:[#allocation12 + $0x30] sm:$0xf0] }
 0x65e   : > { %v2962_v33 = vpop.f32.mrf.mxu2  ;;  %3403 = vmatpush.bf16.msrb.mxu3 %v5990_v18 }
 0x65f   : > { %v2965_v9 = vpack.c.bf16 %v2962_v33, %v2960_v48 }
 0x660   : > { %3593 = vmatpush.bf16.msra.mxu1 %v6008_v11  ;;  %v5552_v11 = vld [vmem:[#allocation12] sm:$0xf] }
 0x661   : > { %3039 = vmatmul.bf16.vlgmr.msra.gmra.mxu0 %v2965_v9 }
 0x662   : > { %3519 = vmatpush.bf16.msra.mxu0 %v7417_v24  ;;  %3404 = vmatpush.bf16.msrb.mxu3 %v5989_v35  ;;  %v5986_v24 = vld [vmem:[%s7714_s10 + $0x180] sm:$0xff] }
 0x664   : > { %3594 = vmatpush.bf16.msra.mxu1 %v6007_v45 }
 0x666   : > { %v3056_v36 = vpop.f32.mrf.mxu2  ;;  %3405 = vmatpush.bf16.msrb.mxu3 %v5988_v38 }
 0x668   : > { %3595 = vmatpush.bf16.msra.mxu1 %v6006_v17 }
 0x66a   : > { %3406 = vmatpush.bf16.msrb.mxu3 %v5987_v41  ;;  %v5600_v41 = vld [vmem:[#allocation12 + $0x60] sm:$0xf] }
 0x66b   : > { %5452 = vmatmul.msk.bf16.vlgmr.msrb.gmra.mxu1 %vm690_vm1, %v6160_v44  ;;  %v6024_v44 = vld [vmem:[#allocation12 + $0x6c] sm:$0xf0] }
 0x66c   : > { %3596 = vmatpush.bf16.msra.mxu1 %v6005_v1  ;;  %v5610_v1 = vld [vmem:[#allocation12 + $0x78] sm:$0xf0] }
 0x66e   : > { %v3058_v47 = vpop.f32.mrf.mxu2  ;;  %3407 = vmatpush.bf16.msrb.mxu3 %v5986_v24  ;;  %v6022_v24 = vld [vmem:[#allocation12 + $0x64] sm:$0xf] }
 0x66f   : > { %v3061_v13 = vpack.c.bf16 %v3058_v47, %v3056_v36  ;;  %v5601_v47 = vor.u32 %v6024_v44, %v5600_v41  ;;  %v6049_v44 = vld [vmem:[#allocation13 + $0xb8] sm:$0xff] }
 0x670   : > { %3597 = vmatpush.bf16.msra.mxu1 %v6004_v53 }
 0x671   : > { %3135 = vmatmul.bf16.vlgmr.msra.gmra.mxu3 %v3061_v13  ;;  %v5602_v13 = vld [vmem:[#allocation12 + $0x70] sm:$0xf0] }
 0x674   : > { %3598 = vmatpush.bf16.msra.mxu1 %v6003_v59  ;;  %v5594_v59 = vld [vmem:[#allocation12 + $0x58] sm:$0xf0] }
 0x676   : > { %v3233_v37 = vpop.f32.mrf.mxu2 }
 0x678   : > { %3599 = vmatpush.bf16.msra.mxu1 %v6002_v26 }
 0x67e   : > { %v3235_v52 = vpop.f32.mrf.mxu2 }
 0x67f   : > { %v3238_v49 = vpack.c.bf16 %v3235_v52, %v3233_v37  ;;  %v5608_v37 = vld [vmem:[#allocation12 + $0x68] sm:$0xf]  ;;  %v5605_v52 = vor.u32 %v6022_v24, %v5602_v13  ;;  %v6032_v24 = vld [vmem:[#allocation13 + $0x30] sm:$0xff] }
 0x680   : > { %v6040_v13 = vld [vmem:[#allocation13 + $0x70] sm:$0xff] }
 0x681   : > { %3312 = vmatmul.bf16.vlgmr.msrb.gmra.mxu0 %v3238_v49  ;;  %v6025_v49 = vld [vmem:[#allocation12 + $0x74] sm:$0xf0]  ;;  %3744 = vmatpush.bf16.msra.mxu3 %v5605_v52  ;;  %v6048_v52 = vld [vmem:[#allocation13 + $0xb0] sm:$0xff] }
 0x682   : > { %3730 = vmatpush.bf16.msrb.mxu0 %v5601_v47 }
 0x686   : > { %v3329_v51 = vpop.f32.mrf.mxu2 }
 0x68e   : > { %v3331_v8 = vpop.f32.mrf.mxu2 }
 0x68f   : > { %v3334_v54 = vpack.c.bf16 %v3331_v8, %v3329_v51  ;;  %v5609_v51 = vor.u32 %v6025_v49, %v5608_v37  ;;  %v5584_v8 = vld [vmem:[#allocation12 + $0x40] sm:$0xf] }
 0x691   : > { %3408 = vmatmul.bf16.vlgmr.msrb.gmra.mxu3 %v3334_v54  ;;  %5501 = vmatmul.msk.bf16.vlgmr.msra.gmra.mxu0 %vm690_vm1, %v6161_v56  ;;  %v6020_v54 = vld [vmem:[#allocation12 + $0x4c] sm:$0xf0]  ;;  %v6018_v56 = vld [vmem:[#allocation12 + $0x44] sm:$0xf] }
 0x692   : > { %3758 = vmatpush.bf16.msrb.mxu2 %v5609_v51  ;;  %v5585_v57 = vor.u32 %v6020_v54, %v5584_v8  ;;  %v5589_v40 = vor.u32 %v6018_v56, %v5586_v23  ;;  %v6153_v8 = vld [vmem:[#allocation10] ss:$0 sm:$0xff]  ;;  %v6031_v56 = vld [vmem:[#allocation13 + $0x28] sm:$0xff] }
 0x694   : > { %3731 = vmatpush.bf16.msrb.mxu0 %v5585_v57  ;;  %3745 = vmatpush.bf16.msra.mxu3 %v5589_v40 }
 0x698   : > { %3732 = vmatpush.bf16.msrb.mxu0 %v5569_v28  ;;  %v6057_v28 = vld [vmem:[#allocation13 + $0xf8] sm:$0xff] }
 0x6c8   : > { %v2946_v42 = vpop.f32.mrf.mxu1 }
 0x6d0   : > { %v2948_v2 = vpop.f32.mrf.mxu1 }
 0x6d4   : > { %v2884_v5 = vpop.f32.mrf.mxu3 }
 0x6d5   : > { %v2947_v7 = vadd.f32 %v2946_v42, %v2884_v5  ;;  %v5593_v42 = vor.u32 %v6021_v61, %v5592_v58  ;;  %v5576_v5 = vld [vmem:[#allocation12 + $0x28] sm:$0xf]  ;;  %v6030_v61 = vld [vmem:[#allocation13 + $0x20] sm:$0xff] }
 0x6d7   : > { %3759 = vmatpush.bf16.msrb.mxu2 %v5593_v42 }
 0x6d8   : > { %v3217_v6 = vpop.f32.mrf.mxu1 }
 0x6dc   : > { %v2886_v30 = vpop.f32.mrf.mxu3 }
 0x6dd   : > { %v2949_v50 = vadd.f32 %v2948_v2, %v2886_v30  ;;  %v6014_v2 = vld [vmem:[#allocation12 + $0x24] sm:$0xf]  ;;  %v5554_v30 = vld [vmem:[#allocation12 + $0x10] sm:$0xf0] }
 0x6de   : > { %v3040_v10 = vpop.f32.mrf.mxu0 }
 0x6df   : > { %v3045_v14 = vadd.f32 %v3040_v10, %v2947_v7  ;;  %v5573_v7 = vor.u32 %v6014_v2, %v5570_v55  ;;  %v6029_v2 = vld [vmem:[#allocation13 + $0x18] sm:$0xff]  ;;  %v6038_v55 = vld [vmem:[#allocation13 + $0x60] sm:$0xff] }
 0x6e0   : > { %v3219_v15 = vpop.f32.mrf.mxu1 }
 0x6e1   : > { %3746 = vmatpush.bf16.msra.mxu3 %v5573_v7  ;;  %v6056_v7 = vld [vmem:[#allocation13 + $0xf0] sm:$0xff] }
 0x6e6   : > { %v3042_v16 = vpop.f32.mrf.mxu0 }
 0x6e7   : > { %v3046_v27 = vadd.f32 %v3042_v16, %v2949_v50  ;;  %v5560_v50 = vld [vmem:[#allocation12 + $0x8] sm:$0xf]  ;;  %v6013_v16 = vld [vmem:[#allocation12 + $0x14] sm:$0xf0] }
 0x6e8   : > { %v3425_v19 = vpop.f32.mrf.mxu1 }
 0x6f0   : > { %v3427_v20 = vpop.f32.mrf.mxu1 }
 0x6f1   : > { %v3430_v22 = vpack.c.bf16 %v3427_v20, %v3425_v19  ;;  %v6023_v19 = vld [vmem:[#allocation12 + $0x6c] sm:$0xf] }
 0x6f2   : > { %v5613_v53 = vor.u32 %v6023_v19, %v5610_v1  ;;  %v6019_v20 = vld [vmem:[#allocation12 + $0x4c] sm:$0xf]  ;;  %v6053_v19 = vld [vmem:[#allocation13 + $0xd8] sm:$0xff]  ;;  %v6034_v1 = vld [vmem:[#allocation13 + $0x40] sm:$0xff] }
 0x6f3   : > { %3504 = vmatmul.bf16.vlgmr.msra.gmra.mxu2 %v3430_v22  ;;  %v5597_v22 = vor.u32 %v6019_v20, %v5594_v59  ;;  %v6052_v20 = vld [vmem:[#allocation13 + $0xd0] sm:$0xff]  ;;  %v6051_v59 = vld [vmem:[#allocation13 + $0xc8] sm:$0xff] }
 0x6f4   : > { %v3136_v21 = vpop.f32.mrf.mxu3 }
 0x6f5   : > { %v3141_v25 = vadd.f32 %v3136_v21, %v3045_v14  ;;  %v6012_v14 = vld [vmem:[#allocation12 + $0xc] sm:$0xf0]  ;;  %v6015_v21 = vld [vmem:[#allocation12 + $0x2c] sm:$0xf] }
 0x6f6   : > { %v5553_v45 = vor.u32 %v6012_v14, %v5552_v11  ;;  %v6045_v11 = vld [vmem:[#allocation13 + $0x98] sm:$0xff]  ;;  %v6027_v14 = vld [vmem:[#allocation13 + $0x8] sm:$0xff] }
 0x6f7   : > { %v3222_v31 = vadd.f32 %v3217_v6, %v3141_v25  ;;  %v6017_v6 = vld [vmem:[#allocation12 + $0x34] sm:$0xf0]  ;;  %v5578_v25 = vld [vmem:[#allocation12 + $0x38] sm:$0xf0] }
 0x6f8   : > { %v5577_v10 = vor.u32 %v6017_v6, %v5576_v5  ;;  %3733 = vmatpush.bf16.msrb.mxu0 %v5553_v45  ;;  %v6046_v5 = vld [vmem:[#allocation13 + $0xa0] sm:$0xff]  ;;  %v6028_v6 = vld [vmem:[#allocation13 + $0x10] sm:$0xff] }
 0x6f9   : > { %v6036_v45 = vld [vmem:[#allocation13 + $0x50] sm:$0xff] }
 0x6fa   : > { %3760 = vmatpush.bf16.msrb.mxu2 %v5577_v10  ;;  %v6037_v10 = vld [vmem:[#allocation13 + $0x58] sm:$0xff] }
 0x6fc   : > { %v3138_v34 = vpop.f32.mrf.mxu3  ;;  %3772 = vmatpush.bf16.msra.mxu0 %v5613_v53  ;;  %v6042_v53 = vld [vmem:[#allocation13 + $0x80] sm:$0xff] }
 0x6fd   : > { %v3142_v48 = vadd.f32 %v3138_v34, %v3046_v27  ;;  %v5561_v27 = vor.u32 %v6013_v16, %v5560_v50  ;;  %v6011_v34 = vld [vmem:[#allocation12 + $0xc] sm:$0xf]  ;;  %v6026_v50 = vld [vmem:[#allocation13] sm:$0xff] }
 0x6fe   : > { %v3313_v29 = vpop.f32.mrf.mxu0  ;;  %v6054_v16 = vld [vmem:[#allocation13 + $0xe0] sm:$0xff] }
 0x6ff   : > { %v7672_v3 = vadd.f32 %v3313_v29, %v3222_v31  ;;  %v3223_v33 = vadd.f32 %v3219_v15, %v3142_v48  ;;  %v6010_v15 = vld [vmem:[#allocation12 + $0x4] sm:$0xf]  ;;  %3761 = vmatpush.bf16.msrb.mxu2 %v5561_v27  ;;  %v5581_v31 = vor.u32 %v6015_v21, %v5578_v25  ;;  %v5562_v48 = vld [vmem:[#allocation12 + $0x18] sm:$0xf0]  ;;  %v6043_v27 = vld [vmem:[#allocation13 + $0x88] sm:$0xff] }
 0x700   : > { %v5557_v17 = vor.u32 %v6010_v15, %v5554_v30  ;;  %3773 = vmatpush.bf16.msra.mxu0 %v5597_v22  ;;  %v6055_v15 = vld [vmem:[#allocation13 + $0xe8] sm:$0xff]  ;;  %v6044_v30 = vld [vmem:[#allocation13 + $0x90] sm:$0xff]  ;;  %v6050_v21 = vld [vmem:[#allocation13 + $0xc0] sm:$0xff] }
 0x701   : > { %v3633_v22 = vld [vmem:[%s7717_s13] sm:$0xf] }
 0x702   : > { %3747 = vmatpush.bf16.msra.mxu3 %v5557_v17  ;;  %v6035_v17 = vld [vmem:[#allocation13 + $0x48] sm:$0xff]  ;;  %v2538_v25 = vld [vmem:[%s7713_s9] sm:$0xf] }
 0x703   : > { %4086 = vmatpush.bf16.msra.mxu2 %v6049_v44 }
 0x704   : > { %3774 = vmatpush.bf16.msra.mxu0 %v5581_v31  ;;  %v3635_v31 = vperm.slane %v3633_v22, 0 }
 0x706   : > { %v3315_v18 = vpop.f32.mrf.mxu0 }
 0x707   : > { %v7674_v9 = vadd.f32 %v3315_v18, %v3223_v33  ;;  %v5565_v33 = vor.u32 %v6011_v34, %v5562_v48  ;;  %4087 = vmatpush.bf16.msra.mxu2 %v6048_v52  ;;  %v2540_v34 = vperm.slane %v2538_v25, 0 }
 0x709   : > { %3775 = vmatpush.bf16.msra.mxu0 %v5565_v33  ;;  %v2718_v33 = vadd.f32 %v7543_v12, %v2540_v34  ;;  %v2720_v44 = vadd.f32 %v7559_v39, %v2540_v34 }
 0x70b   : > { %4088 = vmatpush.bf16.msra.mxu2 %v6047_v43  ;;  %v3638_v43 = vperm.slane %v3633_v22, 3 }
 0x70e   : > { %v3521_v35 = vpop.f32.mrf.mxu0 }
 0x70f   : > { %4089 = vmatpush.bf16.msra.mxu2 %v6046_v5 }
 0x713   : > { %4090 = vmatpush.bf16.msra.mxu2 %v6045_v11 }
 0x714   : > { %v3409_v26 = vpop.f32.mrf.mxu3 }
 0x716   : > { %v3523_v36 = vpop.f32.mrf.mxu0 }
 0x717   : > { %v3526_v38 = vpack.c.bf16 %v3523_v36, %v3521_v35  ;;  %v3414_v35 = vadd.f32 %v3409_v26, %v7672_v3  ;;  %v6033_v36 = vld [vmem:[#allocation13 + $0x38] sm:$0xff]  ;;  %4091 = vmatpush.bf16.msra.mxu2 %v6044_v30 }
 0x718   : > { %4058 = vmatpush.bf16.msrb.mxu3 %v6033_v36  ;;  %v3637_v36 = vperm.slane %v3633_v22, 2 }
 0x719   : > { %3600 = vmatmul.bf16.vlgmr.msra.gmra.mxu1 %v3526_v38  ;;  %v6041_v38 = vld [vmem:[#allocation13 + $0x78] sm:$0xff] }
 0x71a   : > { %4072 = vmatpush.bf16.msrb.mxu1 %v6041_v38 }
 0x71b   : > { %4092 = vmatpush.bf16.msra.mxu2 %v6043_v27 }
 0x71c   : > { %v3411_v41 = vpop.f32.mrf.mxu3  ;;  %4059 = vmatpush.bf16.msrb.mxu3 %v6032_v24 }
 0x71d   : > { %v3415_v49 = vadd.f32 %v3411_v41, %v7674_v9  ;;  %v6039_v9 = vld [vmem:[#allocation13 + $0x68] sm:$0xff]  ;;  %v2541_v41 = vperm.slane %v2538_v25, 1 }
 0x71e   : > { %4073 = vmatpush.bf16.msrb.mxu1 %v6040_v13  ;;  %v2542_v13 = vperm.slane %v2538_v25, 2 }
 0x71f   : > { %4093 = vmatpush.bf16.msra.mxu2 %v6042_v53 }
 0x720   : > { %4060 = vmatpush.bf16.msrb.mxu3 %v6031_v56  ;;  %v2746_v56 = vadd.f32 %v7631_v62, %v2542_v13  ;;  %v2748_v39 = vadd.f32 %v7641_v32, %v2542_v13 }
 0x722   : > { %4074 = vmatpush.bf16.msrb.mxu1 %v6039_v9 }
 0x724   : > { %4061 = vmatpush.bf16.msrb.mxu3 %v6030_v61 }
 0x726   : > { %4075 = vmatpush.bf16.msrb.mxu1 %v6038_v55 }
 0x728   : > { %4062 = vmatpush.bf16.msrb.mxu3 %v6029_v2  ;;  %v2543_v2 = vperm.slane %v2538_v25, 3 }
 0x72a   : > { %4076 = vmatpush.bf16.msrb.mxu1 %v6037_v10  ;;  %v2760_v10 = vadd.f32 %v7639_v0, %v2543_v2  ;;  %v2762_v11 = vadd.f32 %v7649_v4, %v2543_v2 }
 0x72c   : > { %4063 = vmatpush.bf16.msrb.mxu3 %v6028_v6 }
 0x72e   : > { %4077 = vmatpush.bf16.msrb.mxu1 %v6036_v45 }
 0x730   : > { %4064 = vmatpush.bf16.msrb.mxu3 %v6027_v14 }
 0x732   : > { %4078 = vmatpush.bf16.msrb.mxu1 %v6035_v17 }
 0x734   : > { %4065 = vmatpush.bf16.msrb.mxu3 %v6026_v50 }
 0x736   : > { %4079 = vmatpush.bf16.msrb.mxu1 %v6034_v1 }
 0x776   : > { %v3505_v29 = vpop.f32.mrf.mxu2 }
 0x777   : > { %v3510_v47 = vadd.f32 %v3505_v29, %v3414_v35 }
 0x77e   : > { %v3507_v37 = vpop.f32.mrf.mxu2 }
 0x77f   : > { %v3511_v54 = vadd.f32 %v3507_v37, %v3415_v49 }
 0x796   : > { %v3601_v18 = vpop.f32.mrf.mxu1 }
 0x797   : > { %v3606_v51 = vadd.f32 %v3601_v18, %v3510_v47  ;;  %v3636_v18 = vperm.slane %v3633_v22, 1 }
 0x799   : > { %v3612_v57 = vadd.f32 %v6153_v8, %v3606_v51  ;;  %v2732_v51 = vadd.f32 %v7551_v60, %v2541_v41 }
 0x79b   : > { %v3614_v40 = vmax.f32 %v3612_v57, 0.0 }
 0x79e   : > { %v3603_v3 = vpop.f32.mrf.mxu1 }
 0x79f   : > { %v3607_v23 = vadd.f32 %v3603_v3, %v3511_v54  ;;  %v2734_v3 = vadd.f32 %v7567_v46, %v2541_v41 }
 0x7a1   : > { %v3613_v58 = vadd.f32 %v6153_v8, %v3607_v23 }
 0x7a3   : > { %v3615_v42 = vmax.f32 %v3613_v58, 0.0 }
 0x7a5   : > { %v3632_v63 = vpack.c.bf16 %v3615_v42, %v3614_v40 }
 0x7a7   : > { %5614 = vmatmul.msk.bf16.vlgmr.msrb.gmra.mxu0 %vm662_vm0, %v3632_v63  ;;  %5615 = vmatmul.msk.bf16.vlgmr.msra.gmra.mxu3 %vm662_vm0, %v3632_v63 }
 0x7a8   : > { %5616 = vmatmul.msk.bf16.vlgmr.msrb.gmra.mxu2 %vm662_vm0, %v3632_v63  ;;  %4100 = vmatpush.bf16.msrb.mxu0 %v6057_v28 }
 0x7ac   : > { %4101 = vmatpush.bf16.msrb.mxu0 %v6056_v7 }
 0x7b0   : > { %4102 = vmatpush.bf16.msrb.mxu0 %v6055_v15 }
 0x7b4   : > { %4103 = vmatpush.bf16.msrb.mxu0 %v6054_v16 }
 0x7b7   : > { %5617 = vmatmul.msk.bf16.vlgmr.msra.gmra.mxu0 %vm662_vm0, %v3632_v63 }
 0x7b8   : > { %4104 = vmatpush.bf16.msrb.mxu0 %v6053_v19 }
 0x7bc   : > { %4105 = vmatpush.bf16.msrb.mxu0 %v6052_v20 }
 0x7c0   : > { %4106 = vmatpush.bf16.msrb.mxu0 %v6051_v59 }
 0x7c4   : > { %4107 = vmatpush.bf16.msrb.mxu0 %v6050_v21 }
 0x824   : > { %v3735_v26 = vpop.f32.mrf.mxu0 }
 0x825   : > { %v3736_v48 = vadd.f32 %v3735_v26, %v3635_v31 }
 0x827   : > { %v3782_v47 = vadd.f32 %v3736_v48, %v2718_v33 }
 0x829   : > { %v3790_v8 = vmax.f32 %v3782_v47, 0.0 }
 0x82a   : > { %v3749_v29 = vpop.f32.mrf.mxu3 }
 0x82b   : > { %v3763_v35 = vpop.f32.mrf.mxu2  ;;  %v3750_v37 = vadd.f32 %v3749_v29, %v3636_v18 }
 0x82c   : > { %v3737_v38 = vpop.f32.mrf.mxu0  ;;  %v3764_v49 = vadd.f32 %v3763_v35, %v3637_v36 }
 0x82d   : > { %v3738_v24 = vadd.f32 %v3737_v38, %v3635_v31  ;;  %v3783_v57 = vadd.f32 %v3750_v37, %v2732_v51 }
 0x82e   : > { %v3784_v40 = vadd.f32 %v3764_v49, %v2746_v56 }
 0x82f   : > { %v3786_v52 = vadd.f32 %v3738_v24, %v2720_v44  ;;  %v3791_v28 = vmax.f32 %v3783_v57, 0.0 }
 0x830   : > { %v3792_v62 = vmax.f32 %v3784_v40, 0.0 }
 0x831   : > { %v3794_v54 = vmax.f32 %v3786_v52, 0.0 }
 0x832   : > { %v3751_v12 = vpop.f32.mrf.mxu3 }
 0x833   : > { %v3862_v23 = vpack.c.bf16 %v3794_v54, %v3790_v8  ;;  %v3752_v58 = vadd.f32 %v3751_v12, %v3636_v18  ;;  %v3765_v61 = vpop.f32.mrf.mxu2 }
 0x834   : > { %v3766_v42 = vadd.f32 %v3765_v61, %v3637_v36  ;;  %v3777_v63 = vpop.f32.mrf.mxu0 }
 0x835   : > { %v3787_v9 = vadd.f32 %v3752_v58, %v2734_v3  ;;  %4066 = vmatmul.bf16.vlgmr.msrb.gmra.mxu3 %v3862_v23  ;;  %v3778_v46 = vadd.f32 %v3777_v63, %v3638_v43 }
 0x836   : > { %v3788_v60 = vadd.f32 %v3766_v42, %v2748_v39 }
 0x837   : > { %v3795_v55 = vmax.f32 %v3787_v9, 0.0  ;;  %v3785_v14 = vadd.f32 %v3778_v46, %v2760_v10 }
 0x838   : > { %v3796_v5 = vmax.f32 %v3788_v60, 0.0 }
 0x839   : > { %v3863_v6 = vpack.c.bf16 %v3795_v55, %v3791_v28  ;;  %v3793_v30 = vmax.f32 %v3785_v14, 0.0 }
 0x83a   : > { %v3864_v7 = vpack.c.bf16 %v3796_v5, %v3792_v62 }
 0x83b   : > { %4080 = vmatmul.bf16.vlgmr.msrb.gmra.mxu1 %v3863_v6 }
 0x83c   : > { %4094 = vmatmul.bf16.vlgmr.msra.gmra.mxu2 %v3864_v7  ;;  %v3779_v32 = vpop.f32.mrf.mxu0 }
 0x83d   : > { %v3780_v15 = vadd.f32 %v3779_v32, %v3638_v43 }
 0x83f   : > { %v3789_v45 = vadd.f32 %v3780_v15, %v2762_v11 }
 0x841   : > { %v3797_v50 = vmax.f32 %v3789_v45, 0.0 }
 0x843   : > { %v3865_v16 = vpack.c.bf16 %v3797_v50, %v3793_v30 }
 0x845   : > { %4108 = vmatmul.bf16.vlgmr.msrb.gmra.mxu0 %v3865_v16 }
 0x8b8   : > { %v4067_v17 = vpop.f32.mrf.mxu3  ;;  %v4081_v27 = vpop.f32.mrf.mxu1 }
 0x8b9   : > { %v4082_v19 = vadd.f32 %v4081_v27, %v4067_v17 }
 0x8bf   : > { %v4095_v1 = vpop.f32.mrf.mxu2 }
 0x8c0   : > { %v4096_v53 = vadd.f32 %v4095_v1, %v4082_v19  ;;  %v4069_v4 = vpop.f32.mrf.mxu3  ;;  %v4083_v59 = vpop.f32.mrf.mxu1 }
 0x8c1   : > { %v4084_v22 = vadd.f32 %v4083_v59, %v4069_v4 }
 0x8c2   : > { %v4109_v0 = vpop.f32.mrf.mxu0 }
 0x8c3   : > { %v4110_v20 = vadd.f32 %v4109_v0, %v4096_v53 }
 0x8c5   : > { %4114 = vst [vmem:[%s621_s27] sm:$0xff] %v4110_v20 }
 0x8c7   : > { %v4097_v21 = vpop.f32.mrf.mxu2 }
 0x8c8   : > { %v4098_v25 = vadd.f32 %v4097_v21, %v4084_v22 }
 0x8ca   : > { %v4111_v26 = vpop.f32.mrf.mxu0 }
 0x8cb   : > { %v4112_v31 = vadd.f32 %v4111_v26, %v4098_v25 }
 0x8cd   : > { %4115 = vst [vmem:[%s621_s27 + $0x8] sm:$0xff] %v4112_v31 }
 0x8ce PF: > { %s7730_s22 = sld [smem:[#allocation20_spill]] }
 0x8d4   : > { %s30_s18 = sadd.s32 1, %s7730_s22  }
 0x8d5   : > { %p27_p7 = scmp.ge.s32.totalorder %s30_s18, 4  }
 0x8d7   :  { %29 = sbr.rel (!%p27_p7) target bundleno = 9 (0x9), region = 174 }
 0x8dc   :  { %4137 = vsyncpa [#allocation3], 1 }
 0x8dd   :  { %4139 = vsyncpa [#allocation3 + $0x1], 1 }
 0x8de   :  { %4140 = vsyncpa [#allocation5], 1 }
 0x8df   :  { %4141 = vsyncpa [#allocation8], 1 }
 0x8e0   :  { %4142 = vsyncpa [#allocation11], 1 }
 0x8e1   :  { %4143 = vsyncpa [#allocation14], 1 }

</bundles_post_ra>
